<compile_context>
chip_gen: v7x
topology: tpu7x:2x2x1
jax: 0.10.0
libtpu: 0.0.40
codegen_flags: <defaults>
</compile_context>

<pallas_src>
import functools

import jax
import jax.numpy as jnp
from jax.experimental import pallas as pl
from jax.experimental.pallas import tpu as pltpu


def basic_block_kernel(xa_ref, xb_ref, w1_ref, sb1_ref, w2_ref, sb2_ref, o_ref,
                       *, H, W, TH):
    """One (batch image, row-tile) step of the fused BasicBlock.

    xa_ref : (1, TH,  W+4, Cin)  padded-input rows [h*TH,      h*TH+TH  )
    xb_ref : (1, 4,   W+4, Cin)  padded-input rows [h*TH+TH,   h*TH+TH+4)  (halo)
    w1_ref : (9, Cin, Cout)      conv1 taps, tap index = kh*3 + kw
    sb1_ref: (2, Cout)           folded BN1 [scale; bias]
    w2_ref : (9, Cout, Cout)     conv2 taps
    sb2_ref: (2, Cout)           folded BN2 [scale; bias]
    o_ref  : (1, TH, W, Cout)    output rows [h*TH, h*TH+TH)
    """
    cin = xa_ref.shape[-1]
    cout = o_ref.shape[-1]

    # Full (TH+4)-row, (W+4)-col padded input window for this tile.
    x_win = jnp.concatenate([xa_ref[...], xb_ref[...]], axis=1)

    # ---- conv1 over the extended (TH+2, W+2) region: 9 shifted MXU matmuls --
    # The extended region lets conv2 run without any re-padded VMEM scratch.
    # TODO(synk): for real channel counts (>=64) fold taps into the contraction
    #             dim (im2col, K=9*Cin) and pad Cout to a lane multiple; with
    #             Cin=Cout=4 in the demo the matmuls are intentionally tiny.
    w1_t = w1_ref[...]
    p1 = (TH + 2) * (W + 2)
    acc1 = jnp.zeros((p1, cout), jnp.float32)
    for kh in range(3):
        for kw in range(3):
            patch = x_win[:, kh:kh + TH + 2, kw:kw + W + 2, :].reshape(p1, cin)
            acc1 = acc1 + jnp.dot(patch, w1_t[kh * 3 + kw],
                                  preferred_element_type=jnp.float32)

    # ---- folded BN1 + ReLU (f32) --------------------------------------------
    y = jnp.maximum(acc1 * sb1_ref[0, :] + sb1_ref[1, :], 0.0)
    y = y.reshape(1, TH + 2, W + 2, cout)

    # conv2 must see zeros outside the image (PyTorch zero-pads its input), so
    # zero the out-of-image ring of the extended intermediate with an iota mask
    # instead of materializing / bulk-zeroing a padded scratch buffer.
    r0 = pl.program_id(1) * TH
    row = jax.lax.broadcasted_iota(jnp.int32, (1, TH + 2, W + 2, 1), 1) + (r0 - 1)
    col = jax.lax.broadcasted_iota(jnp.int32, (1, TH + 2, W + 2, 1), 2) - 1
    inside = (row >= 0) & (row < H) & (col >= 0) & (col < W)
    y = jnp.where(inside, y, 0.0).astype(x_win.dtype)

    # ---- conv2 ---------------------------------------------------------------
    w2_t = w2_ref[...]
    p2 = TH * W
    acc2 = jnp.zeros((p2, cout), jnp.float32)
    for kh in range(3):
        for kw in range(3):
            patch = y[:, kh:kh + TH, kw:kw + W, :].reshape(p2, cout)
            acc2 = acc2 + jnp.dot(patch, w2_t[kh * 3 + kw],
                                  preferred_element_type=jnp.float32)

    # ---- folded BN2 + residual add + ReLU ------------------------------------
    out = acc2 * sb2_ref[0, :] + sb2_ref[1, :]
    res = x_win[:, 2:TH + 2, 2:W + 2, :].reshape(p2, cin).astype(jnp.float32)
    out = jnp.maximum(out + res, 0.0)
    o_ref[...] = out.reshape(1, TH, W, cout).astype(o_ref.dtype)


def _fold_bn(gamma, beta, mean, var, eps=1e-5):
    scale = gamma / jnp.sqrt(var + eps)
    bias = beta - mean * scale
    return jnp.stack([scale, bias], axis=0).astype(jnp.float32)   # (2, C)


def _pick_row_tile(H, W, C, itemsize):
    """Largest multiple-of-4 divisor of H whose per-step working set stays under
    a small VMEM budget (the input window is double-buffered by the pipeline)."""
    candidates = [t for t in range(4, H + 1, 4) if H % t == 0]
    # TODO(synk): generalize to H not a multiple of 4 (pad H or mask the last tile).
    assert candidates, "H must be a multiple of 4"
    budget = 2 * 1024 * 1024

    def step_bytes(t):
        win = (t + 4) * (W + 4) * C * itemsize      # padded input window
        mid = (t + 2) * (W + 2) * C * 4             # f32 extended intermediate
        out = t * W * C * itemsize
        return 2 * win + mid + 2 * out              # x2: double buffering

    fitting = [t for t in candidates if step_bytes(t) <= budget] or [candidates[0]]
    non_full = [t for t in fitting if t < H]        # keep >=2 row tiles if possible
    return max(non_full) if non_full else max(fitting)


@jax.jit
def basic_block_forward(x_nchw, w1, bn1, w2, bn2):
    """x_nchw: (N, Cin, H, W); w1: (Cout, Cin, 3, 3); w2: (Cout, Cout, 3, 3);
    bn1/bn2: tuples (gamma, beta, running_mean, running_var). Returns NCHW."""
    N, Cin, H, W = x_nchw.shape
    Cout = w1.shape[0]
    # Module defaults only: stride == 1, downsample is None -> Cin == Cout.
    assert Cin == Cout, "TODO(synk): stride>1 / downsample branch not implemented"

    # NCHW -> NHWC at the module boundary (a full NHWC network would skip this).
    x_nhwc = jnp.transpose(x_nchw, (0, 2, 3, 1))
    # Single pad pass: a 2-pixel zero halo in H and W feeds both convs.
    x_pad = jnp.pad(x_nhwc, ((0, 0), (2, 2), (2, 2), (0, 0)))

    # OIHW -> (kh*3+kw, I, O): taps on the leading axis, channels on lanes.
    w1_taps = jnp.transpose(w1, (2, 3, 1, 0)).reshape(9, Cin, Cout)
    w2_taps = jnp.transpose(w2, (2, 3, 1, 0)).reshape(9, Cout, Cout)
    sb1 = _fold_bn(*bn1)
    sb2 = _fold_bn(*bn2)

    itemsize = x_nchw.dtype.itemsize
    TH = _pick_row_tile(H, W, max(Cin, Cout), itemsize)
    n_row_tiles = H // TH

    # Input window = TH rows (spec A) + the next 4 halo rows (spec B) of the
    # same padded array; the residual is its interior, so x is read only once.
    spec_a = pl.BlockSpec((1, TH, W + 4, Cin), lambda n, h: (n, h, 0, 0))
    spec_b = pl.BlockSpec((1, 4, W + 4, Cin),
                          lambda n, h: (n, (h + 1) * (TH // 4), 0, 0))
    w1_spec = pl.BlockSpec((9, Cin, Cout), lambda n, h: (0, 0, 0))
    w2_spec = pl.BlockSpec((9, Cout, Cout), lambda n, h: (0, 0, 0))
    sb_spec = pl.BlockSpec((2, Cout), lambda n, h: (0, 0))
    out_spec = pl.BlockSpec((1, TH, W, Cout), lambda n, h: (n, h, 0, 0))

    flops = 2 * (2 * 9 * Cin * Cout) * N * H * W            # two 3x3 convs
    bytes_accessed = (N * (H + 4) * (W + 4) * Cin * itemsize     # input (read ~once)
                      + N * H * W * Cout * itemsize              # output
                      + (w1_taps.size + w2_taps.size) * itemsize
                      + (sb1.size + sb2.size) * 4)

    out_nhwc = pl.pallas_call(
        functools.partial(basic_block_kernel, H=H, W=W, TH=TH),
        out_shape=jax.ShapeDtypeStruct((N, H, W, Cout), x_nchw.dtype),
        grid=(N, n_row_tiles),
        in_specs=[spec_a, spec_b, w1_spec, sb_spec, w2_spec, sb_spec],
        out_specs=out_spec,
        compiler_params=pltpu.CompilerParams(
            dimension_semantics=("parallel", "parallel"),
            vmem_limit_bytes=32 * 1024 * 1024),
        cost_estimate=pl.CostEstimate(flops=flops, transcendentals=0,
                                      bytes_accessed=bytes_accessed),
    )(x_pad, x_pad, w1_taps, sb1, w2_taps, sb2)

    return jnp.transpose(out_nhwc, (0, 3, 1, 2))


def reference_forward(x, w1, bn1, w2, bn2):
    """Pure-JAX reference, NCHW, matching PyTorch eval-mode semantics."""
    def conv(x, w):
        return jax.lax.conv_general_dilated(
            x, w, window_strides=(1, 1), padding=((1, 1), (1, 1)),
            dimension_numbers=("NCHW", "OIHW", "NCHW"))

    def bn(x, p, eps=1e-5):
        gamma, beta, mean, var = p
        inv = gamma / jnp.sqrt(var + eps)
        return (x - mean[None, :, None, None]) * inv[None, :, None, None] \
            + beta[None, :, None, None]

    out = jax.nn.relu(bn(conv(x, w1), bn1))
    out = bn(conv(out, w2), bn2)
    return jax.nn.relu(out + x)


if __name__ == "__main__":
    key = jax.random.PRNGKey(0)
    k = jax.random.split(key, 10)

    N, C, H, W = 2, 4, 16, 16          # inplanes = planes = 4, stride = 1
    x = jax.random.normal(k[0], (N, C, H, W), jnp.float32)

    w1 = jax.random.normal(k[1], (C, C, 3, 3), jnp.float32) * 0.2
    w2 = jax.random.normal(k[2], (C, C, 3, 3), jnp.float32) * 0.2
    bn1 = (jax.random.uniform(k[3], (C,), jnp.float32, 0.5, 1.5),   # gamma
           jax.random.normal(k[4], (C,), jnp.float32) * 0.1,        # beta
           jax.random.normal(k[5], (C,), jnp.float32) * 0.1,        # running_mean
           jax.random.uniform(k[6], (C,), jnp.float32, 0.5, 1.5))   # running_var
    bn2 = (jax.random.uniform(k[7], (C,), jnp.float32, 0.5, 1.5),
           jax.random.normal(k[8], (C,), jnp.float32) * 0.1,
           jax.random.normal(k[9], (C,), jnp.float32) * 0.1,
           jnp.ones((C,), jnp.float32))

    out = jax.block_until_ready(basic_block_forward(x, w1, bn1, w2, bn2))
    ref = reference_forward(x, w1, bn1, w2, bn2)

    assert out.shape == (N, C, H, W)
    err = float(jnp.max(jnp.abs(out - ref)))
    assert jnp.allclose(out, ref, atol=1e-4, rtol=1e-4), f"max err = {err}"
    print("KERNEL_OK")
</pallas_src>

<mosaic_0001>
module attributes {stable_mosaic.version = 11 : i64} {
  func.func @basic_block_kernel(%arg0: i32, %arg1: i32, %arg2: memref<1x8x20x4xf32, #tpu.memory_space<vmem>>, %arg3: memref<1x4x20x4xf32, #tpu.memory_space<vmem>>, %arg4: memref<9x4x4xf32, #tpu.memory_space<vmem>>, %arg5: memref<2x4xf32, #tpu.memory_space<vmem>>, %arg6: memref<9x4x4xf32, #tpu.memory_space<vmem>>, %arg7: memref<2x4xf32, #tpu.memory_space<vmem>>, %arg8: memref<1x8x16x4xf32, #tpu.memory_space<vmem>>) attributes {dimension_semantics = [#tpu.dimension_semantics<parallel>, #tpu.dimension_semantics<parallel>], iteration_bounds = array<i64: 2, 2>, scalar_prefetch = 0 : i64, scratch_operands = 0 : i64, tpu.core_type = #tpu.core_type<tc>, window_params = [{transform_indices = @transform_0, window_bounds = array<i64: 1, 8, 20, 4>}, {transform_indices = @transform_1, window_bounds = array<i64: 1, 4, 20, 4>}, {pipeline_mode = #tpu.pipeline_mode<synchronous>, transform_indices = @transform_2, window_bounds = array<i64: 9, 4, 4>}, {pipeline_mode = #tpu.pipeline_mode<synchronous>, transform_indices = @transform_3, window_bounds = array<i64: 2, 4>}, {pipeline_mode = #tpu.pipeline_mode<synchronous>, transform_indices = @transform_4, window_bounds = array<i64: 9, 4, 4>}, {pipeline_mode = #tpu.pipeline_mode<synchronous>, transform_indices = @transform_5, window_bounds = array<i64: 2, 4>}, {transform_indices = @transform_6, window_bounds = array<i64: 1, 8, 16, 4>}]} {
    %c0 = arith.constant 0 : index
    %c0_0 = arith.constant 0 : index
    %c0_1 = arith.constant 0 : index
    %c0_2 = arith.constant 0 : index
    %0 = vector.load %arg2[%c0, %c0_0, %c0_1, %c0_2] : memref<1x8x20x4xf32, #tpu.memory_space<vmem>>, vector<1x8x20x4xf32>
    %c0_3 = arith.constant 0 : index
    %c0_4 = arith.constant 0 : index
    %c0_5 = arith.constant 0 : index
    %c0_6 = arith.constant 0 : index
    %1 = vector.load %arg3[%c0_3, %c0_4, %c0_5, %c0_6] : memref<1x4x20x4xf32, #tpu.memory_space<vmem>>, vector<1x4x20x4xf32>
    %2 = tpu.concatenate %0, %1 in 1 : vector<1x8x20x4xf32>, vector<1x4x20x4xf32> -> vector<1x12x20x4xf32>
    %c0_7 = arith.constant 0 : index
    %c0_8 = arith.constant 0 : index
    %c0_9 = arith.constant 0 : index
    %3 = vector.load %arg4[%c0_7, %c0_8, %c0_9] : memref<9x4x4xf32, #tpu.memory_space<vmem>>, vector<9x4x4xf32>
    %cst = arith.constant 0.000000e+00 : f32
    %4 = vector.broadcast %cst : f32 to vector<180x4xf32>
    %5 = vector.extract_strided_slice %2 {offsets = [0, 0, 0, 0], sizes = [1, 10, 18, 4], strides = [1, 1, 1, 1]} : vector<1x12x20x4xf32> to vector<1x10x18x4xf32>
    %6 = vector.shape_cast %5 : vector<1x10x18x4xf32> to vector<180x4xf32>
    %7 = vector.extract_strided_slice %3 {offsets = [0, 0, 0], sizes = [1, 4, 4], strides = [1, 1, 1]} : vector<9x4x4xf32> to vector<1x4x4xf32>
    %8 = vector.shape_cast %7 : vector<1x4x4xf32> to vector<4x4xf32>
    %cst_10 = arith.constant dense<0.000000e+00> : vector<180x4xf32>
    %9 = tpu.matmul %6, %8, %cst_10 {dimension_numbers = #tpu.dot_dimension_numbers<[1], [0], [0], [1], [0, 0, 1, 1], [], []>} : vector<180x4xf32>, vector<4x4xf32>, vector<180x4xf32> -> vector<180x4xf32>
    %10 = arith.addf %4, %9 : vector<180x4xf32>
    %11 = vector.extract_strided_slice %2 {offsets = [0, 0, 1, 0], sizes = [1, 10, 18, 4], strides = [1, 1, 1, 1]} : vector<1x12x20x4xf32> to vector<1x10x18x4xf32>
    %12 = vector.shape_cast %11 : vector<1x10x18x4xf32> to vector<180x4xf32>
    %13 = vector.extract_strided_slice %3 {offsets = [1, 0, 0], sizes = [1, 4, 4], strides = [1, 1, 1]} : vector<9x4x4xf32> to vector<1x4x4xf32>
    %14 = vector.shape_cast %13 : vector<1x4x4xf32> to vector<4x4xf32>
    %cst_11 = arith.constant dense<0.000000e+00> : vector<180x4xf32>
    %15 = tpu.matmul %12, %14, %cst_11 {dimension_numbers = #tpu.dot_dimension_numbers<[1], [0], [0], [1], [0, 0, 1, 1], [], []>} : vector<180x4xf32>, vector<4x4xf32>, vector<180x4xf32> -> vector<180x4xf32>
    %16 = arith.addf %10, %15 : vector<180x4xf32>
    %17 = vector.extract_strided_slice %2 {offsets = [0, 0, 2, 0], sizes = [1, 10, 18, 4], strides = [1, 1, 1, 1]} : vector<1x12x20x4xf32> to vector<1x10x18x4xf32>
    %18 = vector.shape_cast %17 : vector<1x10x18x4xf32> to vector<180x4xf32>
    %19 = vector.extract_strided_slice %3 {offsets = [2, 0, 0], sizes = [1, 4, 4], strides = [1, 1, 1]} : vector<9x4x4xf32> to vector<1x4x4xf32>
    %20 = vector.shape_cast %19 : vector<1x4x4xf32> to vector<4x4xf32>
    %cst_12 = arith.constant dense<0.000000e+00> : vector<180x4xf32>
    %21 = tpu.matmul %18, %20, %cst_12 {dimension_numbers = #tpu.dot_dimension_numbers<[1], [0], [0], [1], [0, 0, 1, 1], [], []>} : vector<180x4xf32>, vector<4x4xf32>, vector<180x4xf32> -> vector<180x4xf32>
    %22 = arith.addf %16, %21 : vector<180x4xf32>
    %23 = vector.extract_strided_slice %2 {offsets = [0, 1, 0, 0], sizes = [1, 10, 18, 4], strides = [1, 1, 1, 1]} : vector<1x12x20x4xf32> to vector<1x10x18x4xf32>
    %24 = vector.shape_cast %23 : vector<1x10x18x4xf32> to vector<180x4xf32>
    %25 = vector.extract_strided_slice %3 {offsets = [3, 0, 0], sizes = [1, 4, 4], strides = [1, 1, 1]} : vector<9x4x4xf32> to vector<1x4x4xf32>
    %26 = vector.shape_cast %25 : vector<1x4x4xf32> to vector<4x4xf32>
    %cst_13 = arith.constant dense<0.000000e+00> : vector<180x4xf32>
    %27 = tpu.matmul %24, %26, %cst_13 {dimension_numbers = #tpu.dot_dimension_numbers<[1], [0], [0], [1], [0, 0, 1, 1], [], []>} : vector<180x4xf32>, vector<4x4xf32>, vector<180x4xf32> -> vector<180x4xf32>
    %28 = arith.addf %22, %27 : vector<180x4xf32>
    %29 = vector.extract_strided_slice %2 {offsets = [0, 1, 1, 0], sizes = [1, 10, 18, 4], strides = [1, 1, 1, 1]} : vector<1x12x20x4xf32> to vector<1x10x18x4xf32>
    %30 = vector.shape_cast %29 : vector<1x10x18x4xf32> to vector<180x4xf32>
    %31 = vector.extract_strided_slice %3 {offsets = [4, 0, 0], sizes = [1, 4, 4], strides = [1, 1, 1]} : vector<9x4x4xf32> to vector<1x4x4xf32>
    %32 = vector.shape_cast %31 : vector<1x4x4xf32> to vector<4x4xf32>
    %cst_14 = arith.constant dense<0.000000e+00> : vector<180x4xf32>
    %33 = tpu.matmul %30, %32, %cst_14 {dimension_numbers = #tpu.dot_dimension_numbers<[1], [0], [0], [1], [0, 0, 1, 1], [], []>} : vector<180x4xf32>, vector<4x4xf32>, vector<180x4xf32> -> vector<180x4xf32>
    %34 = arith.addf %28, %33 : vector<180x4xf32>
    %35 = vector.extract_strided_slice %2 {offsets = [0, 1, 2, 0], sizes = [1, 10, 18, 4], strides = [1, 1, 1, 1]} : vector<1x12x20x4xf32> to vector<1x10x18x4xf32>
    %36 = vector.shape_cast %35 : vector<1x10x18x4xf32> to vector<180x4xf32>
    %37 = vector.extract_strided_slice %3 {offsets = [5, 0, 0], sizes = [1, 4, 4], strides = [1, 1, 1]} : vector<9x4x4xf32> to vector<1x4x4xf32>
    %38 = vector.shape_cast %37 : vector<1x4x4xf32> to vector<4x4xf32>
    %cst_15 = arith.constant dense<0.000000e+00> : vector<180x4xf32>
    %39 = tpu.matmul %36, %38, %cst_15 {dimension_numbers = #tpu.dot_dimension_numbers<[1], [0], [0], [1], [0, 0, 1, 1], [], []>} : vector<180x4xf32>, vector<4x4xf32>, vector<180x4xf32> -> vector<180x4xf32>
    %40 = arith.addf %34, %39 : vector<180x4xf32>
    %41 = vector.extract_strided_slice %2 {offsets = [0, 2, 0, 0], sizes = [1, 10, 18, 4], strides = [1, 1, 1, 1]} : vector<1x12x20x4xf32> to vector<1x10x18x4xf32>
    %42 = vector.shape_cast %41 : vector<1x10x18x4xf32> to vector<180x4xf32>
    %43 = vector.extract_strided_slice %3 {offsets = [6, 0, 0], sizes = [1, 4, 4], strides = [1, 1, 1]} : vector<9x4x4xf32> to vector<1x4x4xf32>
    %44 = vector.shape_cast %43 : vector<1x4x4xf32> to vector<4x4xf32>
    %cst_16 = arith.constant dense<0.000000e+00> : vector<180x4xf32>
    %45 = tpu.matmul %42, %44, %cst_16 {dimension_numbers = #tpu.dot_dimension_numbers<[1], [0], [0], [1], [0, 0, 1, 1], [], []>} : vector<180x4xf32>, vector<4x4xf32>, vector<180x4xf32> -> vector<180x4xf32>
    %46 = arith.addf %40, %45 : vector<180x4xf32>
    %47 = vector.extract_strided_slice %2 {offsets = [0, 2, 1, 0], sizes = [1, 10, 18, 4], strides = [1, 1, 1, 1]} : vector<1x12x20x4xf32> to vector<1x10x18x4xf32>
    %48 = vector.shape_cast %47 : vector<1x10x18x4xf32> to vector<180x4xf32>
    %49 = vector.extract_strided_slice %3 {offsets = [7, 0, 0], sizes = [1, 4, 4], strides = [1, 1, 1]} : vector<9x4x4xf32> to vector<1x4x4xf32>
    %50 = vector.shape_cast %49 : vector<1x4x4xf32> to vector<4x4xf32>
    %cst_17 = arith.constant dense<0.000000e+00> : vector<180x4xf32>
    %51 = tpu.matmul %48, %50, %cst_17 {dimension_numbers = #tpu.dot_dimension_numbers<[1], [0], [0], [1], [0, 0, 1, 1], [], []>} : vector<180x4xf32>, vector<4x4xf32>, vector<180x4xf32> -> vector<180x4xf32>
    %52 = arith.addf %46, %51 : vector<180x4xf32>
    %53 = vector.extract_strided_slice %2 {offsets = [0, 2, 2, 0], sizes = [1, 10, 18, 4], strides = [1, 1, 1, 1]} : vector<1x12x20x4xf32> to vector<1x10x18x4xf32>
    %54 = vector.shape_cast %53 : vector<1x10x18x4xf32> to vector<180x4xf32>
    %55 = vector.extract_strided_slice %3 {offsets = [8, 0, 0], sizes = [1, 4, 4], strides = [1, 1, 1]} : vector<9x4x4xf32> to vector<1x4x4xf32>
    %56 = vector.shape_cast %55 : vector<1x4x4xf32> to vector<4x4xf32>
    %cst_18 = arith.constant dense<0.000000e+00> : vector<180x4xf32>
    %57 = tpu.matmul %54, %56, %cst_18 {dimension_numbers = #tpu.dot_dimension_numbers<[1], [0], [0], [1], [0, 0, 1, 1], [], []>} : vector<180x4xf32>, vector<4x4xf32>, vector<180x4xf32> -> vector<180x4xf32>
    %58 = arith.addf %52, %57 : vector<180x4xf32>
    %c0_19 = arith.constant 0 : index
    %c0_20 = arith.constant 0 : index
    %59 = vector.load %arg5[%c0_19, %c0_20] : memref<2x4xf32, #tpu.memory_space<vmem>>, vector<1x4xf32>
    %60 = vector.shape_cast %59 : vector<1x4xf32> to vector<4xf32>
    %61 = vector.shape_cast %60 : vector<4xf32> to vector<1x4xf32>
    %62 = vector.broadcast %61 : vector<1x4xf32> to vector<180x4xf32>
    %63 = arith.mulf %58, %62 : vector<180x4xf32>
    %c1 = arith.constant 1 : index
    %c0_21 = arith.constant 0 : index
    %64 = vector.load %arg5[%c1, %c0_21] : memref<2x4xf32, #tpu.memory_space<vmem>>, vector<1x4xf32>
    %65 = vector.shape_cast %64 : vector<1x4xf32> to vector<4xf32>
    %66 = vector.shape_cast %65 : vector<4xf32> to vector<1x4xf32>
    %67 = vector.broadcast %66 : vector<1x4xf32> to vector<180x4xf32>
    %68 = arith.addf %63, %67 : vector<180x4xf32>
    %cst_22 = arith.constant 0.000000e+00 : f32
    %69 = vector.broadcast %cst_22 : f32 to vector<180x4xf32>
    %70 = arith.maximumf %68, %69 : vector<180x4xf32>
    %71 = vector.shape_cast %70 : vector<180x4xf32> to vector<1x10x18x4xf32>
    %c8_i32 = arith.constant 8 : i32
    %72 = arith.muli %arg1, %c8_i32 : i32
    %73 = tpu.iota {dimensions = array<i32: 1>} : vector<1x10x18x1xi32>
    %c1_i32 = arith.constant 1 : i32
    %74 = arith.subi %72, %c1_i32 : i32
    %75 = vector.broadcast %74 : i32 to vector<1x10x18x1xi32>
    %76 = arith.addi %73, %75 : vector<1x10x18x1xi32>
    %77 = tpu.iota {dimensions = array<i32: 2>} : vector<1x10x18x1xi32>
    %c1_i32_23 = arith.constant 1 : i32
    %78 = vector.broadcast %c1_i32_23 : i32 to vector<1x10x18x1xi32>
    %79 = arith.subi %77, %78 : vector<1x10x18x1xi32>
    %c0_i32 = arith.constant 0 : i32
    %80 = vector.broadcast %c0_i32 : i32 to vector<1x10x18x1xi32>
    %81 = arith.cmpi sge, %76, %80 : vector<1x10x18x1xi32>
    %c16_i32 = arith.constant 16 : i32
    %82 = vector.broadcast %c16_i32 : i32 to vector<1x10x18x1xi32>
    %83 = arith.cmpi slt, %76, %82 : vector<1x10x18x1xi32>
    %84 = arith.andi %81, %83 : vector<1x10x18x1xi1>
    %c0_i32_24 = arith.constant 0 : i32
    %85 = vector.broadcast %c0_i32_24 : i32 to vector<1x10x18x1xi32>
    %86 = arith.cmpi sge, %79, %85 : vector<1x10x18x1xi32>
    %87 = arith.andi %84, %86 : vector<1x10x18x1xi1>
    %c16_i32_25 = arith.constant 16 : i32
    %88 = vector.broadcast %c16_i32_25 : i32 to vector<1x10x18x1xi32>
    %89 = arith.cmpi slt, %79, %88 : vector<1x10x18x1xi32>
    %90 = arith.andi %87, %89 : vector<1x10x18x1xi1>
    %cst_26 = arith.constant 0.000000e+00 : f32
    %91 = vector.shape_cast %90 : vector<1x10x18x1xi1> to vector<1x10x18x1xi1>
    %92 = vector.broadcast %91 : vector<1x10x18x1xi1> to vector<1x10x18x4xi1>
    %93 = vector.broadcast %cst_26 : f32 to vector<1x10x18x4xf32>
    %94 = arith.select %92, %71, %93 : vector<1x10x18x4xi1>, vector<1x10x18x4xf32>
    %c0_27 = arith.constant 0 : index
    %c0_28 = arith.constant 0 : index
    %c0_29 = arith.constant 0 : index
    %95 = vector.load %arg6[%c0_27, %c0_28, %c0_29] : memref<9x4x4xf32, #tpu.memory_space<vmem>>, vector<9x4x4xf32>
    %cst_30 = arith.constant 0.000000e+00 : f32
    %96 = vector.broadcast %cst_30 : f32 to vector<128x4xf32>
    %97 = vector.extract_strided_slice %94 {offsets = [0, 0, 0, 0], sizes = [1, 8, 16, 4], strides = [1, 1, 1, 1]} : vector<1x10x18x4xf32> to vector<1x8x16x4xf32>
    %98 = vector.shape_cast %97 : vector<1x8x16x4xf32> to vector<128x4xf32>
    %99 = vector.extract_strided_slice %95 {offsets = [0, 0, 0], sizes = [1, 4, 4], strides = [1, 1, 1]} : vector<9x4x4xf32> to vector<1x4x4xf32>
    %100 = vector.shape_cast %99 : vector<1x4x4xf32> to vector<4x4xf32>
    %cst_31 = arith.constant dense<0.000000e+00> : vector<128x4xf32>
    %101 = tpu.matmul %98, %100, %cst_31 {dimension_numbers = #tpu.dot_dimension_numbers<[1], [0], [0], [1], [0, 0, 1, 1], [], []>} : vector<128x4xf32>, vector<4x4xf32>, vector<128x4xf32> -> vector<128x4xf32>
    %102 = arith.addf %96, %101 : vector<128x4xf32>
    %103 = vector.extract_strided_slice %94 {offsets = [0, 0, 1, 0], sizes = [1, 8, 16, 4], strides = [1, 1, 1, 1]} : vector<1x10x18x4xf32> to vector<1x8x16x4xf32>
    %104 = vector.shape_cast %103 : vector<1x8x16x4xf32> to vector<128x4xf32>
    %105 = vector.extract_strided_slice %95 {offsets = [1, 0, 0], sizes = [1, 4, 4], strides = [1, 1, 1]} : vector<9x4x4xf32> to vector<1x4x4xf32>
    %106 = vector.shape_cast %105 : vector<1x4x4xf32> to vector<4x4xf32>
    %cst_32 = arith.constant dense<0.000000e+00> : vector<128x4xf32>
    %107 = tpu.matmul %104, %106, %cst_32 {dimension_numbers = #tpu.dot_dimension_numbers<[1], [0], [0], [1], [0, 0, 1, 1], [], []>} : vector<128x4xf32>, vector<4x4xf32>, vector<128x4xf32> -> vector<128x4xf32>
    %108 = arith.addf %102, %107 : vector<128x4xf32>
    %109 = vector.extract_strided_slice %94 {offsets = [0, 0, 2, 0], sizes = [1, 8, 16, 4], strides = [1, 1, 1, 1]} : vector<1x10x18x4xf32> to vector<1x8x16x4xf32>
    %110 = vector.shape_cast %109 : vector<1x8x16x4xf32> to vector<128x4xf32>
    %111 = vector.extract_strided_slice %95 {offsets = [2, 0, 0], sizes = [1, 4, 4], strides = [1, 1, 1]} : vector<9x4x4xf32> to vector<1x4x4xf32>
    %112 = vector.shape_cast %111 : vector<1x4x4xf32> to vector<4x4xf32>
    %cst_33 = arith.constant dense<0.000000e+00> : vector<128x4xf32>
    %113 = tpu.matmul %110, %112, %cst_33 {dimension_numbers = #tpu.dot_dimension_numbers<[1], [0], [0], [1], [0, 0, 1, 1], [], []>} : vector<128x4xf32>, vector<4x4xf32>, vector<128x4xf32> -> vector<128x4xf32>
    %114 = arith.addf %108, %113 : vector<128x4xf32>
    %115 = vector.extract_strided_slice %94 {offsets = [0, 1, 0, 0], sizes = [1, 8, 16, 4], strides = [1, 1, 1, 1]} : vector<1x10x18x4xf32> to vector<1x8x16x4xf32>
    %116 = vector.shape_cast %115 : vector<1x8x16x4xf32> to vector<128x4xf32>
    %117 = vector.extract_strided_slice %95 {offsets = [3, 0, 0], sizes = [1, 4, 4], strides = [1, 1, 1]} : vector<9x4x4xf32> to vector<1x4x4xf32>
    %118 = vector.shape_cast %117 : vector<1x4x4xf32> to vector<4x4xf32>
    %cst_34 = arith.constant dense<0.000000e+00> : vector<128x4xf32>
    %119 = tpu.matmul %116, %118, %cst_34 {dimension_numbers = #tpu.dot_dimension_numbers<[1], [0], [0], [1], [0, 0, 1, 1], [], []>} : vector<128x4xf32>, vector<4x4xf32>, vector<128x4xf32> -> vector<128x4xf32>
    %120 = arith.addf %114, %119 : vector<128x4xf32>
    %121 = vector.extract_strided_slice %94 {offsets = [0, 1, 1, 0], sizes = [1, 8, 16, 4], strides = [1, 1, 1, 1]} : vector<1x10x18x4xf32> to vector<1x8x16x4xf32>
    %122 = vector.shape_cast %121 : vector<1x8x16x4xf32> to vector<128x4xf32>
    %123 = vector.extract_strided_slice %95 {offsets = [4, 0, 0], sizes = [1, 4, 4], strides = [1, 1, 1]} : vector<9x4x4xf32> to vector<1x4x4xf32>
    %124 = vector.shape_cast %123 : vector<1x4x4xf32> to vector<4x4xf32>
    %cst_35 = arith.constant dense<0.000000e+00> : vector<128x4xf32>
    %125 = tpu.matmul %122, %124, %cst_35 {dimension_numbers = #tpu.dot_dimension_numbers<[1], [0], [0], [1], [0, 0, 1, 1], [], []>} : vector<128x4xf32>, vector<4x4xf32>, vector<128x4xf32> -> vector<128x4xf32>
    %126 = arith.addf %120, %125 : vector<128x4xf32>
    %127 = vector.extract_strided_slice %94 {offsets = [0, 1, 2, 0], sizes = [1, 8, 16, 4], strides = [1, 1, 1, 1]} : vector<1x10x18x4xf32> to vector<1x8x16x4xf32>
    %128 = vector.shape_cast %127 : vector<1x8x16x4xf32> to vector<128x4xf32>
    %129 = vector.extract_strided_slice %95 {offsets = [5, 0, 0], sizes = [1, 4, 4], strides = [1, 1, 1]} : vector<9x4x4xf32> to vector<1x4x4xf32>
    %130 = vector.shape_cast %129 : vector<1x4x4xf32> to vector<4x4xf32>
    %cst_36 = arith.constant dense<0.000000e+00> : vector<128x4xf32>
    %131 = tpu.matmul %128, %130, %cst_36 {dimension_numbers = #tpu.dot_dimension_numbers<[1], [0], [0], [1], [0, 0, 1, 1], [], []>} : vector<128x4xf32>, vector<4x4xf32>, vector<128x4xf32> -> vector<128x4xf32>
    %132 = arith.addf %126, %131 : vector<128x4xf32>
    %133 = vector.extract_strided_slice %94 {offsets = [0, 2, 0, 0], sizes = [1, 8, 16, 4], strides = [1, 1, 1, 1]} : vector<1x10x18x4xf32> to vector<1x8x16x4xf32>
    %134 = vector.shape_cast %133 : vector<1x8x16x4xf32> to vector<128x4xf32>
    %135 = vector.extract_strided_slice %95 {offsets = [6, 0, 0], sizes = [1, 4, 4], strides = [1, 1, 1]} : vector<9x4x4xf32> to vector<1x4x4xf32>
    %136 = vector.shape_cast %135 : vector<1x4x4xf32> to vector<4x4xf32>
    %cst_37 = arith.constant dense<0.000000e+00> : vector<128x4xf32>
    %137 = tpu.matmul %134, %136, %cst_37 {dimension_numbers = #tpu.dot_dimension_numbers<[1], [0], [0], [1], [0, 0, 1, 1], [], []>} : vector<128x4xf32>, vector<4x4xf32>, vector<128x4xf32> -> vector<128x4xf32>
    %138 = arith.addf %132, %137 : vector<128x4xf32>
    %139 = vector.extract_strided_slice %94 {offsets = [0, 2, 1, 0], sizes = [1, 8, 16, 4], strides = [1, 1, 1, 1]} : vector<1x10x18x4xf32> to vector<1x8x16x4xf32>
    %140 = vector.shape_cast %139 : vector<1x8x16x4xf32> to vector<128x4xf32>
    %141 = vector.extract_strided_slice %95 {offsets = [7, 0, 0], sizes = [1, 4, 4], strides = [1, 1, 1]} : vector<9x4x4xf32> to vector<1x4x4xf32>
    %142 = vector.shape_cast %141 : vector<1x4x4xf32> to vector<4x4xf32>
    %cst_38 = arith.constant dense<0.000000e+00> : vector<128x4xf32>
    %143 = tpu.matmul %140, %142, %cst_38 {dimension_numbers = #tpu.dot_dimension_numbers<[1], [0], [0], [1], [0, 0, 1, 1], [], []>} : vector<128x4xf32>, vector<4x4xf32>, vector<128x4xf32> -> vector<128x4xf32>
    %144 = arith.addf %138, %143 : vector<128x4xf32>
    %145 = vector.extract_strided_slice %94 {offsets = [0, 2, 2, 0], sizes = [1, 8, 16, 4], strides = [1, 1, 1, 1]} : vector<1x10x18x4xf32> to vector<1x8x16x4xf32>
    %146 = vector.shape_cast %145 : vector<1x8x16x4xf32> to vector<128x4xf32>
    %147 = vector.extract_strided_slice %95 {offsets = [8, 0, 0], sizes = [1, 4, 4], strides = [1, 1, 1]} : vector<9x4x4xf32> to vector<1x4x4xf32>
    %148 = vector.shape_cast %147 : vector<1x4x4xf32> to vector<4x4xf32>
    %cst_39 = arith.constant dense<0.000000e+00> : vector<128x4xf32>
    %149 = tpu.matmul %146, %148, %cst_39 {dimension_numbers = #tpu.dot_dimension_numbers<[1], [0], [0], [1], [0, 0, 1, 1], [], []>} : vector<128x4xf32>, vector<4x4xf32>, vector<128x4xf32> -> vector<128x4xf32>
    %150 = arith.addf %144, %149 : vector<128x4xf32>
    %c0_40 = arith.constant 0 : index
    %c0_41 = arith.constant 0 : index
    %151 = vector.load %arg7[%c0_40, %c0_41] : memref<2x4xf32, #tpu.memory_space<vmem>>, vector<1x4xf32>
    %152 = vector.shape_cast %151 : vector<1x4xf32> to vector<4xf32>
    %153 = vector.shape_cast %152 : vector<4xf32> to vector<1x4xf32>
    %154 = vector.broadcast %153 : vector<1x4xf32> to vector<128x4xf32>
    %155 = arith.mulf %150, %154 : vector<128x4xf32>
    %c1_42 = arith.constant 1 : index
    %c0_43 = arith.constant 0 : index
    %156 = vector.load %arg7[%c1_42, %c0_43] : memref<2x4xf32, #tpu.memory_space<vmem>>, vector<1x4xf32>
    %157 = vector.shape_cast %156 : vector<1x4xf32> to vector<4xf32>
    %158 = vector.shape_cast %157 : vector<4xf32> to vector<1x4xf32>
    %159 = vector.broadcast %158 : vector<1x4xf32> to vector<128x4xf32>
    %160 = arith.addf %155, %159 : vector<128x4xf32>
    %161 = vector.extract_strided_slice %2 {offsets = [0, 2, 2, 0], sizes = [1, 8, 16, 4], strides = [1, 1, 1, 1]} : vector<1x12x20x4xf32> to vector<1x8x16x4xf32>
    %162 = vector.shape_cast %161 : vector<1x8x16x4xf32> to vector<128x4xf32>
    %163 = arith.addf %160, %162 : vector<128x4xf32>
    %cst_44 = arith.constant 0.000000e+00 : f32
    %164 = vector.broadcast %cst_44 : f32 to vector<128x4xf32>
    %165 = arith.maximumf %163, %164 : vector<128x4xf32>
    %166 = vector.shape_cast %165 : vector<128x4xf32> to vector<1x8x16x4xf32>
    %c0_45 = arith.constant 0 : index
    %c0_46 = arith.constant 0 : index
    %c0_47 = arith.constant 0 : index
    %c0_48 = arith.constant 0 : index
    %167 = vector.load %arg8[%c0_45, %c0_46, %c0_47, %c0_48] : memref<1x8x16x4xf32, #tpu.memory_space<vmem>>, vector<1x8x16x4xf32>
    tpu.vector_store %arg8[%c0_45, %c0_46, %c0_47, %c0_48], %166 {strides = array<i32>} : memref<1x8x16x4xf32, #tpu.memory_space<vmem>>, vector<1x8x16x4xf32>,
    return
  }
  func.func @transform_0(%arg0: i32, %arg1: i32) -> (i32, i32, i32, i32) {
    %c0_i32 = arith.constant 0 : i32
    %c0_i32_0 = arith.constant 0 : i32
    %c0_i32_1 = arith.constant 0 : i32
    return %arg0, %arg1, %c0_i32, %c0_i32_0 : i32, i32, i32, i32
  }
  func.func @transform_1(%arg0: i32, %arg1: i32) -> (i32, i32, i32, i32) {
    %c1_i32 = arith.constant 1 : i32
    %0 = arith.addi %arg1, %c1_i32 : i32
    %c2_i32 = arith.constant 2 : i32
    %1 = arith.muli %0, %c2_i32 : i32
    %c0_i32 = arith.constant 0 : i32
    %c0_i32_0 = arith.constant 0 : i32
    %c0_i32_1 = arith.constant 0 : i32
    return %arg0, %1, %c0_i32, %c0_i32_0 : i32, i32, i32, i32
  }
  func.func @transform_2(%arg0: i32, %arg1: i32) -> (i32, i32, i32) {
    %c0_i32 = arith.constant 0 : i32
    %c0_i32_0 = arith.constant 0 : i32
    %c0_i32_1 = arith.constant 0 : i32
    %c0_i32_2 = arith.constant 0 : i32
    return %c0_i32, %c0_i32_0, %c0_i32_1 : i32, i32, i32
  }
  func.func @transform_3(%arg0: i32, %arg1: i32) -> (i32, i32) {
    %c0_i32 = arith.constant 0 : i32
    %c0_i32_0 = arith.constant 0 : i32
    %c0_i32_1 = arith.constant 0 : i32
    return %c0_i32, %c0_i32_0 : i32, i32
  }
  func.func @transform_4(%arg0: i32, %arg1: i32) -> (i32, i32, i32) {
    %c0_i32 = arith.constant 0 : i32
    %c0_i32_0 = arith.constant 0 : i32
    %c0_i32_1 = arith.constant 0 : i32
    %c0_i32_2 = arith.constant 0 : i32
    return %c0_i32, %c0_i32_0, %c0_i32_1 : i32, i32, i32
  }
  func.func @transform_5(%arg0: i32, %arg1: i32) -> (i32, i32) {
    %c0_i32 = arith.constant 0 : i32
    %c0_i32_0 = arith.constant 0 : i32
    %c0_i32_1 = arith.constant 0 : i32
    return %c0_i32, %c0_i32_0 : i32, i32
  }
  func.func @transform_6(%arg0: i32, %arg1: i32) -> (i32, i32, i32, i32) {
    %c0_i32 = arith.constant 0 : i32
    %c0_i32_0 = arith.constant 0 : i32
    %c0_i32_1 = arith.constant 0 : i32
    return %arg0, %arg1, %c0_i32, %c0_i32_0 : i32, i32, i32, i32
  }
}

</mosaic_0001>

<bundles_post_ra>
// kernel: basic_block_forward.1
= control target key start
LH: loop header
LB: loop body
LE: loop exit
PB: predicated region body
PF: predicated region fallthrough
CT: control target
= control target key end

     0   :  { %s10910_s21 = smov 0   ;;  %s10912_s22 = smov 0   ;;  %s15227_s0 = inlined_call_operand.vmem [shape: f32[2,20,20,4], index: 0, kind: input, shape index: {}, may-alias: {0,1}]   ;;  %s15228_s1 = inlined_call_operand.vmem [shape: f32[2,20,20,4], index: 1, kind: input, shape index: {}, may-alias: {0,1}]   ;;  %s15229_s2 = inlined_call_operand.vmem [shape: f32[9,4,4], index: 2, kind: input, shape index: {}]   ;;  %s15230_s3 = inlined_call_operand.vmem [shape: f32[2,4], index: 3, kind: input, shape index: {}]   ;;  %s15231_s4 = inlined_call_operand.vmem [shape: f32[9,4,4], index: 4, kind: input, shape index: {}]   ;;  %s15232_s5 = inlined_call_operand.vmem [shape: f32[2,4], index: 5, kind: input, shape index: {}]   ;;  %s15233_s6 = inlined_call_operand.vmem [shape: f32[2,16,16,4], index: 6, kind: output, shape index: {}]  }
   0x1   :  { %s10914_s23 = smov 0   ;;  %s10916_s24 = smov 0  }
   0x2   :  { %s10918_s25 = smov 0  }
   0x3 LB: > { %s25_s26 = sadd.s32 1, %s10862_s23  ;;  %s28_s27 = sadd.s32 1, %s10866_s24  ;;  %s10870_s25 = sphi %s10918_s25, %s16_s25   ;;  %s10866_s24 = sphi %s10916_s24, %s15999_s24   ;;  %s10862_s23 = sphi %s10914_s23, %s15998_s23   ;;  %s10858_s22 = sphi %s10912_s22, %s15997_s22   ;;  %s10854_s21 = sphi %s10910_s21, %s15996_s21  }
   0x4   : > { %p26_p0 = scmp.ge.s32.totalorder %s25_s26, 2  ;;  %p8580_p1 = scmp.ge.s32.totalorder %s10870_s25, 1 }
   0x5   : > { %p270_p2 = scmp.lt.s32.totalorder %s10870_s25, 5 }
   0x6   : > { %s16001_s26 = smov (%p26_p0, %s25_s26), 0  ;;  %s16003_s27 = smov (!%p26_p0, %s28_s27), %s10866_s24 }
   0x7   : > { %p271_p3 = pnand %p8580_p1, %p270_p2  ;;  %p30_p4 = scmp.ge.s32.totalorder %s16003_s27, 2 }
   0x9   : > { %s16005_s27 = smov (%p30_p4, %s16003_s27), 0  ;;  %274 = sbr.rel (%p271_p3) target bundleno = 1312 (0x520), region = 44 }
  0x10   : > { %v412_v0 = vld [vmem:[%s15229_s2 + $0x8] sm:$0xf]  ;;  %vm1585_vm0 = vcmask 1043456   ;;  %s10945_s30 = sshll.u32 %s10854_s21, 3  ;;  %v453_v1 = vlaneseq  ;;  %v15235_v2 = vmov 0.0   ;;  %vm10873_vm1 = vmmov 0  }
  0x11   : > { %9517 = vmatprep.subr.mxu0 %v15235_v2  ;;  %9519 = vmatprep.mubr.msk.f32.mxu0 %vm10873_vm1, %v15235_v2  ;;  %p333_p5 = scmp.lt.s32.totalorder %s10858_s22, 1  ;;  %p335_p6 = scmp.lt.s32.totalorder %s10945_s30, 19  ;;  %v10874_v3 = vmov 1983009808   ;;  %v411_v7 = vld [vmem:[%s15229_s2 + $0x4] sm:$0xf] }
  0x12   : > { %9518 = vmatpush3.msk.msra.mxu0 %vm1585_vm0, %v412_v0  ;;  %v451_v4 = vunpack.c.l.s4 %v10874_v3  ;;  %9375 = vmatprep.subr.mxu1 %v15235_v2  ;;  %v10961_v6 = vshrl.u32 %v453_v1, 7  ;;  %vm1538_vm2 = vcmask 31744   ;;  %v413_v57 = vld [vmem:[%s15229_s2 + $0xc] sm:$0xf]  ;;  %s9005_s19 = sadd.s32 8, %s10945_s30  ;;  %vm869_vm3 = vcmask 1040384  }
  0x13   : > { %9588 = vmatprep.subr.mxu0 %v15235_v2  ;;  %s16007_s22 = smov (!%p333_p5, %s10858_s22), 1  ;;  %9377 = vmatprep.mubr.msk.f32.mxu1 %vm10873_vm1, %v15235_v2  ;;  %p11159_p7 = scmp.lt.s32.totalorder %s9005_s19, 19  ;;  %vm870_vm4 = vcmask 1042434   ;;  %vm872_vm5 = vcmask 1044484   ;;  %vm874_vm6 = vcmask 1046534  }
  0x14   : > { %s336_s7 = scalar_select %p335_p6, %s10945_s30, 19  ;;  %v452_v5 = vunpack.c.0.s8 %v451_v4  ;;  %15508 = vst [vmem:[#allocation2_spill] sm:$0xff] %v10961_v6  ;;  %9376 = vmatpush3.msk.msra.mxu1 %vm1585_vm0, %v411_v7  ;;  %vm871_vm7 = vmor %vm869_vm3, %vm870_vm4 }
  0x15   : > { %s10724_s10 = smul.u32 60, %s16007_s22  ;;  %9446 = vmatprep.subr.mxu1 %v15235_v2  ;;  %s16009_s19 = smov (!%p11159_p7, %s9005_s19), 19  ;;  %vm11615_vm8 = vmor %vm871_vm7, %vm872_vm5  ;;  %vm6636_vm5 = vcmask 1046528  }
  0x16   : > { %s10723_s11 = smul.u32 3, %s336_s7  ;;  %v10972_v8 = vsub.s32 %v452_v5, %v10961_v6  ;;  %vm11658_vm9 = vmor %vm11615_vm8, %vm874_vm6  ;;  %s8836_s18 = sadd.s32 4294967295, %s10945_s30 }
  0x17   : > { %s10725_s29 = smul.u32 3, %s16009_s19  ;;  %p366_p8 = scmp.lt.s32.totalorder %s10945_s30, 15 }
  0x18   : > { %s339_s12 = sadd.s32 %s10724_s10, %s10723_s11 }
  0x19   : > { %s8582_s13 = sshll.u32 %s339_s12, 3  ;;  %s11323_s7 = sadd.s32 %s10725_s29, %s10724_s10 }
  0x1a   : > { %s10977_s16 = scalar_lea.vmem %s15227_s0, %s8582_s13  ;;  %s8585_s8 = sshll.u32 %s11323_s7, 3 }
  0x1b   : > { %v374_v9 = vld [vmem:[%s10977_s16] sm:$0xff]  ;;  %v375_v10 = vld [vmem:[%s10977_s16 + $0x8] sm:$0xff]  ;;  %v377_v11 = vld [vmem:[%s10977_s16 + $0x18] sm:$0xff]  ;;  %s11400_s11 = scalar_lea.vmem %s15228_s1, %s8585_s8  ;;  %s16011_s30 = smov (!%p366_p8, %s10945_s30), 15 }
  0x1c   : > { %v449_v12 = vcombine.high %v374_v9, %v374_v9  ;;  %v10983_v13 = vrot.slane %v374_v9, %v10972_v8  ;;  %v466_v14 = vcombine.high %v375_v10, %v375_v10  ;;  %v378_v15 = vld [vmem:[%s10977_s16 + $0x20] sm:$0xff]  ;;  %v380_v16 = vld [vmem:[%s10977_s16 + $0x30] sm:$0xff]  ;;  %v490_v17 = vcombine.high %v377_v11, %v377_v11  ;;  %v11049_v41 = vld.sshfl [vmem:[%s10977_s16 + $0x28] sm:$0x33 pattern:$0x76325410] }
  0x1d   : > { %v10988_v18 = vrot.slane %v377_v11, %v10972_v8  ;;  %v507_v19 = vcombine.high %v378_v15, %v378_v15  ;;  %v10991_v20 = vrot.slane %v378_v15, %v10972_v8  ;;  %v11001_v23 = vrot.slane %v375_v10, %v10972_v8  ;;  %v381_v42 = vld [vmem:[%s10977_s16 + $0x38] sm:$0xff]  ;;  %v11076_v55 = vld.sshfl [vmem:[%s10977_s16 + $0x40] sm:$0x33 pattern:$0x76325410]  ;;  %v383_v61 = vld [vmem:[%s10977_s16 + $0x48] sm:$0xff] }
  0x1e   : > { %15509 = vst [vmem:[#allocation3_spill] sm:$0xff] %v10983_v13  ;;  %v10994_v21 = vrot.slane %v449_v12, %v10972_v8  ;;  %v10998_v22 = vcombine.high %v10983_v13, %v10983_v13  ;;  %v531_v24 = vcombine.high %v380_v16, %v380_v16  ;;  %v11004_v25 = vrot.slane %v490_v17, %v10972_v8  ;;  %v384_v3 = vld [vmem:[%s10977_s16 + $0x50] sm:$0xff]  ;;  %s8587_s28 = sshll.u32 %s16011_s30, 1  ;;  %s8588_s29 = sshll.u32 %s16007_s22, 5 }
  0x1f   : > { %15510 = vst [vmem:[#allocation4_spill] sm:$0xff] %v10988_v18  ;;  %15511 = vst [vmem:[#allocation5_spill] sm:$0xff] %v10991_v20  ;;  %v11008_v26 = vcombine.high %v10988_v18, %v10988_v18  ;;  %v11011_v27 = vrot.slane %v507_v19, %v10972_v8  ;;  %v11015_v28 = vcombine.high %v10991_v20, %v10991_v20  ;;  %v390_v19 = vld [vmem:[%s10977_s16 + $0x80] sm:$0xff]  ;;  %s370_s9 = sadd.s32 %s8588_s29, %s8587_s28 }
  0x20   : > { %15512 = vst [vmem:[#allocation6_spill] sm:$0xff] %v10994_v21  ;;  %15513 = vst [vmem:[#allocation7_spill] sm:$0xff] %v10998_v22  ;;  %v11019_v29 = vcombine.high %v10994_v21, %v10994_v21  ;;  %v2380_v31 = vcombine.low %v10998_v22, %v10994_v21  ;;  %v11026_v32 = vrot.slane %v380_v16, %v10972_v8  ;;  %s8589_s22 = sshll.u32 %s370_s9, 3 }
  0x21   : > { %15514 = vst [vmem:[#allocation8_spill] sm:$0xff] %v11004_v25  ;;  %15515 = vst [vmem:[#allocation9_spill] sm:$0xff] %v11008_v26  ;;  %v11029_v33 = vrot.slane %v466_v14, %v10972_v8  ;;  %v11033_v34 = vcombine.high %v11004_v25, %v11004_v25  ;;  %v3058_v35 = vcombine.low %v10988_v18, %v11008_v26  ;;  %v15234_v43 = vrot.slane %v11008_v26, 7  ;;  %s15121_s14 = scalar_lea.vmem %s15233_s6, %s8589_s22 }
  0x22   : > { %15516 = vst [vmem:[#allocation10_spill] sm:$0xff] %v11011_v27  ;;  %15517 = vst [vmem:[#allocation11_spill] sm:$0xff] %v11015_v28  ;;  %v11039_v36 = vcombine.high %v11011_v27, %v11011_v27  ;;  %v2381_v38 = vcombine.low %v11019_v29, %v11001_v23  ;;  %v2388_v39 = vrot.slane %v2380_v31, %v10972_v8  ;;  %v11124_v14 = vld.sshfl [vmem:[%s10977_s16 + $0x58] sm:$0x33 pattern:$0x76325410] }
  0x23   : > { %15518 = vst [vmem:[#allocation12_spill] sm:$0xff] %v11019_v29  ;;  %15519 = vst [vmem:[#allocation13_spill] sm:$0xff] %v11026_v32  ;;  %v2431_v40 = vcombine.low %v10991_v20, %v11015_v28  ;;  %v2415_v44 = vcombine.low %v11004_v25, %v11033_v34  ;;  %v11056_v45 = vrot.slane %v3058_v35, %v10972_v8  ;;  %v11234_v37 = vrot.slane %v15234_v43, 2 }
  0x24   : > { %15520 = vst [vmem:[#allocation14_spill] sm:$0xff] %v11033_v34  ;;  %15521 = vst [vmem:[#allocation15_spill] sm:$0xff] %v11039_v36  ;;  %v2432_v46 = vcombine.low %v11011_v27, %v11039_v36  ;;  %v2395_v47 = vrot.slane %v2381_v38, %v10972_v8  ;;  %v11063_v49 = vrot.slane %v531_v24, %v10972_v8  ;;  %v386_v38 = vld [vmem:[%s10977_s16 + $0x60] sm:$0xff] }
  0x25   : > { %v2439_v48 = vrot.slane %v2431_v40, %v10972_v8  ;;  %v11067_v50 = vcombine.high %v11026_v32, %v11026_v32  ;;  %v11070_v51 = vrot.slane %v2415_v44, %v10972_v8  ;;  %v3067_v53 = vcombine.low %v11049_v41, %v11026_v32  ;;  %15530 = vst [vmem:[#allocation24_spill] sm:$0xff] %v11124_v14 }
  0x26   : > { %15522 = vst [vmem:[#allocation16_spill] sm:$0xff] %v11063_v49  ;;  %v2446_v52 = vrot.slane %v2432_v46, %v10972_v8  ;;  %v548_v54 = vcombine.high %v381_v42, %v381_v42  ;;  %v2396_v56 = vcombine.low %v2388_v39, %v2395_v47  ;;  %v11085_v59 = vcombine.high %v11063_v49, %v11063_v49 }
  0x27   : > { %15523 = vst [vmem:[#allocation17_spill] sm:$0xff] %v11067_v50  ;;  %15524 = vst [vmem:[#allocation18_spill] sm:$0xff] %v11070_v51  ;;  %v2449_v58 = vcombine.low %v11067_v50, %v11063_v49  ;;  %v11088_v60 = vrot.slane %v381_v42, %v10972_v8  ;;  %v3066_v62 = vcombine.low %v11056_v45, %v11070_v51  ;;  %v387_v45 = vld [vmem:[%s10977_s16 + $0x68] sm:$0xff] }
  0x28   : > { %v11093_v63 = vcombine.low %v2439_v48, %v2446_v52  ;;  %v11096_v0 = vrot.slane %v3067_v53, %v10972_v8  ;;  %v11099_v1 = vrot.slane %v548_v54, %v10972_v8  ;;  %9520 = vmatmul.mubr.msk.f32.vlgmr.msra.gmra.mrb[0].mxu0 %vm1538_vm2, %v2396_v56  ;;  %v11121_v11 = vrot.slane %v383_v61, %v10972_v8  ;;  %v414_v53 = vld [vmem:[%s15229_s2 + $0x10] sm:$0xf] }
  0x29   : > { %15525 = vst [vmem:[#allocation19_spill] sm:$0xff] %v11088_v60  ;;  %v11104_v4 = vrot.slane %v2449_v58, %v10972_v8  ;;  %v11108_v5 = vcombine.high %v11088_v60, %v11088_v60  ;;  %v2465_v7 = vcombine.low %v11085_v59, %v11088_v60  ;;  %9589 = vmatpush3.msk.msra.mxu0 %vm1585_vm0, %v413_v57 }
  0x2a   : > { %15526 = vst [vmem:[#allocation20_spill] sm:$0xff] %v11093_v63  ;;  %15527 = vst [vmem:[#allocation21_spill] sm:$0xff] %v11099_v1  ;;  %9590 = vmatprep.mubr.msk.f32.mxu0 %vm10873_vm1, %v15235_v2  ;;  %v11118_v10 = vcombine.high %v11099_v1, %v11099_v1  ;;  %v572_v12 = vcombine.high %v383_v61, %v383_v61  ;;  %9659 = vmatprep.subr.mxu0 %v15235_v2 }
  0x2b   : > { %15528 = vst [vmem:[#allocation22_spill] sm:$0xff] %v11104_v4  ;;  %15529 = vst [vmem:[#allocation23_spill] sm:$0xff] %v11121_v11  ;;  %v2466_v15 = vcombine.low %v11108_v5, %v11099_v1  ;;  %v11131_v16 = vrot.slane %v2465_v7, %v10972_v8  ;;  %v11134_v17 = vrot.slane %v384_v3, %v10972_v8 }
  0x2c   : > { %v11139_v24 = vcombine.high %v11121_v11, %v11121_v11  ;;  %v2482_v31 = vcombine.low %v11118_v10, %v11076_v55  ;;  %v11144_v35 = vrot.slane %v572_v12, %v10972_v8  ;;  %v589_v39 = vcombine.high %v384_v3, %v384_v3 }
  0x2d   : > { %15531 = vst [vmem:[#allocation25_spill] sm:$0xff] %v11131_v16  ;;  %v3075_v40 = vcombine.low %v11096_v0, %v11104_v4  ;;  %v11150_v42 = vrot.slane %v2466_v15, %v10972_v8  ;;  %v11154_v44 = vcombine.high %v11134_v17, %v11134_v17  ;;  %v11185_v57 = vrot.slane %v386_v38, %v10972_v8 }
  0x2e   : > { %v11164_v46 = vrot.slane %v2482_v31, %v10972_v8  ;;  %v3076_v47 = vcombine.low %v11121_v11, %v11139_v24  ;;  %v11170_v48 = vcombine.high %v11144_v35, %v11144_v35  ;;  %v11173_v52 = vrot.slane %v589_v39, %v10972_v8  ;;  %v11213_v39 = vld.sshfl [vmem:[%s10977_s16 + $0x70] sm:$0x33 pattern:$0x76325410] }
  0x2f   : > { %15532 = vst [vmem:[#allocation26_spill] sm:$0xff] %v11150_v42  ;;  %15533 = vst [vmem:[#allocation27_spill] sm:$0xff] %v11154_v44  ;;  %v11180_v54 = vcombine.low %v11131_v16, %v11150_v42  ;;  %v2500_v56 = vcombine.low %v11134_v17, %v11154_v44  ;;  %v613_v58 = vcombine.high %v386_v38, %v386_v38 }
  0x30   : > { %15535 = vst [vmem:[#allocation28_spill] sm:$0xff] %v11164_v46  ;;  %15536 = vst [vmem:[#allocation29_spill] sm:$0xff] %v11173_v52  ;;  %v11188_v61 = vrot.slane %v3076_v47, %v10972_v8  ;;  %v2499_v0 = vcombine.low %v11144_v35, %v11170_v48  ;;  %v11194_v3 = vcombine.high %v11173_v52, %v11173_v52  ;;  %9591 = vmatmul.mubr.msk.f32.vlgmr.msra.gmra.mrb[0].mxu0 %vm1538_vm2, %v3066_v62 }
  0x31   : > { %15537 = vst [vmem:[#allocation30_spill] sm:$0xff] %v11180_v54  ;;  %15538 = vst [vmem:[#allocation31_spill] sm:$0xff] %v11185_v57  ;;  %v11197_v7 = vrot.slane %v387_v45, %v10972_v8  ;;  %v11201_v12 = vrot.slane %v2500_v56, %v10972_v8  ;;  %v3085_v15 = vcombine.low %v11124_v14, %v11185_v57  ;;  %9660 = vmatpush3.msk.msra.mxu0 %vm1585_vm0, %v414_v53 }
  0x32   : > { %15539 = vst [vmem:[#allocation32_spill] sm:$0xff] %v11194_v3  ;;  %v11206_v31 = vrot.slane %v613_v58, %v10972_v8  ;;  %v11210_v38 = vcombine.high %v11185_v57, %v11185_v57  ;;  %15544 = vst [vmem:[#allocation37_spill] sm:$0xff] %v11213_v39  ;;  %9593 = vmatprep.mubr.msk.f32.mxu0 %vm10873_vm1, %v15235_v2  ;;  %v11227_v47 = vrot.slane %v2499_v0, %v10972_v8  ;;  %v389_v58 = vld [vmem:[%s10977_s16 + $0x78] sm:$0xff] }
  0x33   : > { %15540 = vst [vmem:[#allocation33_spill] sm:$0xff] %v11197_v7  ;;  %15541 = vst [vmem:[#allocation34_spill] sm:$0xff] %v11201_v12  ;;  %v2516_v56 = vcombine.low %v11173_v52, %v11194_v3  ;;  %v11237_v53 = vrot.slane %v3085_v15, %v10972_v8  ;;  %v630_v9 = vcombine.high %v387_v45, %v387_v45  ;;  %9730 = vmatprep.subr.mxu0 %v15235_v2  ;;  %v11511_v3 = vld.sshfl [vmem:[%s11400_s11 + $0x10] sm:$0x33 pattern:$0x76325410] }
  0x34   : > { %15542 = vst [vmem:[#allocation35_spill] sm:$0xff] %v11206_v31  ;;  %15543 = vst [vmem:[#allocation36_spill] sm:$0xff] %v11210_v38  ;;  %v11241_v30 = vcombine.high %v11206_v31, %v11206_v31  ;;  %v2533_v0 = vcombine.low %v11210_v38, %v11206_v31  ;;  %v11249_v62 = vcombine.low %v11227_v47, %v11201_v12  ;;  %9594 = vmatmul.mubr.msk.f32.gmra.mrb[2].mxu0 %vm1538_vm2, %v11093_v63 }
  0x35   : > { %15545 = vst [vmem:[#allocation38_spill] sm:$0xff] %v11227_v47  ;;  %v11252_v43 = vrot.slane %v2516_v56, %v10972_v8  ;;  %v11256_v15 = vcombine.high %v11197_v7, %v11197_v7  ;;  %v11266_v6 = vrot.slane %v630_v9, %v10972_v8  ;;  %v654_v12 = vcombine.high %v389_v58, %v389_v58  ;;  %v11269_v56 = vld.sshfl [vmem:[%s10977_s16 + $0x88] sm:$0x33 pattern:$0x76325410] }
  0x36   : > { %15546 = vst [vmem:[#allocation39_spill] sm:$0xff] %v11241_v30  ;;  %15547 = vst [vmem:[#allocation40_spill] sm:$0xff] %v11249_v62  ;;  %v2534_v45 = vcombine.low %v11241_v30, %v11197_v7  ;;  %v11263_v2 = vrot.slane %v2533_v0, %v10972_v8  ;;  %v15553_v47 = vmov 0.0   ;;  %v11277_v16 = vrot.slane %v389_v58, %v10972_v8  ;;  %v392_v58 = vld [vmem:[%s10977_s16 + $0x90] sm:$0xff]  ;;  %v393_v30 = vld [vmem:[%s10977_s16 + $0x98] sm:$0xff] }
  0x37   : > { %15548 = vst [vmem:[#allocation41_spill] sm:$0xff] %v11252_v43  ;;  %15549 = vst [vmem:[#allocation42_spill] sm:$0xff] %v11256_v15  ;;  %9596 = vmatprep.mubr.msk.f32.mxu0 %vm10873_vm1, %v15553_v47  ;;  %v671_v4 = vcombine.high %v390_v19, %v390_v19  ;;  %v11280_v0 = vrot.slane %v390_v19, %v10972_v8  ;;  %v11287_v63 = vcombine.high %v11266_v6, %v11266_v6 }
  0x38   : > { %15550 = vst [vmem:[#allocation43_spill] sm:$0xff] %v11263_v2  ;;  %15551 = vst [vmem:[#allocation44_spill] sm:$0xff] %v11266_v6  ;;  %v11283_v9 = vrot.slane %v2534_v45, %v10972_v8  ;;  %v2550_v51 = vcombine.low %v11256_v15, %v11266_v6  ;;  %v11292_v42 = vrot.slane %v654_v12, %v10972_v8  ;;  %9597 = vmatmul.mubr.msk.f32.gmra.mrb[4].mxu0 %vm1538_vm2, %v3075_v40 }
  0x39   : > { %15552 = vst [vmem:[#allocation45_spill] sm:$0xff] %v11269_v56  ;;  %15554 = vst [vmem:[#allocation46_spill] sm:$0xff] %v11277_v16  ;;  %v11297_v7 = vcombine.high %v11277_v16, %v11277_v16  ;;  %v11300_v19 = vrot.slane %v671_v4, %v10972_v8  ;;  %v11304_v45 = vcombine.high %v11280_v0, %v11280_v0  ;;  %9599 = vmatprep.mubr.msk.f32.mxu0 %vm10873_vm1, %v15553_v47 }
  0x3a   : > { %15555 = vst [vmem:[#allocation47_spill] sm:$0xff] %v11280_v0  ;;  %15556 = vst [vmem:[#allocation48_spill] sm:$0xff] %v11283_v9  ;;  %v11310_v6 = vcombine.low %v11263_v2, %v11283_v9  ;;  %v2551_v12 = vcombine.low %v11287_v63, %v11213_v39  ;;  %v11315_v15 = vrot.slane %v2550_v51, %v10972_v8 }
  0x3b   : > { %15557 = vst [vmem:[#allocation49_spill] sm:$0xff] %v11287_v63  ;;  %15558 = vst [vmem:[#allocation50_spill] sm:$0xff] %v11292_v42  ;;  %v11319_v4 = vcombine.high %v11292_v42, %v11292_v42  ;;  %v3094_v40 = vcombine.low %v11277_v16, %v11297_v7  ;;  %v11331_v9 = vcombine.high %v11300_v19, %v11300_v19 }
  0x3c   : > { %15559 = vst [vmem:[#allocation51_spill] sm:$0xff] %v11297_v7  ;;  %15560 = vst [vmem:[#allocation52_spill] sm:$0xff] %v11300_v19  ;;  %v2584_v51 = vcombine.low %v11280_v0, %v11304_v45  ;;  %v695_v2 = vcombine.high %v392_v58, %v392_v58  ;;  %v11336_v63 = vrot.slane %v2551_v12, %v10972_v8  ;;  %v11355_v0 = vld.sshfl [vmem:[%s10977_s16 + $0xa0] sm:$0x33 pattern:$0x76325410]  ;;  %9600 = vmatmul.mubr.msk.f32.gmra.mrb[6].mxu0 %vm1538_vm2, %v11180_v54 }
  0x3d   : > { %15561 = vst [vmem:[#allocation53_spill] sm:$0xff] %v11304_v45  ;;  %15562 = vst [vmem:[#allocation54_spill] sm:$0xff] %v11310_v6  ;;  %v2568_v39 = vcombine.low %v11292_v42, %v11319_v4  ;;  %v11341_v31 = vrot.slane %v392_v58, %v10972_v8  ;;  %v712_v38 = vcombine.high %v393_v30, %v393_v30  ;;  %9602 = vmatprep.mubr.msk.f32.mxu0 %vm10873_vm1, %v15553_v47  ;;  %v395_v54 = vld [vmem:[%s10977_s16 + $0xa8] sm:$0xff] }
  0x3e   : > { %15563 = vst [vmem:[#allocation55_spill] sm:$0xff] %v11315_v15  ;;  %15564 = vst [vmem:[#allocation56_spill] sm:$0xff] %v11319_v4  ;;  %v11344_v7 = vrot.slane %v3094_v40, %v10972_v8  ;;  %v2585_v16 = vcombine.low %v11300_v19, %v11331_v9  ;;  %v11349_v45 = vrot.slane %v2584_v51, %v10972_v8  ;;  %v396_v19 = vld [vmem:[%s10977_s16 + $0xb0] sm:$0xff] }
  0x3f   : > { %15565 = vst [vmem:[#allocation57_spill] sm:$0xff] %v11331_v9  ;;  %15566 = vst [vmem:[#allocation58_spill] sm:$0xff] %v11336_v63  ;;  %v11352_v12 = vrot.slane %v695_v2, %v10972_v8  ;;  %v11362_v58 = vcombine.low %v11315_v15, %v11336_v63  ;;  %v11365_v40 = vrot.slane %v2568_v39, %v10972_v8 }
  0x40   : > { %15567 = vst [vmem:[#allocation59_spill] sm:$0xff] %v11341_v31  ;;  %15568 = vst [vmem:[#allocation60_spill] sm:$0xff] %v11349_v45  ;;  %v11369_v51 = vcombine.high %v11341_v31, %v11341_v31  ;;  %v3103_v2 = vcombine.low %v11269_v56, %v11341_v31  ;;  %v11376_v9 = vrot.slane %v2585_v16, %v10972_v8 }
  0x41   : > { %15569 = vst [vmem:[#allocation61_spill] sm:$0xff] %v11352_v12  ;;  %15570 = vst [vmem:[#allocation62_spill] sm:$0xff] %v11355_v0  ;;  %v11380_v63 = vcombine.high %v11352_v12, %v11352_v12  ;;  %v11383_v39 = vrot.slane %v393_v30, %v10972_v8  ;;  %v11386_v15 = vrot.slane %v712_v38, %v10972_v8 }
  0x42   : > { %15571 = vst [vmem:[#allocation63_spill] sm:$0xff] %v11362_v58  ;;  %15572 = vst [vmem:[#allocation64_spill] sm:$0xff] %v11365_v40  ;;  %v2602_v16 = vcombine.low %v11369_v51, %v11352_v12  ;;  %v11395_v56 = vrot.slane %v3103_v2, %v10972_v8  ;;  %v11404_v30 = vcombine.low %v11349_v45, %v11376_v9 }
  0x43   : > { %15573 = vst [vmem:[#allocation65_spill] sm:$0xff] %v11369_v51  ;;  %15574 = vst [vmem:[#allocation66_spill] sm:$0xff] %v11376_v9  ;;  %v11408_v38 = vcombine.high %v11383_v39, %v11383_v39  ;;  %v2618_v31 = vcombine.low %v11380_v63, %v11383_v39  ;;  %v11414_v2 = vcombine.high %v11386_v15, %v11386_v15 }
  0x44   : > { %15575 = vst [vmem:[#allocation67_spill] sm:$0xff] %v11380_v63  ;;  %15576 = vst [vmem:[#allocation68_spill] sm:$0xff] %v11383_v39  ;;  %v15581_v12 = vcombine.low %v11164_v46, %v11188_v61  ;;  %v11421_v51 = vrot.slane %v2602_v16, %v10972_v8  ;;  %v11424_v9 = vrot.slane %v395_v54, %v10972_v8  ;;  %v11430_v39 = vld.sshfl [vmem:[%s10977_s16 + $0xb8] sm:$0x33 pattern:$0x76325410] }
  0x45   : > { %15577 = vst [vmem:[#allocation69_spill] sm:$0xff] %v11386_v15  ;;  %15578 = vst [vmem:[#allocation70_spill] sm:$0xff] %v11404_v30  ;;  %v736_v45 = vcombine.high %v395_v54, %v395_v54  ;;  %v11427_v4 = vrot.slane %v396_v19, %v10972_v8  ;;  %v2619_v61 = vcombine.low %v11408_v38, %v11386_v15  ;;  %v398_v46 = vld [vmem:[%s11400_s11] sm:$0xff]  ;;  %v399_v15 = vld [vmem:[%s11400_s11 + $0x8] sm:$0xff] }
  0x46   : > { %15579 = vst [vmem:[#allocation71_spill] sm:$0xff] %v11408_v38  ;;  %15580 = vst [vmem:[#allocation72_spill] sm:$0xff] %v11414_v2  ;;  %9603 = vmatmul.mubr.msk.f32.gmra.mrb[8].mxu0 %vm1538_vm2, %v15581_v12  ;;  %v11437_v12 = vrot.slane %v2618_v31, %v10972_v8  ;;  %v2635_v16 = vcombine.low %v11414_v2, %v11355_v0  ;;  %v753_v63 = vcombine.high %v396_v19, %v396_v19 }
  0x47   : > { %15582 = vst [vmem:[#allocation73_spill] sm:$0xff] %v11421_v51  ;;  %15583 = vst [vmem:[#allocation74_spill] sm:$0xff] %v11424_v9  ;;  %9605 = vmatprep.mubr.msk.f32.mxu0 %vm10873_vm1, %v15553_v47  ;;  %v11446_v42 = vcombine.high %v11424_v9, %v11424_v9  ;;  %v11449_v57 = vrot.slane %v736_v45, %v10972_v8  ;;  %v11453_v31 = vcombine.high %v11427_v4, %v11427_v4 }
  0x48   : > { %15584 = vst [vmem:[#allocation75_spill] sm:$0xff] %v11427_v4  ;;  %15585 = vst [vmem:[#allocation76_spill] sm:$0xff] %v11430_v39  ;;  %v11457_v0 = vrot.slane %v2619_v61, %v10972_v8  ;;  %v11460_v19 = vrot.slane %v2635_v16, %v10972_v8  ;;  %v11463_v54 = vrot.slane %v753_v63, %v10972_v8 }
  0x49   : > { %15586 = vst [vmem:[#allocation77_spill] sm:$0xff] %v11437_v12  ;;  %15587 = vst [vmem:[#allocation78_spill] sm:$0xff] %v11446_v42  ;;  %v3112_v45 = vcombine.low %v11424_v9, %v11446_v42  ;;  %v11471_v2 = vcombine.high %v11449_v57, %v11449_v57  ;;  %v2653_v61 = vcombine.low %v11427_v4, %v11453_v31 }
  0x4a   : > { %15588 = vst [vmem:[#allocation79_spill] sm:$0xff] %v11449_v57  ;;  %15589 = vst [vmem:[#allocation80_spill] sm:$0xff] %v11453_v31  ;;  %9606 = vmatmul.mubr.msk.f32.gmra.mrb[10].mxu0 %vm1538_vm2, %v11249_v62  ;;  %v11476_v16 = vrot.slane %v398_v46, %v10972_v8  ;;  %v11482_v63 = vcombine.low %v11437_v12, %v11457_v0  ;;  %v11486_v62 = vcombine.high %v11463_v54, %v11463_v54 }
  0x4b   : > { %15590 = vst [vmem:[#allocation81_spill] sm:$0xff] %v11457_v0  ;;  %15591 = vst [vmem:[#allocation82_spill] sm:$0xff] %v11460_v19  ;;  %9608 = vmatprep.mubr.msk.f32.mxu0 %vm10873_vm1, %v15553_v47  ;;  %v777_v42 = vcombine.high %v398_v46, %v398_v46  ;;  %v11489_v9 = vrot.slane %v399_v15, %v10972_v8  ;;  %v11492_v31 = vrot.slane %v3112_v45, %v10972_v8 }
  0x4c   : > { %15592 = vst [vmem:[#allocation83_spill] sm:$0xff] %v11463_v54  ;;  %15593 = vst [vmem:[#allocation84_spill] sm:$0xff] %v11471_v2  ;;  %v2652_v4 = vcombine.low %v11449_v57, %v11471_v2  ;;  %v11497_v38 = vrot.slane %v2653_v61, %v10972_v8  ;;  %v3121_v0 = vcombine.low %v11430_v39, %v11476_v16  ;;  %v401_v57 = vld [vmem:[%s11400_s11 + $0x18] sm:$0xff] }
  0x4d   : > { %15594 = vst [vmem:[#allocation85_spill] sm:$0xff] %v11476_v16  ;;  %15595 = vst [vmem:[#allocation86_spill] sm:$0xff] %v11482_v63  ;;  %v2669_v12 = vcombine.low %v11463_v54, %v11486_v62  ;;  %v11504_v46 = vrot.slane %v777_v42, %v10972_v8  ;;  %v11508_v45 = vcombine.high %v11476_v16, %v11476_v16  ;;  %v402_v42 = vld [vmem:[%s11400_s11 + $0x20] sm:$0xff] }
  0x4e   : > { %15596 = vst [vmem:[#allocation87_spill] sm:$0xff] %v11486_v62  ;;  %15597 = vst [vmem:[#allocation88_spill] sm:$0xff] %v11489_v9  ;;  %v794_v2 = vcombine.high %v399_v15, %v399_v15  ;;  %v15602_v61 = vcombine.low %v11252_v43, %v11237_v53  ;;  %v11521_v62 = vrot.slane %v2652_v4, %v10972_v8  ;;  %v11553_v54 = vld.sshfl [vmem:[%s11400_s11 + $0x28] sm:$0x33 pattern:$0x76325410] }
  0x4f   : > { %15598 = vst [vmem:[#allocation89_spill] sm:$0xff] %v11497_v38  ;;  %15599 = vst [vmem:[#allocation90_spill] sm:$0xff] %v11504_v46  ;;  %v11524_v16 = vrot.slane %v3121_v0, %v10972_v8  ;;  %v11528_v15 = vcombine.high %v11489_v9, %v11489_v9  ;;  %v11533_v53 = vrot.slane %v2669_v12, %v10972_v8 }
  0x50   : > { %15600 = vst [vmem:[#allocation91_spill] sm:$0xff] %v11508_v45  ;;  %15601 = vst [vmem:[#allocation92_spill] sm:$0xff] %v11511_v3  ;;  %9609 = vmatmul.mubr.msk.f32.gmra.mrb[12].mxu0 %vm1538_vm2, %v15602_v61  ;;  %v11537_v61 = vcombine.high %v11504_v46, %v11504_v46  ;;  %v2686_v4 = vcombine.low %v11508_v45, %v11504_v46  ;;  %v11542_v0 = vrot.slane %v794_v2, %v10972_v8 }
  0x51   : > { %15603 = vst [vmem:[#allocation93_spill] sm:$0xff] %v11521_v62  ;;  %15604 = vst [vmem:[#allocation94_spill] sm:$0xff] %v11528_v15  ;;  %9611 = vmatprep.mubr.msk.f32.mxu0 %vm10873_vm1, %v15553_v47  ;;  %v11547_v43 = vcombine.low %v11521_v62, %v11497_v38  ;;  %v818_v39 = vcombine.high %v401_v57, %v401_v57  ;;  %v11550_v12 = vrot.slane %v401_v57, %v10972_v8  ;;  %v404_v62 = vld [vmem:[%s11400_s11 + $0x30] sm:$0xff] }
  0x52   : > { %15605 = vst [vmem:[#allocation95_spill] sm:$0xff] %v11533_v53  ;;  %15606 = vst [vmem:[#allocation96_spill] sm:$0xff] %v11537_v61  ;;  %v2687_v46 = vcombine.low %v11537_v61, %v11489_v9  ;;  %v11560_v2 = vrot.slane %v2686_v4, %v10972_v8  ;;  %v11564_v45 = vcombine.high %v11542_v0, %v11542_v0 }
  0x53   : > { %15607 = vst [vmem:[#allocation97_spill] sm:$0xff] %v11542_v0  ;;  %15608 = vst [vmem:[#allocation98_spill] sm:$0xff] %v11547_v43  ;;  %v2703_v57 = vcombine.low %v11528_v15, %v11542_v0  ;;  %v11571_v38 = vrot.slane %v818_v39, %v10972_v8  ;;  %v11575_v14 = vcombine.high %v11550_v12, %v11550_v12 }
  0x54   : > { %15609 = vst [vmem:[#allocation99_spill] sm:$0xff] %v11550_v12  ;;  %15610 = vst [vmem:[#allocation100_spill] sm:$0xff] %v11553_v54  ;;  %9612 = vmatmul.mubr.msk.f32.gmra.mrb[14].mxu0 %vm1538_vm2, %v11310_v6  ;;  %v835_v4 = vcombine.high %v402_v42, %v402_v42  ;;  %v11583_v6 = vrot.slane %v2687_v46, %v10972_v8  ;;  %v2704_v0 = vcombine.low %v11564_v45, %v11511_v3  ;;  %v405_v46 = vld [vmem:[%s11400_s11 + $0x38] sm:$0xff] }
  0x55   : > { %15611 = vst [vmem:[#allocation101_spill] sm:$0xff] %v11560_v2  ;;  %15612 = vst [vmem:[#allocation102_spill] sm:$0xff] %v11564_v45  ;;  %9614 = vmatprep.mubr.msk.f32.mxu0 %vm10873_vm1, %v15553_v47  ;;  %v11588_v39 = vrot.slane %v402_v42, %v10972_v8  ;;  %v11591_v15 = vrot.slane %v2703_v57, %v10972_v8  ;;  %v11595_v9 = vcombine.high %v11571_v38, %v11571_v38 }
  0x56   : > { %15613 = vst [vmem:[#allocation103_spill] sm:$0xff] %v11571_v38  ;;  %15614 = vst [vmem:[#allocation104_spill] sm:$0xff] %v11575_v14  ;;  %v3130_v61 = vcombine.low %v11550_v12, %v11575_v14  ;;  %v11600_v52 = vrot.slane %v835_v4, %v10972_v8  ;;  %v11605_v45 = vcombine.low %v11560_v2, %v11583_v6 }
  0x57   : > { %15615 = vst [vmem:[#allocation105_spill] sm:$0xff] %v11583_v6  ;;  %15616 = vst [vmem:[#allocation106_spill] sm:$0xff] %v11588_v39  ;;  %v11608_v42 = vrot.slane %v2704_v0, %v10972_v8  ;;  %v11612_v57 = vcombine.high %v11588_v39, %v11588_v39  ;;  %v3017_v3 = vcombine.high %v404_v62, %v404_v62 }
  0x58   : > { %15617 = vst [vmem:[#allocation107_spill] sm:$0xff] %v11591_v15  ;;  %15618 = vst [vmem:[#allocation108_spill] sm:$0xff] %v11595_v9  ;;  %9615 = vmatmul.mubr.msk.f32.gmra.mrb[16].mxu0 %vm1538_vm2, %v11362_v58  ;;  %v2721_v4 = vcombine.low %v11571_v38, %v11595_v9  ;;  %v11624_v6 = vrot.slane %v3130_v61, %v10972_v8  ;;  %v11628_v0 = vcombine.high %v11600_v52, %v11600_v52 }
  0x59   : > { %15619 = vst [vmem:[#allocation109_spill] sm:$0xff] %v11600_v52  ;;  %15620 = vst [vmem:[#allocation110_spill] sm:$0xff] %v11605_v45  ;;  %v11631_v2 = vrot.slane %v404_v62, %v10972_v8  ;;  %9617 = vmatprep.mubr.msk.f32.mxu0 %vm10873_vm1, %v15553_v47  ;;  %v11637_v14 = vcombine.low %v11591_v15, %v11608_v42  ;;  %v2737_v58 = vcombine.low %v11588_v39, %v11612_v57 }
  0x5a   : > { %15621 = vst [vmem:[#allocation111_spill] sm:$0xff] %v11608_v42  ;;  %15622 = vst [vmem:[#allocation112_spill] sm:$0xff] %v11612_v57  ;;  %v11642_v61 = vrot.slane %v3017_v3, %v10972_v8  ;;  %v3034_v9 = vcombine.high %v405_v46, %v405_v46  ;;  %v11645_v38 = vrot.slane %v2721_v4, %v10972_v8  ;;  %v15631_v3 = vmov 0 }
  0x5b   : > { %15625 = vst [vmem:[#allocation113_spill] sm:$0xff] %v11628_v0  ;;  %15626 = vst [vmem:[#allocation114_spill] sm:$0xff] %v11631_v2  ;;  %v2738_v62 = vcombine.low %v11600_v52, %v11628_v0  ;;  %v11651_v12 = vcombine.high %v11631_v2, %v11631_v2  ;;  %v3139_v42 = vcombine.low %v11553_v54, %v11631_v2  ;;  %v15632_v3 = vsel %vm11658_vm9, 4294967295, %v15631_v3 }
  0x5c   : > { %15627 = vst [vmem:[#allocation115_spill] sm:$0xff] %v11637_v14  ;;  %15628 = vst [vmem:[#allocation116_spill] sm:$0xff] %v11642_v61  ;;  %v11663_v4 = vrot.slane %v2737_v58, %v10972_v8  ;;  %v11667_v15 = vcombine.high %v11642_v61, %v11642_v61  ;;  %v11670_v0 = vrot.slane %v405_v46, %v10972_v8  ;;  %v8679_v57 = vld.sshfl [vmem:[%s11400_s11 + $0x40] sm:$0x33 pattern:$0x76325410] }
  0x5d   : > { %15629 = vst [vmem:[#allocation117_spill] sm:$0xff] %v11645_v38  ;;  %15630 = vst [vmem:[#allocation118_spill] sm:$0xff] %v11651_v12  ;;  %v11673_v52 = vrot.slane %v3034_v9, %v10972_v8  ;;  %v15638_v44 = vcombine.low %v11344_v7, %v11365_v40  ;;  %v11682_v58 = vrot.slane %v2738_v62, %v10972_v8 }
  0x5e   : > { %15633 = vst [vmem:[#allocation119_spill] sm:$0xff] %v15632_v3  ;;  %15634 = vst [vmem:[#allocation120_spill] sm:$0xff] %v11663_v4  ;;  %v3140_v54 = vcombine.low %v11651_v12, %v11642_v61  ;;  %v11687_v46 = vrot.slane %v3139_v42, %v10972_v8  ;;  %v11694_v7 = vcombine.high %v11670_v0, %v11670_v0  ;;  %v15643_v42 = vrot.slane %v10988_v18, 9 }
  0x5f   : > { %15635 = vst [vmem:[#allocation121_spill] sm:$0xff] %v11667_v15  ;;  %15636 = vst [vmem:[#allocation122_spill] sm:$0xff] %v11670_v0  ;;  %9618 = vmatmul.mubr.msk.f32.gmra.mrb[18].mxu0 %vm1538_vm2, %v15638_v44  ;;  %v3156_v9 = vcombine.low %v11667_v15, %v11670_v0  ;;  %v11700_v62 = vcombine.high %v11673_v52, %v11673_v52  ;;  %v15642_v44 = vrot.slane %v11008_v26, 7  ;;  %v909_v0 = vrot.slane %v11004_v25, 7 }
  0x60   : > { %15637 = vst [vmem:[#allocation123_spill] sm:$0xff] %v11673_v52  ;;  %15639 = vst [vmem:[#allocation124_spill] sm:$0xff] %v11682_v58  ;;  %9620 = vmatprep.mubr.msk.f32.mxu0 %vm10873_vm1, %v15553_v47  ;;  %v11712_v40 = vcombine.low %v11663_v4, %v11682_v58  ;;  %v11715_v61 = vrot.slane %v3140_v54, %v10972_v8  ;;  %v15646_v15 = vrot.slane %v11033_v34, 7  ;;  %v918_v4 = vrot.slane %v11015_v28, 7 }
  0x61   : > { %15640 = vst [vmem:[#allocation125_spill] sm:$0xff] %v11694_v7  ;;  %15641 = vst [vmem:[#allocation126_spill] sm:$0xff] %v11700_v62  ;;  %v11708_v2 = vsel %vm11658_vm9, %v15643_v42, %v15642_v44  ;;  %v3157_v26 = vcombine.low %v11694_v7, %v11673_v52  ;;  %v11723_v18 = vrot.slane %v3156_v9, %v10972_v8  ;;  %v915_v42 = vrot.slane %v10991_v20, 7 }
  0x62   : > { %15644 = vst [vmem:[#allocation127_spill] sm:$0xff] %v11712_v40  ;;  %15645 = vst [vmem:[#allocation128_spill] sm:$0xff] %v11715_v61  ;;  %v914_v12 = vrot.slane %v15646_v15, 2  ;;  %v3173_v44 = vcombine.low %v11700_v62, %v8679_v57  ;;  %v11734_v15 = vsel %vm11658_vm9, %v11234_v37, %v909_v0  ;;  %v911_v58 = vrot.slane %v909_v0, 2 }
  0x63   : > { %15647 = vst [vmem:[#allocation129_spill] sm:$0xff] %v11723_v18  ;;  %9621 = vmatmul.mubr.msk.f32.gmra.mrb[20].mxu0 %vm1538_vm2, %v11404_v30  ;;  %v11740_v57 = vrot.slane %v3157_v26, %v10972_v8  ;;  %v3440_v37 = vcombine.low %v11708_v2, %v11734_v15  ;;  %v15650_v0 = vrot.slane %v11033_v34, 7  ;;  %v917_v28 = vrot.slane %v915_v42, 2 }
  0x64   : > { %9623 = vmatprep.mubr.msk.f32.mxu0 %vm10873_vm1, %v15553_v47  ;;  %v11743_v9 = vrot.slane %v3173_v44, %v10972_v8  ;;  %v11747_v54 = vsel %vm11658_vm9, %v914_v12, %v915_v42  ;;  %v920_v20 = vrot.slane %v918_v4, 2  ;;  %v921_v26 = vrot.slane %v11011_v27, 7  ;;  %v13011_v3 = vld.sshfl [vmem:[%s10977_s16 + $0x28] sm:$0x33 pattern:$0x76325410] }
  0x65   : > { %15648 = vst [vmem:[#allocation130_spill] sm:$0xff] %v11740_v57  ;;  %v11755_v30 = vsel %vm11658_vm9, %v911_v58, %v15650_v0  ;;  %v11763_v25 = vrot.slane %v3440_v37, %v10972_v8  ;;  %v924_v62 = vrot.slane %v11039_v36, 7  ;;  %v15651_v34 = vcombine.low %v11395_v56, %v11421_v51 }
  0x66   : > { %15649 = vst [vmem:[#allocation131_spill] sm:$0xff] %v11743_v9  ;;  %v3441_v12 = vcombine.low %v11755_v30, %v11747_v54  ;;  %v11772_v58 = vsel %vm11658_vm9, %v917_v28, %v918_v4  ;;  %v11776_v42 = vsel %vm11658_vm9, %v920_v20, %v921_v26  ;;  %v923_v0 = vrot.slane %v921_v26, 2 }
  0x67   : > { %9624 = vmatmul.mubr.msk.f32.gmra.mrb[22].mxu0 %vm1538_vm2, %v15651_v34  ;;  %v927_v44 = vrot.slane %v11049_v41, 7  ;;  %v926_v56 = vrot.slane %v924_v62, 2  ;;  %v3457_v34 = vcombine.low %v11772_v58, %v11776_v42  ;;  %v8592_v28 = vrot.slane %v10983_v13, 9 }
  0x68   : > { %9626 = vmatprep.mubr.msk.f32.mxu0 %vm10873_vm1, %v15553_v47  ;;  %v11782_v37 = vrot.slane %v3441_v12, %v10972_v8  ;;  %v11789_v4 = vsel %vm11658_vm9, %v923_v0, %v924_v62  ;;  %v878_v20 = vrot.slane %v10998_v22, 7  ;;  %v881_v26 = vrot.slane %v10994_v21, 7 }
  0x69   : > { %v884_v51 = vrot.slane %v11019_v29, 7  ;;  %v11798_v36 = vsel %vm11658_vm9, %v926_v56, %v927_v44  ;;  %v11801_v27 = vrot.slane %v3457_v34, %v10972_v8  ;;  %v887_v13 = vrot.slane %v11001_v23, 7 }
  0x6a   : > { %v3458_v62 = vcombine.low %v11789_v4, %v11798_v36  ;;  %v879_v0 = vsel %vm11658_vm9, %v8592_v28, %v878_v20  ;;  %v880_v29 = vrot.slane %v878_v20, 2  ;;  %v883_v12 = vrot.slane %v881_v26, 2 }
  0x6b   : > { %9627 = vmatmul.mubr.msk.f32.gmra.mrb[24].mxu0 %vm1538_vm2, %v11482_v63  ;;  %v886_v56 = vrot.slane %v884_v51, 2  ;;  %v11814_v34 = vcombine.high %v11049_v41, %v11049_v41  ;;  %v929_v21 = vrot.slane %v927_v44, 2  ;;  %v8594_v22 = vrot.slane %v11026_v32, 9 }
  0x6c   : > { %9629 = vmatprep.mubr.msk.f32.mxu0 %vm10873_vm1, %v15553_v47  ;;  %v11818_v63 = vrot.slane %v3458_v62, %v10972_v8  ;;  %v882_v52 = vsel %vm11658_vm9, %v880_v29, %v881_v26  ;;  %v885_v28 = vsel %vm11658_vm9, %v883_v12, %v884_v51  ;;  %v934_v20 = vrot.slane %v11067_v50, 7 }
  0x6d   : > { %15652 = vst [vmem:[#allocation132_spill] sm:$0xff] %v11814_v34  ;;  %v888_v7 = vsel %vm11658_vm9, %v886_v56, %v887_v13  ;;  %v1156_v39 = vcombine.low %v879_v0, %v882_v52  ;;  %v930_v41 = vrot.slane %v11814_v34, 7  ;;  %v937_v44 = vrot.slane %v11063_v49, 7 }
  0x6e   : > { %v15653_v62 = vcombine.low %v11460_v19, %v11492_v31  ;;  %v1157_v51 = vcombine.low %v885_v28, %v888_v7  ;;  %v11837_v26 = vsel %vm11658_vm9, %v8594_v22, %v934_v20  ;;  %v936_v12 = vrot.slane %v934_v20, 2  ;;  %v8590_v28 = vld.sshfl [vmem:[%s10977_s16 + $0x10] sm:$0x33 pattern:$0x76325410] }
  0x6f   : > { %v1164_v52 = vrot.slane %v1156_v39, %v10972_v8  ;;  %v11844_v0 = vsel %vm11658_vm9, %v929_v21, %v930_v41  ;;  %v939_v31 = vrot.slane %v937_v44, 2  ;;  %v940_v56 = vrot.slane %v11085_v59, 7 }
  0x70   : > { %9630 = vmatmul.mubr.msk.f32.gmra.mrb[26].mxu0 %vm1538_vm2, %v15653_v62  ;;  %v1171_v62 = vrot.slane %v1157_v51, %v10972_v8  ;;  %v11850_v7 = vsel %vm11658_vm9, %v936_v12, %v937_v44  ;;  %v3474_v22 = vcombine.low %v11844_v0, %v11837_v26  ;;  %v11857_v39 = vcombine.high %v11001_v23, %v11001_v23 }
  0x71   : > { %9632 = vmatprep.mubr.msk.f32.mxu0 %vm10873_vm1, %v15553_v47  ;;  %v11861_v21 = vsel %vm11658_vm9, %v939_v31, %v940_v56  ;;  %v11865_v20 = vcombine.high %v11029_v33, %v11029_v33  ;;  %v889_v41 = vrot.slane %v887_v13, 2  ;;  %v893_v44 = vrot.slane %v11029_v33, 7 }
  0x72   : > { %v1172_v51 = vcombine.low %v1164_v52, %v1171_v62  ;;  %v3475_v12 = vcombine.low %v11850_v7, %v11861_v21  ;;  %v11873_v29 = vrot.slane %v3474_v22, %v10972_v8  ;;  %v890_v31 = vrot.slane %v11857_v39, 7 }
  0x73   : > { %v895_v19 = vrot.slane %v893_v44, 2  ;;  %v896_v13 = vrot.slane %v11865_v20, 7  ;;  %v899_v34 = vrot.slane %v8590_v28, 7  ;;  %v942_v50 = vrot.slane %v940_v56, 2 }
  0x74   : > { %9633 = vmatmul.mubr.msk.f32.gmra.mrb[28].mxu0 %vm1538_vm2, %v11547_v43  ;;  %9378 = vmatmul.mubr.msk.f32.vlgmr.msra.gmra.mrb[0].mxu1 %vm1538_vm2, %v1172_v51  ;;  %v11881_v52 = vrot.slane %v3475_v12, %v10972_v8  ;;  %v891_v62 = vsel %vm11658_vm9, %v889_v41, %v890_v31  ;;  %v892_v22 = vrot.slane %v890_v31, 2  ;;  %v943_v43 = vrot.slane %v11088_v60, 7 }
  0x75   : > { %9635 = vmatprep.mubr.msk.f32.mxu0 %vm10873_vm1, %v15553_v47  ;;  %9380 = vmatprep.mubr.msk.f32.mxu1 %vm10873_vm1, %v15553_v47  ;;  %v897_v32 = vsel %vm11658_vm9, %v895_v19, %v896_v13  ;;  %v898_v49 = vrot.slane %v896_v13, 2  ;;  %v946_v56 = vrot.slane %v11108_v5, 7  ;;  %v949_v51 = vrot.slane %v11099_v1, 7  ;;  %v410_v13 = vld [vmem:[%s15229_s2] sm:$0xf] }
  0x76   : > { %v15654_v12 = vcombine.low %v11533_v53, %v11524_v16  ;;  %v894_v31 = vsel %vm11658_vm9, %v892_v22, %v893_v44  ;;  %v11902_v60 = vsel %vm11658_vm9, %v942_v50, %v943_v43  ;;  %v945_v19 = vrot.slane %v943_v43, 2  ;;  %9447 = vmatpush3.msk.msra.mxu1 %vm1585_vm0, %v410_v13 }
  0x77   : > { %v900_v16 = vsel %vm11658_vm9, %v898_v49, %v899_v34  ;;  %v948_v41 = vrot.slane %v946_v56, 2  ;;  %v951_v53 = vrot.slane %v949_v51, 2  ;;  %v952_v43 = vrot.slane %v11118_v10, 7  ;;  %10248 = vmatprep.subr.mxu1 %v15553_v47 }
  0x78   : > { %9636 = vmatmul.mubr.msk.f32.gmra.mrb[30].mxu0 %vm1538_vm2, %v15654_v12  ;;  %v1173_v12 = vcombine.low %v891_v62, %v894_v31  ;;  %v1174_v44 = vcombine.low %v897_v32, %v900_v16  ;;  %v11914_v50 = vsel %vm11658_vm9, %v945_v19, %v946_v56  ;;  %v859_v22 = vcombine.high %v8590_v28, %v8590_v28 }
  0x79   : > { %9638 = vmatprep.mubr.msk.f32.mxu0 %vm10873_vm1, %v15553_v47  ;;  %v11921_v49 = vsel %vm11658_vm9, %v948_v41, %v949_v51  ;;  %v3491_v62 = vcombine.low %v11902_v60, %v11914_v50  ;;  %v901_v31 = vrot.slane %v899_v34, 2  ;;  %v11930_v28 = vsel %vm11658_vm9, %v951_v53, %v952_v43 }
  0x7a   : > { %v1181_v1 = vrot.slane %v1173_v12, %v10972_v8  ;;  %v1188_v32 = vrot.slane %v1174_v44, %v10972_v8  ;;  %v902_v56 = vrot.slane %v859_v22, 7  ;;  %v1191_v19 = vcombine.low %v11734_v15, %v11755_v30 }
  0x7b   : > { %v3492_v51 = vcombine.low %v11921_v49, %v11930_v28  ;;  %v11939_v34 = vrot.slane %v3491_v62, %v10972_v8  ;;  %v11943_v41 = vcombine.high %v11076_v55, %v11076_v55  ;;  %v954_v13 = vrot.slane %v952_v43, 2 }
  0x7c   : > { %9639 = vmatmul.mubr.msk.f32.gmra.mrb[32].mxu0 %vm1538_vm2, %v11605_v45  ;;  %v1189_v53 = vcombine.low %v1181_v1, %v1188_v32  ;;  %v903_v16 = vsel %vm11658_vm9, %v901_v31, %v902_v56  ;;  %v1205_v30 = vrot.slane %v1191_v19, %v10972_v8  ;;  %v955_v15 = vrot.slane %v11076_v55, 7 }
  0x7d   : > { %9641 = vmatprep.mubr.msk.f32.mxu0 %vm10873_vm1, %v15553_v47  ;;  %v11950_v12 = vrot.slane %v3492_v51, %v10972_v8  ;;  %v1190_v44 = vcombine.low %v903_v16, %v11708_v2  ;;  %v958_v22 = vrot.slane %v11943_v41, 7  ;;  %v8595_v62 = vrot.slane %v11121_v11, 9 }
  0x7e   : > { %9381 = vmatmul.mubr.msk.f32.gmra.mrb[2].mxu1 %vm1538_vm2, %v1189_v53  ;;  %v11960_v1 = vsel %vm11658_vm9, %v954_v13, %v955_v15  ;;  %v957_v43 = vrot.slane %v955_v15, 2  ;;  %v962_v31 = vrot.slane %v11139_v24, 7  ;;  %v965_v32 = vrot.slane %v11144_v35, 7 }
  0x7f   : > { %9383 = vmatprep.mubr.msk.f32.mxu1 %vm10873_vm1, %v15553_v47  ;;  %v1198_v56 = vrot.slane %v1190_v44, %v10972_v8  ;;  %v1207_v19 = vcombine.low %v11747_v54, %v11772_v58  ;;  %v968_v51 = vrot.slane %v11170_v48, 7  ;;  %v1208_v15 = vcombine.low %v11776_v42, %v11789_v4 }
  0x80   : > { %9642 = vmatmul.mubr.msk.f32.gmra.mrb[34].mxu0 %vm1538_vm2, %v11637_v14  ;;  %v11976_v13 = vsel %vm11658_vm9, %v957_v43, %v958_v22  ;;  %v11980_v53 = vsel %vm11658_vm9, %v8595_v62, %v962_v31  ;;  %v964_v16 = vrot.slane %v962_v31, 2  ;;  %v967_v58 = vrot.slane %v965_v32, 2 }
  0x81   : > { %9644 = vmatprep.mubr.msk.f32.mxu0 %vm10873_vm1, %v15553_v47  ;;  %v1206_v2 = vcombine.low %v1198_v56, %v1205_v30  ;;  %v3508_v44 = vcombine.low %v11960_v1, %v11976_v13  ;;  %v1215_v54 = vrot.slane %v1207_v19, %v10972_v8  ;;  %v15655_v14 = vcombine.low %v11624_v6, %v11645_v38  ;;  %v15656_v30 = vld [vmem:[#allocation27_spill] sm:$0xff]  ;;  %v15657_v19 = vld [vmem:[#allocation29_spill] sm:$0xff] }
  0x82   : > { %v11993_v22 = vsel %vm11658_vm9, %v964_v16, %v965_v32  ;;  %v1222_v62 = vrot.slane %v1208_v15, %v10972_v8  ;;  %v970_v43 = vrot.slane %v968_v51, 2  ;;  %v971_v42 = vrot.slane %v11134_v17, 7  ;;  %v15662_v38 = vld [vmem:[#allocation31_spill] sm:$0xff] }
  0x83   : > { %9384 = vmatmul.mubr.msk.f32.gmra.mrb[4].mxu1 %vm1538_vm2, %v1206_v2  ;;  %v3509_v4 = vcombine.low %v11980_v53, %v11993_v22  ;;  %v12003_v6 = vrot.slane %v3508_v44, %v10972_v8  ;;  %v974_v31 = vrot.slane %v15656_v30, 7  ;;  %v977_v16 = vrot.slane %v15657_v19, 7 }
  0x84   : > { %9645 = vmatmul.mubr.msk.f32.gmra.mrb[36].mxu0 %vm1538_vm2, %v15655_v14  ;;  %v12007_v14 = vsel %vm11658_vm9, %v967_v58, %v968_v51  ;;  %9386 = vmatprep.mubr.msk.f32.mxu1 %vm10873_vm1, %v15553_v47  ;;  %v1223_v32 = vcombine.low %v1215_v54, %v1222_v62  ;;  %v12014_v56 = vsel %vm11658_vm9, %v970_v43, %v971_v42  ;;  %v973_v2 = vrot.slane %v971_v42, 2  ;;  %v15658_v43 = vld [vmem:[#allocation24_spill] sm:$0xff] }
  0x85   : > { %9647 = vmatprep.mubr.msk.f32.mxu0 %vm10873_vm1, %v15553_v47  ;;  %v12018_v15 = vrot.slane %v3509_v4, %v10972_v8  ;;  %v976_v44 = vrot.slane %v974_v31, 2  ;;  %v3525_v51 = vcombine.low %v12007_v14, %v12014_v56  ;;  %v1224_v58 = vcombine.low %v11798_v36, %v11844_v0 }
  0x86   : > { %v12028_v54 = vsel %vm11658_vm9, %v973_v2, %v974_v31  ;;  %v1225_v62 = vcombine.low %v11837_v26, %v11850_v7  ;;  %v12034_v42 = vcombine.high %v15658_v43, %v15658_v43  ;;  %v979_v4 = vrot.slane %v977_v16, 2  ;;  %v15660_v26 = vld [vmem:[#allocation32_spill] sm:$0xff] }
  0x87   : > { %9387 = vmatmul.mubr.msk.f32.gmra.mrb[6].mxu1 %vm1538_vm2, %v1223_v32  ;;  %v12043_v0 = vsel %vm11658_vm9, %v976_v44, %v977_v16  ;;  %v12046_v31 = vrot.slane %v3525_v51, %v10972_v8  ;;  %v980_v7 = vrot.slane %v15660_v26, 7  ;;  %v983_v32 = vrot.slane %v15658_v43, 7  ;;  %v15664_v43 = vld [vmem:[#allocation36_spill] sm:$0xff] }
  0x88   : > { %9648 = vmatmul.mubr.msk.f32.gmra.mrb[38].mxu0 %vm1538_vm2, %v11712_v40  ;;  %15659 = vst [vmem:[#allocation29_spill] sm:$0xff] %v12034_v42  ;;  %v3526_v2 = vcombine.low %v12028_v54, %v12043_v0  ;;  %9389 = vmatprep.mubr.msk.f32.mxu1 %vm10873_vm1, %v15553_v47  ;;  %v1232_v40 = vrot.slane %v1224_v58, %v10972_v8  ;;  %v986_v51 = vrot.slane %v12034_v42, 7  ;;  %v8596_v45 = vrot.slane %v15662_v38, 9  ;;  %v15670_v42 = vld [vmem:[#allocation33_spill] sm:$0xff] }
  0x89   : > { %9650 = vmatprep.mubr.msk.f32.mxu0 %vm10873_vm1, %v15553_v47  ;;  %v12055_v36 = vrot.slane %v1225_v62, %v10972_v8  ;;  %v12060_v16 = vsel %vm11658_vm9, %v979_v4, %v980_v7  ;;  %v982_v44 = vrot.slane %v980_v7, 2  ;;  %v15663_v11 = vcombine.low %v11687_v46, %v11715_v61  ;;  %v15665_v7 = vld [vmem:[#allocation35_spill] sm:$0xff] }
  0x8a   : > { %v12069_v58 = vrot.slane %v3526_v2, %v10972_v8  ;;  %v985_v26 = vrot.slane %v983_v32, 2  ;;  %v990_v30 = vrot.slane %v15664_v43, 7  ;;  %v1241_v46 = vcombine.low %v11861_v21, %v11902_v60 }
  0x8b   : > { %15661 = vst [vmem:[#allocation133_spill] sm:$0xff] %v12055_v36  ;;  %v1240_v62 = vcombine.low %v1232_v40, %v12055_v36  ;;  %v12077_v4 = vsel %vm11658_vm9, %v982_v44, %v983_v32  ;;  %v993_v2 = vrot.slane %v15665_v7, 7  ;;  %v999_v43 = vrot.slane %v15670_v42, 7  ;;  %v15671_v42 = vld [vmem:[#allocation42_spill] sm:$0xff] }
  0x8c   : > { %9651 = vmatmul.mubr.msk.f32.gmra.mrb[40].mxu0 %vm1538_vm2, %v15663_v11  ;;  %v1242_v11 = vcombine.low %v11914_v50, %v11921_v49  ;;  %v12089_v61 = vsel %vm11658_vm9, %v985_v26, %v986_v51  ;;  %v12093_v32 = vsel %vm11658_vm9, %v8596_v45, %v990_v30  ;;  %v3542_v60 = vcombine.low %v12060_v16, %v12077_v4 }
  0x8d   : > { %9653 = vmatprep.mubr.msk.f32.mxu0 %vm10873_vm1, %v15553_v47  ;;  %9390 = vmatmul.mubr.msk.f32.gmra.mrb[8].mxu1 %vm1538_vm2, %v1240_v62  ;;  %v3543_v21 = vcombine.low %v12089_v61, %v12093_v32  ;;  %v12102_v50 = vrot.slane %v1241_v46, %v10972_v8  ;;  %v992_v26 = vrot.slane %v990_v30, 2  ;;  %v15668_v45 = vcombine.low %v11723_v18, %v11740_v57  ;;  %v15669_v62 = vld [vmem:[#allocation39_spill] sm:$0xff] }
  0x8e   : > { %9392 = vmatprep.mubr.msk.f32.mxu1 %vm10873_vm1, %v15553_v47  ;;  %v12105_v49 = vrot.slane %v1242_v11, %v10972_v8  ;;  %v12112_v44 = vrot.slane %v3542_v60, %v10972_v8  ;;  %v995_v51 = vrot.slane %v993_v2, 2  ;;  %v996_v40 = vrot.slane %v15669_v62, 7 }
  0x8f   : > { %15666 = vst [vmem:[#allocation31_spill] sm:$0xff] %v12102_v50  ;;  %v12119_v46 = vrot.slane %v3543_v21, %v10972_v8  ;;  %v12127_v60 = vsel %vm11658_vm9, %v992_v26, %v993_v2  ;;  %v1001_v18 = vrot.slane %v999_v43, 2  ;;  %v1002_v7 = vrot.slane %v15671_v42, 7 }
  0x90   : > { %15667 = vst [vmem:[#allocation134_spill] sm:$0xff] %v12105_v49  ;;  %9654 = vmatmul.mubr.msk.f32.gmra.mrb[42].mxu0 %vm1538_vm2, %v15668_v45  ;;  %v1257_v30 = vcombine.low %v12102_v50, %v12105_v49  ;;  %v12131_v45 = vsel %vm11658_vm9, %v995_v51, %v996_v40  ;;  %v998_v57 = vrot.slane %v996_v40, 2  ;;  %v1258_v2 = vcombine.low %v11930_v28, %v11960_v1 }
  0x91   : > { %9656 = vmatprep.mubr.msk.f32.mxu0 %vm10873_vm1, %v15553_v47  ;;  %v3559_v11 = vcombine.low %v12127_v60, %v12131_v45  ;;  %v1259_v26 = vcombine.low %v11976_v13, %v11980_v53  ;;  %v12151_v51 = vsel %vm11658_vm9, %v1001_v18, %v1002_v7  ;;  %v1004_v1 = vrot.slane %v1002_v7, 2  ;;  %v15676_v7 = vld [vmem:[#allocation44_spill] sm:$0xff] }
  0x92   : > { %9393 = vmatmul.mubr.msk.f32.gmra.mrb[10].mxu1 %vm1538_vm2, %v1257_v30  ;;  %v12147_v40 = vsel %vm11658_vm9, %v998_v57, %v999_v43  ;;  %v15672_v30 = vld [vmem:[#allocation37_spill] sm:$0xff]  ;;  %v12167_v18 = vrot.slane %v1258_v2, %v10972_v8  ;;  %v415_v43 = vld [vmem:[%s15229_s2 + $0x14] sm:$0xf]  ;;  %v1005_v21 = vrot.slane %v15676_v7, 7  ;;  %v1276_v42 = vcombine.low %v12014_v56, %v12028_v54 }
  0x93   : > { %9395 = vmatprep.mubr.msk.f32.mxu1 %vm10873_vm1, %v15553_v47  ;;  %v12157_v28 = vcombine.high %v15672_v30, %v15672_v30  ;;  %v3560_v13 = vcombine.low %v12147_v40, %v12151_v51  ;;  %v12164_v57 = vrot.slane %v3559_v11, %v10972_v8  ;;  %v12170_v53 = vrot.slane %v1259_v26, %v10972_v8 }
  0x94   : > { %9657 = vmatmul.mubr.msk.f32.gmra.mrb[44].mxu0 %vm1538_vm2, %v11743_v9  ;;  %15674 = vst [vmem:[#allocation135_spill] sm:$0xff] %v12167_v18  ;;  %v15677_v9 = vld [vmem:[#allocation49_spill] sm:$0xff]  ;;  %v1011_v50 = vrot.slane %v15672_v30, 7  ;;  %v1275_v26 = vcombine.low %v11993_v22, %v12007_v14  ;;  %v15678_v7 = vcombine.low %v11763_v25, %v11782_v37  ;;  %v12194_v30 = vsel %vm11658_vm9, %v1004_v1, %v1005_v21  ;;  %v15681_v37 = vld [vmem:[#allocation46_spill] sm:$0xff] }
  0x95   : > { %15673 = vst [vmem:[#allocation39_spill] sm:$0xff] %v12157_v28  ;;  %9661 = vmatprep.mubr.msk.f32.mxu0 %vm10873_vm1, %v15553_v47  ;;  %15675 = vst [vmem:[#allocation136_spill] sm:$0xff] %v12170_v53  ;;  %v1008_v49 = vrot.slane %v15677_v9, 7  ;;  %v1014_v36 = vrot.slane %v12157_v28, 7  ;;  %v12180_v11 = vrot.slane %v3560_v13, %v10972_v8  ;;  %v1274_v2 = vcombine.low %v12167_v18, %v12170_v53  ;;  %v15686_v53 = vld [vmem:[#allocation47_spill] sm:$0xff] }
  0x96   : > { %v1007_v13 = vrot.slane %v1005_v21, 2  ;;  %v1013_v9 = vrot.slane %v1011_v50, 2  ;;  %v12202_v14 = vrot.slane %v1275_v26, %v10972_v8  ;;  %v12205_v25 = vrot.slane %v1276_v42, %v10972_v8 }
  0x97   : > { %v1010_v28 = vrot.slane %v1008_v49, 2  ;;  %v8597_v56 = vrot.slane %v15681_v37, 9  ;;  %9396 = vmatmul.mubr.msk.f32.gmra.mrb[12].mxu1 %vm1538_vm2, %v1274_v2  ;;  %v1027_v18 = vrot.slane %v15686_v53, 7 }
  0x98   : > { %9662 = vmatmul.mubr.msk.f32.vlgmr.msra.gmra.mrb[0].mxu0 %vm1538_vm2, %v15678_v7  ;;  %15679 = vst [vmem:[#allocation137_spill] sm:$0xff] %v12202_v14  ;;  %15680 = vst [vmem:[#allocation138_spill] sm:$0xff] %v12205_v25  ;;  %v12211_v54 = vsel %vm11658_vm9, %v1007_v13, %v1008_v49  ;;  %v12219_v1 = vsel %vm11658_vm9, %v1013_v9, %v1014_v36  ;;  %9398 = vmatprep.mubr.msk.f32.mxu1 %vm10873_vm1, %v15553_v47  ;;  %v15683_v49 = vld [vmem:[#allocation50_spill] sm:$0xff]  ;;  %v15685_v13 = vld [vmem:[#allocation56_spill] sm:$0xff] }
  0x99   : > { %9731 = vmatpush3.msk.msra.mxu0 %vm1585_vm0, %v415_v43  ;;  %9664 = vmatprep.mubr.msk.f32.mxu0 %vm10873_vm1, %v15553_v47  ;;  %v12215_v21 = vsel %vm11658_vm9, %v1010_v28, %v1011_v50  ;;  %v15682_v43 = vld [vmem:[#allocation51_spill] sm:$0xff]  ;;  %v3576_v42 = vcombine.low %v12194_v30, %v12211_v54  ;;  %v1291_v50 = vcombine.low %v12202_v14, %v12205_v25  ;;  %v1021_v28 = vrot.slane %v15683_v49, 7 }
  0x9a   : > { %v1018_v7 = vrot.slane %v15682_v43, 7  ;;  %9801 = vmatprep.subr.mxu0 %v15553_v47  ;;  %v3577_v2 = vcombine.low %v12215_v21, %v12219_v1  ;;  %v15684_v9 = vcombine.low %v11801_v27, %v11818_v63  ;;  %v1024_v22 = vrot.slane %v15685_v13, 7 }
  0x9b   : > { %v12245_v25 = vrot.slane %v3576_v42, %v10972_v8  ;;  %v1023_v27 = vrot.slane %v1021_v28, 2  ;;  %v1292_v63 = vcombine.low %v12043_v0, %v12060_v16  ;;  %9399 = vmatmul.mubr.msk.f32.gmra.mrb[14].mxu1 %vm1538_vm2, %v1291_v50  ;;  %v1029_v37 = vrot.slane %v1027_v18, 2  ;;  %v15690_v50 = vld [vmem:[#allocation53_spill] sm:$0xff] }
  0x9c   : > { %9665 = vmatmul.mubr.msk.f32.gmra.mrb[2].mxu0 %vm1538_vm2, %v15684_v9  ;;  %v12238_v36 = vsel %vm11658_vm9, %v8597_v56, %v1018_v7  ;;  %v1020_v26 = vrot.slane %v1018_v7, 2  ;;  %v12248_v14 = vrot.slane %v3577_v2, %v10972_v8  ;;  %v1026_v7 = vrot.slane %v1024_v22, 2  ;;  %9401 = vmatprep.mubr.msk.f32.mxu1 %vm10873_vm1, %v15553_v47 }
  0x9d   : > { %9667 = vmatprep.mubr.msk.f32.mxu0 %vm10873_vm1, %v15553_v47  ;;  %v1293_v9 = vcombine.low %v12077_v4, %v12089_v61  ;;  %v12263_v2 = vsel %vm11658_vm9, %v1023_v27, %v1024_v22  ;;  %v12270_v16 = vrot.slane %v1292_v63, %v10972_v8  ;;  %v15688_v61 = vcombine.low %v11873_v29, %v11881_v52  ;;  %v15692_v52 = vld [vmem:[#allocation57_spill] sm:$0xff] }
  0x9e   : > { %v12255_v56 = vsel %vm11658_vm9, %v1020_v26, %v1021_v28  ;;  %v12278_v4 = vsel %vm11658_vm9, %v1026_v7, %v1027_v18  ;;  %v1030_v28 = vrot.slane %v15690_v50, 7  ;;  %v15691_v26 = vld [vmem:[#allocation52_spill] sm:$0xff]  ;;  %v15693_v18 = vld [vmem:[#allocation45_spill] sm:$0xff]  ;;  %v15694_v43 = vcombine.low %v11939_v34, %v11950_v12 }
  0x9f   : > { %v3593_v0 = vcombine.low %v12238_v36, %v12255_v56  ;;  %15687 = vst [vmem:[#allocation50_spill] sm:$0xff] %v12270_v16  ;;  %v12281_v22 = vrot.slane %v1293_v9, %v10972_v8  ;;  %v1033_v27 = vrot.slane %v15691_v26, 7  ;;  %v3594_v63 = vcombine.low %v12263_v2, %v12278_v4 }
  0xa0   : > { %9668 = vmatmul.mubr.msk.f32.gmra.mrb[4].mxu0 %vm1538_vm2, %v15688_v61  ;;  %v1036_v61 = vrot.slane %v15692_v52, 7  ;;  %v1039_v7 = vrot.slane %v15693_v18, 7  ;;  %v12298_v42 = vsel %vm11658_vm9, %v1029_v37, %v1030_v28  ;;  %v1032_v50 = vrot.slane %v1030_v28, 2 }
  0xa1   : > { %15689 = vst [vmem:[#allocation139_spill] sm:$0xff] %v12281_v22  ;;  %9670 = vmatprep.mubr.msk.f32.mxu0 %vm10873_vm1, %v15553_v47  ;;  %v12290_v29 = vrot.slane %v3593_v0, %v10972_v8  ;;  %v1308_v9 = vcombine.low %v12270_v16, %v12281_v22  ;;  %v1035_v26 = vrot.slane %v1033_v27, 2  ;;  %v12301_v13 = vrot.slane %v3594_v63, %v10972_v8  ;;  %v15701_v22 = vld [vmem:[#allocation67_spill] sm:$0xff] }
  0xa2   : > { %v1038_v53 = vrot.slane %v1036_v61, 2  ;;  %v1309_v0 = vcombine.low %v12093_v32, %v12127_v60  ;;  %v1310_v52 = vcombine.low %v12131_v45, %v12147_v40  ;;  %v12314_v37 = vsel %vm11658_vm9, %v1032_v50, %v1033_v27  ;;  %v15696_v40 = vld [vmem:[#allocation59_spill] sm:$0xff] }
  0xa3   : > { %9402 = vmatmul.mubr.msk.f32.gmra.mrb[16].mxu1 %vm1538_vm2, %v1308_v9  ;;  %v12318_v28 = vsel %vm11658_vm9, %v1035_v26, %v1036_v61  ;;  %v12322_v32 = vcombine.high %v15693_v18, %v15693_v18  ;;  %v1041_v60 = vrot.slane %v1039_v7, 2  ;;  %v3610_v45 = vcombine.low %v12298_v42, %v12314_v37  ;;  %v15699_v61 = vld [vmem:[#allocation65_spill] sm:$0xff] }
  0xa4   : > { %9671 = vmatmul.mubr.msk.f32.gmra.mrb[6].mxu0 %vm1538_vm2, %v15694_v43  ;;  %v12330_v12 = vsel %vm11658_vm9, %v1038_v53, %v1039_v7  ;;  %9404 = vmatprep.mubr.msk.f32.mxu1 %vm10873_vm1, %v15553_v47  ;;  %v8598_v43 = vrot.slane %v15696_v40, 9  ;;  %v12340_v26 = vrot.slane %v1309_v0, %v10972_v8  ;;  %v12343_v27 = vrot.slane %v1310_v52, %v10972_v8  ;;  %v15700_v9 = vld [vmem:[#allocation61_spill] sm:$0xff] }
  0xa5   : > { %15695 = vst [vmem:[#allocation45_spill] sm:$0xff] %v12322_v32  ;;  %9673 = vmatprep.mubr.msk.f32.mxu0 %vm10873_vm1, %v15553_v47  ;;  %v3611_v50 = vcombine.low %v12318_v28, %v12330_v12  ;;  %v1042_v53 = vrot.slane %v12322_v32, 7  ;;  %v12347_v63 = vrot.slane %v3610_v45, %v10972_v8  ;;  %v1046_v7 = vrot.slane %v15699_v61, 7 }
  0xa6   : > { %15697 = vst [vmem:[#allocation140_spill] sm:$0xff] %v12340_v26  ;;  %15698 = vst [vmem:[#allocation141_spill] sm:$0xff] %v12343_v27  ;;  %v1049_v34 = vrot.slane %v15700_v9, 7  ;;  %v1052_v16 = vrot.slane %v15701_v22, 7  ;;  %v15702_v40 = vcombine.low %v12003_v6, %v12018_v15  ;;  %v1325_v52 = vcombine.low %v12340_v26, %v12343_v27 }
  0xa7   : > { %v12357_v0 = vrot.slane %v3611_v50, %v10972_v8  ;;  %v12363_v45 = vsel %vm11658_vm9, %v1041_v60, %v1042_v53  ;;  %v1326_v32 = vcombine.low %v12151_v51, %v12194_v30  ;;  %v12371_v6 = vsel %vm11658_vm9, %v8598_v43, %v1046_v7 }
  0xa8   : > { %9674 = vmatmul.mubr.msk.f32.gmra.mrb[8].mxu0 %vm1538_vm2, %v15702_v40  ;;  %v1048_v15 = vrot.slane %v1046_v7, 2  ;;  %v1051_v40 = vrot.slane %v1049_v34, 2  ;;  %v1327_v50 = vcombine.low %v12211_v54, %v12215_v21  ;;  %9405 = vmatmul.mubr.msk.f32.gmra.mrb[18].mxu1 %vm1538_vm2, %v1325_v52  ;;  %v3627_v51 = vcombine.low %v12363_v45, %v12371_v6  ;;  %v15705_v21 = vld [vmem:[#allocation68_spill] sm:$0xff] }
  0xa9   : > { %9676 = vmatprep.mubr.msk.f32.mxu0 %vm10873_vm1, %v15553_v47  ;;  %v12381_v30 = vrot.slane %v1326_v32, %v10972_v8  ;;  %v1054_v60 = vrot.slane %v1052_v16, 2  ;;  %9407 = vmatprep.mubr.msk.f32.mxu1 %vm10873_vm1, %v15553_v47  ;;  %v1055_v7 = vrot.slane %v15705_v21, 7  ;;  %v15706_v32 = vcombine.low %v12046_v31, %v12069_v58 }
  0xaa   : > { %v12385_v43 = vsel %vm11658_vm9, %v1048_v15, %v1049_v34  ;;  %v12389_v53 = vsel %vm11658_vm9, %v1051_v40, %v1052_v16  ;;  %v12394_v54 = vrot.slane %v1327_v50, %v10972_v8  ;;  %v12404_v52 = vrot.slane %v3627_v51, %v10972_v8  ;;  %v15707_v16 = vld [vmem:[#allocation71_spill] sm:$0xff]  ;;  %v15708_v40 = vld [vmem:[#allocation69_spill] sm:$0xff] }
  0xab   : > { %15703 = vst [vmem:[#allocation65_spill] sm:$0xff] %v12381_v30  ;;  %v3628_v34 = vcombine.low %v12385_v43, %v12389_v53  ;;  %v1058_v15 = vrot.slane %v15707_v16, 7  ;;  %v1061_v27 = vrot.slane %v15708_v40, 7  ;;  %v12414_v31 = vsel %vm11658_vm9, %v1054_v60, %v1055_v7 }
  0xac   : > { %15704 = vst [vmem:[#allocation61_spill] sm:$0xff] %v12394_v54  ;;  %9677 = vmatmul.mubr.msk.f32.gmra.mrb[10].mxu0 %vm1538_vm2, %v15706_v32  ;;  %v1342_v50 = vcombine.low %v12381_v30, %v12394_v54  ;;  %v1057_v58 = vrot.slane %v1055_v7, 2  ;;  %v15709_v32 = vld [vmem:[#allocation72_spill] sm:$0xff]  ;;  %v1343_v40 = vcombine.low %v12219_v1, %v12238_v36  ;;  %v1344_v60 = vcombine.low %v12255_v56, %v12263_v2  ;;  %v15710_v7 = vld [vmem:[#allocation62_spill] sm:$0xff] }
  0xad   : > { %9679 = vmatprep.mubr.msk.f32.mxu0 %vm10873_vm1, %v15553_v47  ;;  %v1064_v26 = vrot.slane %v15709_v32, 7  ;;  %v12418_v51 = vrot.slane %v3628_v34, %v10972_v8  ;;  %v1060_v21 = vrot.slane %v1058_v15, 2  ;;  %v1063_v16 = vrot.slane %v1061_v27, 2 }
  0xae   : > { %9408 = vmatmul.mubr.msk.f32.gmra.mrb[20].mxu1 %vm1538_vm2, %v1342_v50  ;;  %v12425_v54 = vsel %vm11658_vm9, %v1057_v58, %v1058_v15  ;;  %v12431_v30 = vcombine.high %v15710_v7, %v15710_v7  ;;  %v15712_v32 = vcombine.low %v12112_v44, %v12119_v46  ;;  %v12456_v46 = vrot.slane %v1343_v40, %v10972_v8  ;;  %v15715_v15 = vld [vmem:[#allocation74_spill] sm:$0xff] }
  0xaf   : > { %v1066_v34 = vrot.slane %v1064_v26, 2  ;;  %v12441_v36 = vsel %vm11658_vm9, %v1060_v21, %v1061_v27  ;;  %v12445_v56 = vsel %vm11658_vm9, %v1063_v16, %v1064_v26  ;;  %v3644_v2 = vcombine.low %v12414_v31, %v12425_v54  ;;  %9410 = vmatprep.mubr.msk.f32.mxu1 %vm10873_vm1, %v15553_v47  ;;  %v15716_v58 = vld [vmem:[#allocation78_spill] sm:$0xff] }
  0xb0   : > { %15711 = vst [vmem:[#allocation67_spill] sm:$0xff] %v12431_v30  ;;  %9680 = vmatmul.mubr.msk.f32.gmra.mrb[12].mxu0 %vm1538_vm2, %v15712_v32  ;;  %v3645_v44 = vcombine.low %v12441_v36, %v12445_v56  ;;  %15713 = vst [vmem:[#allocation142_spill] sm:$0xff] %v12456_v46  ;;  %v12459_v27 = vrot.slane %v1344_v60, %v10972_v8  ;;  %v1067_v26 = vrot.slane %v15710_v7, 7  ;;  %v1070_v16 = vrot.slane %v12431_v30, 7 }
  0xb1   : > { %9682 = vmatprep.mubr.msk.f32.mxu0 %vm10873_vm1, %v15553_v47  ;;  %v12463_v21 = vrot.slane %v3644_v2, %v10972_v8  ;;  %v8599_v50 = vrot.slane %v15715_v15, 9  ;;  %v1074_v32 = vrot.slane %v15716_v58, 7  ;;  %v15717_v2 = vcombine.low %v12164_v57, %v12180_v11 }
  0xb2   : > { %15714 = vst [vmem:[#allocation143_spill] sm:$0xff] %v12459_v27  ;;  %v12469_v1 = vrot.slane %v3645_v44, %v10972_v8  ;;  %v1359_v40 = vcombine.low %v12456_v46, %v12459_v27  ;;  %v12475_v60 = vsel %vm11658_vm9, %v1066_v34, %v1067_v26  ;;  %v1069_v7 = vrot.slane %v1067_v26, 2  ;;  %v15718_v44 = vld [vmem:[#allocation79_spill] sm:$0xff]  ;;  %v15719_v26 = vld [vmem:[#allocation84_spill] sm:$0xff] }
  0xb3   : > { %v12483_v30 = vsel %vm11658_vm9, %v8599_v50, %v1074_v32  ;;  %v1076_v15 = vrot.slane %v1074_v32, 2  ;;  %v1077_v58 = vrot.slane %v15718_v44, 7  ;;  %v1360_v27 = vcombine.low %v12278_v4, %v12298_v42 }
  0xb4   : > { %9683 = vmatmul.mubr.msk.f32.gmra.mrb[14].mxu0 %vm1538_vm2, %v15717_v2  ;;  %9411 = vmatmul.mubr.msk.f32.gmra.mrb[22].mxu1 %vm1538_vm2, %v1359_v40  ;;  %v12495_v57 = vsel %vm11658_vm9, %v1069_v7, %v1070_v16  ;;  %v1361_v11 = vcombine.low %v12314_v37, %v12318_v28  ;;  %v1080_v50 = vrot.slane %v15719_v26, 7  ;;  %v15722_v40 = vld [vmem:[#allocation75_spill] sm:$0xff]  ;;  %v15723_v2 = vcombine.low %v12245_v25, %v12248_v14 }
  0xb5   : > { %9685 = vmatprep.mubr.msk.f32.mxu0 %vm10873_vm1, %v15553_v47  ;;  %v12502_v42 = vsel %vm11658_vm9, %v1076_v15, %v1077_v58  ;;  %v3661_v4 = vcombine.low %v12475_v60, %v12495_v57  ;;  %9413 = vmatprep.mubr.msk.f32.mxu1 %vm10873_vm1, %v15553_v47  ;;  %v12509_v32 = vrot.slane %v1360_v27, %v10972_v8  ;;  %v1079_v7 = vrot.slane %v1077_v58, 2  ;;  %v15724_v58 = vld [vmem:[#allocation80_spill] sm:$0xff]  ;;  %v15725_v26 = vld [vmem:[#allocation83_spill] sm:$0xff] }
  0xb6   : > { %v3662_v16 = vcombine.low %v12483_v30, %v12502_v42  ;;  %v12514_v37 = vrot.slane %v1361_v11, %v10972_v8  ;;  %v1082_v28 = vrot.slane %v1080_v50, 2  ;;  %v1083_v15 = vrot.slane %v15722_v40, 7 }
  0xb7   : > { %15720 = vst [vmem:[#allocation144_spill] sm:$0xff] %v12509_v32  ;;  %v12522_v34 = vrot.slane %v3661_v4, %v10972_v8  ;;  %v12526_v27 = vsel %vm11658_vm9, %v1079_v7, %v1080_v50  ;;  %v1086_v46 = vrot.slane %v15724_v58, 7  ;;  %v1089_v11 = vrot.slane %v15725_v26, 7 }
  0xb8   : > { %15721 = vst [vmem:[#allocation145_spill] sm:$0xff] %v12514_v37  ;;  %9686 = vmatmul.mubr.msk.f32.gmra.mrb[16].mxu0 %vm1538_vm2, %v15723_v2  ;;  %v12533_v40 = vrot.slane %v3662_v16, %v10972_v8  ;;  %v1376_v14 = vcombine.low %v12509_v32, %v12514_v37  ;;  %v12539_v25 = vsel %vm11658_vm9, %v1082_v28, %v1083_v15  ;;  %v1085_v4 = vrot.slane %v1083_v15, 2  ;;  %v15726_v15 = vld [vmem:[#allocation76_spill] sm:$0xff]  ;;  %v15733_v16 = vld [vmem:[#allocation91_spill] sm:$0xff] }
  0xb9   : > { %9688 = vmatprep.mubr.msk.f32.mxu0 %vm10873_vm1, %v15553_v47  ;;  %v1088_v50 = vrot.slane %v1086_v46, 2  ;;  %v3678_v7 = vcombine.low %v12526_v27, %v12539_v25  ;;  %v1377_v2 = vcombine.low %v12330_v12, %v12363_v45  ;;  %v1378_v58 = vcombine.low %v12371_v6, %v12385_v43 }
  0xba   : > { %9414 = vmatmul.mubr.msk.f32.gmra.mrb[24].mxu1 %vm1538_vm2, %v1376_v14  ;;  %v12552_v28 = vsel %vm11658_vm9, %v1085_v4, %v1086_v46  ;;  %v12556_v37 = vcombine.high %v15726_v15, %v15726_v15  ;;  %v1091_v32 = vrot.slane %v1089_v11, 2  ;;  %v15728_v12 = vcombine.low %v12290_v29, %v12301_v13  ;;  %v15730_v46 = vld [vmem:[#allocation87_spill] sm:$0xff] }
  0xbb   : > { %v12564_v45 = vsel %vm11658_vm9, %v1088_v50, %v1089_v11  ;;  %v12567_v6 = vrot.slane %v3678_v7, %v10972_v8  ;;  %9416 = vmatprep.mubr.msk.f32.mxu1 %vm10873_vm1, %v15553_v47  ;;  %v12572_v43 = vrot.slane %v1377_v2, %v10972_v8  ;;  %v1092_v14 = vrot.slane %v15730_v46, 7  ;;  %v15732_v2 = vld [vmem:[#allocation85_spill] sm:$0xff] }
  0xbc   : > { %15727 = vst [vmem:[#allocation146_spill] sm:$0xff] %v12556_v37  ;;  %9689 = vmatmul.mubr.msk.f32.gmra.mrb[18].mxu0 %vm1538_vm2, %v15728_v12  ;;  %v3679_v13 = vcombine.low %v12552_v28, %v12564_v45  ;;  %v12580_v29 = vrot.slane %v1378_v58, %v10972_v8  ;;  %v1095_v11 = vrot.slane %v15726_v15, 7  ;;  %v1098_v4 = vrot.slane %v12556_v37, 7 }
  0xbd   : > { %15729 = vst [vmem:[#allocation147_spill] sm:$0xff] %v12572_v43  ;;  %9691 = vmatprep.mubr.msk.f32.mxu0 %vm10873_vm1, %v15553_v47  ;;  %v12586_v50 = vsel %vm11658_vm9, %v1091_v32, %v1092_v14  ;;  %v1094_v7 = vrot.slane %v1092_v14, 2  ;;  %v8600_v12 = vrot.slane %v15732_v2, 9  ;;  %v1102_v26 = vrot.slane %v15733_v16, 7 }
  0xbe   : > { %15731 = vst [vmem:[#allocation148_spill] sm:$0xff] %v12580_v29  ;;  %v12591_v46 = vrot.slane %v3679_v13, %v10972_v8  ;;  %v1393_v58 = vcombine.low %v12572_v43, %v12580_v29  ;;  %v1097_v44 = vrot.slane %v1095_v11, 2  ;;  %v1394_v15 = vcombine.low %v12389_v53, %v12414_v31  ;;  %v15735_v31 = vld [vmem:[#allocation90_spill] sm:$0xff] }
  0xbf   : > { %v15734_v37 = vcombine.low %v12347_v63, %v12357_v0  ;;  %v12603_v32 = vsel %vm11658_vm9, %v1094_v7, %v1095_v11  ;;  %v12607_v14 = vsel %vm11658_vm9, %v8600_v12, %v1102_v26  ;;  %v1395_v13 = vcombine.low %v12425_v54, %v12441_v36  ;;  %v15738_v11 = vld [vmem:[#allocation96_spill] sm:$0xff] }
  0xc0   : > { %v1104_v29 = vrot.slane %v1102_v26, 2  ;;  %9417 = vmatmul.mubr.msk.f32.gmra.mrb[26].mxu1 %vm1538_vm2, %v1393_v58  ;;  %v12618_v0 = vsel %vm11658_vm9, %v1097_v44, %v1098_v4  ;;  %v3695_v53 = vcombine.low %v12586_v50, %v12603_v32  ;;  %v12628_v36 = vrot.slane %v1394_v15, %v10972_v8  ;;  %v15739_v58 = vld [vmem:[#allocation88_spill] sm:$0xff] }
  0xc1   : > { %9692 = vmatmul.mubr.msk.f32.gmra.mrb[20].mxu0 %vm1538_vm2, %v15734_v37  ;;  %v1105_v37 = vrot.slane %v15735_v31, 7  ;;  %v3696_v54 = vcombine.low %v12618_v0, %v12607_v14  ;;  %9419 = vmatprep.mubr.msk.f32.mxu1 %vm10873_vm1, %v15553_v47  ;;  %v12631_v26 = vrot.slane %v1395_v13, %v10972_v8  ;;  %v1108_v44 = vrot.slane %v15738_v11, 7  ;;  %v15741_v31 = vld [vmem:[#allocation94_spill] sm:$0xff] }
  0xc2   : > { %9694 = vmatprep.mubr.msk.f32.mxu0 %vm10873_vm1, %v15553_v47  ;;  %15736 = vst [vmem:[#allocation85_spill] sm:$0xff] %v12628_v36  ;;  %v12635_v4 = vrot.slane %v3695_v53, %v10972_v8  ;;  %v1111_v63 = vrot.slane %v15739_v58, 7  ;;  %v15740_v43 = vcombine.low %v12404_v52, %v12418_v51  ;;  %v1114_v11 = vrot.slane %v15741_v31, 7 }
  0xc3   : > { %15737 = vst [vmem:[#allocation91_spill] sm:$0xff] %v12631_v26  ;;  %v12639_v7 = vsel %vm11658_vm9, %v1104_v29, %v1105_v37  ;;  %v1107_v12 = vrot.slane %v1105_v37, 2  ;;  %v12647_v15 = vrot.slane %v3696_v54, %v10972_v8  ;;  %v1410_v13 = vcombine.low %v12628_v36, %v12631_v26  ;;  %v15748_v36 = vld [vmem:[#allocation102_spill] sm:$0xff] }
  0xc4   : > { %v1110_v53 = vrot.slane %v1108_v44, 2  ;;  %v1113_v37 = vrot.slane %v1111_v63, 2  ;;  %v1411_v52 = vcombine.low %v12445_v56, %v12475_v60  ;;  %v1412_v51 = vcombine.low %v12495_v57, %v12483_v30 }
  0xc5   : > { %9695 = vmatmul.mubr.msk.f32.gmra.mrb[22].mxu0 %vm1538_vm2, %v15740_v43  ;;  %v12656_v29 = vsel %vm11658_vm9, %v1107_v12, %v1108_v44  ;;  %9420 = vmatmul.mubr.msk.f32.gmra.mrb[28].mxu1 %vm1538_vm2, %v1410_v13  ;;  %v15742_v12 = vld [vmem:[#allocation92_spill] sm:$0xff]  ;;  %v1116_v57 = vrot.slane %v1114_v11, 2 }
  0xc6   : > { %9697 = vmatprep.mubr.msk.f32.mxu0 %vm10873_vm1, %v15553_v47  ;;  %v12667_v54 = vsel %vm11658_vm9, %v1110_v53, %v1111_v63  ;;  %v3712_v44 = vcombine.low %v12639_v7, %v12656_v29  ;;  %v12673_v26 = vcombine.high %v15742_v12, %v15742_v12  ;;  %v12677_v56 = vsel %vm11658_vm9, %v1113_v37, %v1114_v11  ;;  %v15747_v37 = vld [vmem:[#allocation97_spill] sm:$0xff] }
  0xc7   : > { %9422 = vmatprep.mubr.msk.f32.mxu1 %vm10873_vm1, %v15553_v47  ;;  %v12682_v30 = vrot.slane %v1411_v52, %v10972_v8  ;;  %v12685_v60 = vrot.slane %v1412_v51, %v10972_v8  ;;  %v15746_v63 = vcombine.low %v12463_v21, %v12469_v1  ;;  %v3713_v13 = vcombine.low %v12667_v54, %v12677_v56 }
  0xc8   : > { %15743 = vst [vmem:[#allocation92_spill] sm:$0xff] %v12673_v26  ;;  %v12694_v53 = vrot.slane %v3712_v44, %v10972_v8  ;;  %v1117_v43 = vrot.slane %v15747_v37, 7  ;;  %v1120_v52 = vrot.slane %v15748_v36, 7  ;;  %v1123_v1 = vrot.slane %v15742_v12, 7 }
  0xc9   : > { %15744 = vst [vmem:[#allocation149_spill] sm:$0xff] %v12682_v30  ;;  %15745 = vst [vmem:[#allocation150_spill] sm:$0xff] %v12685_v60  ;;  %9698 = vmatmul.mubr.msk.f32.gmra.mrb[24].mxu0 %vm1538_vm2, %v15746_v63  ;;  %v1427_v11 = vcombine.low %v12682_v30, %v12685_v60  ;;  %v1126_v21 = vrot.slane %v12673_v26, 7  ;;  %v1428_v51 = vcombine.low %v12502_v42, %v12526_v27  ;;  %v15750_v26 = vld [vmem:[#allocation99_spill] sm:$0xff] }
  0xca   : > { %9700 = vmatprep.mubr.msk.f32.mxu0 %vm10873_vm1, %v15553_v47  ;;  %v12707_v44 = vrot.slane %v3713_v13, %v10972_v8  ;;  %v12711_v63 = vsel %vm11658_vm9, %v1116_v57, %v1117_v43  ;;  %v1119_v58 = vrot.slane %v1117_v43, 2  ;;  %v1122_v31 = vrot.slane %v1120_v52, 2 }
  0xcb   : > { %9423 = vmatmul.mubr.msk.f32.gmra.mrb[30].mxu1 %vm1538_vm2, %v1427_v11  ;;  %v1125_v37 = vrot.slane %v1123_v1, 2  ;;  %v1429_v60 = vcombine.low %v12539_v25, %v12552_v28  ;;  %v12717_v30 = vrot.slane %v1428_v51, %v10972_v8  ;;  %v8601_v42 = vrot.slane %v15750_v26, 9  ;;  %v15752_v28 = vld [vmem:[#allocation104_spill] sm:$0xff] }
  0xcc   : > { %v15751_v27 = vcombine.low %v12522_v34, %v12533_v40  ;;  %v3728_v43 = vcombine.low %v12694_v53, %v12707_v44  ;;  %v12728_v57 = vsel %vm11658_vm9, %v1119_v58, %v1120_v52  ;;  %v12732_v25 = vsel %vm11658_vm9, %v1122_v31, %v1123_v1  ;;  %9425 = vmatprep.mubr.msk.f32.mxu1 %vm10873_vm1, %v15553_v47  ;;  %v15754_v31 = vld [vmem:[#allocation103_spill] sm:$0xff]  ;;  %v15755_v51 = vld [vmem:[#allocation108_spill] sm:$0xff] }
  0xcd   : > { %15749 = vst [vmem:[#allocation102_spill] sm:$0xff] %v12717_v30  ;;  %v1130_v13 = vrot.slane %v15752_v28, 7  ;;  %v12741_v34 = vsel %vm11658_vm9, %v1125_v37, %v1126_v21  ;;  %v3729_v40 = vcombine.low %v12711_v63, %v12728_v57  ;;  %v12746_v58 = vrot.slane %v1429_v60, %v10972_v8 }
  0xce   : > { %9701 = vmatmul.mubr.msk.f32.gmra.mrb[26].mxu0 %vm1538_vm2, %v15751_v27  ;;  %v1133_v53 = vrot.slane %v15754_v31, 7  ;;  %v3730_v52 = vcombine.low %v12732_v25, %v12741_v34  ;;  %v1136_v44 = vrot.slane %v15755_v51, 7  ;;  %v15756_v27 = vld [vmem:[#allocation106_spill] sm:$0xff]  ;;  %v15757_v31 = vcombine.low %v12567_v6, %v12591_v46 }
  0xcf   : > { %9703 = vmatprep.mubr.msk.f32.mxu0 %vm10873_vm1, %v15553_v47  ;;  %15753 = vst [vmem:[#allocation151_spill] sm:$0xff] %v12746_v58  ;;  %v12753_v11 = vsel %vm11658_vm9, %v8601_v42, %v1130_v13  ;;  %v1132_v1 = vrot.slane %v1130_v13, 2  ;;  %v12757_v37 = vrot.slane %v3729_v40, %v10972_v8  ;;  %v1444_v21 = vcombine.low %v12717_v30, %v12746_v58  ;;  %v15764_v30 = vld [vmem:[#allocation100_spill] sm:$0xff] }
  0xd0   : > { %v1135_v60 = vrot.slane %v1133_v53, 2  ;;  %v1139_v28 = vrot.slane %v15756_v27, 7  ;;  %v3744_v42 = vrot.slane %v3730_v52, %v10972_v8  ;;  %v1138_v51 = vrot.slane %v1136_v44, 2 }
  0xd1   : > { %v12769_v13 = vsel %vm11658_vm9, %v1132_v1, %v1133_v53  ;;  %v1445_v40 = vcombine.low %v12564_v45, %v12586_v50  ;;  %9426 = vmatmul.mubr.msk.f32.gmra.mrb[32].mxu1 %vm1538_vm2, %v1444_v21  ;;  %v15759_v1 = vld [vmem:[#allocation112_spill] sm:$0xff] }
  0xd2   : > { %9704 = vmatmul.mubr.msk.f32.gmra.mrb[28].mxu0 %vm1538_vm2, %v15757_v31  ;;  %v12778_v6 = vsel %vm11658_vm9, %v1135_v60, %v1136_v44  ;;  %v3746_v46 = vcombine.low %v12753_v11, %v12769_v13  ;;  %v1446_v31 = vcombine.low %v12603_v32, %v12618_v0  ;;  %v1141_v53 = vrot.slane %v1139_v28, 2  ;;  %9428 = vmatprep.mubr.msk.f32.mxu1 %vm10873_vm1, %v15553_v47 }
  0xd3   : > { %9706 = vmatprep.mubr.msk.f32.mxu0 %vm10873_vm1, %v15553_v47  ;;  %v3745_v52 = vcombine.low %v12757_v37, %v3744_v42  ;;  %v12787_v45 = vsel %vm11658_vm9, %v1138_v51, %v1139_v28  ;;  %v12792_v50 = vrot.slane %v1445_v40, %v10972_v8  ;;  %v1142_v44 = vrot.slane %v15759_v1, 7  ;;  %v15761_v37 = vld [vmem:[#allocation109_spill] sm:$0xff] }
  0xd4   : > { %v3747_v21 = vcombine.low %v12778_v6, %v12787_v45  ;;  %v3754_v32 = vrot.slane %v3746_v46, %v10972_v8  ;;  %v12799_v0 = vrot.slane %v1446_v31, %v10972_v8  ;;  %v1145_v60 = vrot.slane %v15761_v37, 7  ;;  %v15763_v40 = vld [vmem:[#allocation113_spill] sm:$0xff] }
  0xd5   : > { %15758 = vst [vmem:[#allocation106_spill] sm:$0xff] %v12792_v50  ;;  %v15762_v28 = vcombine.low %v12635_v4, %v12647_v15  ;;  %v12808_v51 = vsel %vm11658_vm9, %v1141_v53, %v1142_v44  ;;  %v1144_v42 = vrot.slane %v1142_v44, 2  ;;  %v1148_v58 = vrot.slane %v15763_v40, 7 }
  0xd6   : > { %15760 = vst [vmem:[#allocation152_spill] sm:$0xff] %v12799_v0  ;;  %v1151_v1 = vrot.slane %v15764_v30, 7  ;;  %v3761_v46 = vrot.slane %v3747_v21, %v10972_v8  ;;  %v1461_v31 = vcombine.low %v12792_v50, %v12799_v0  ;;  %v1147_v4 = vrot.slane %v1145_v60, 2  ;;  %v15771_v50 = vld [vmem:[#allocation121_spill] sm:$0xff] }
  0xd7   : > { %9707 = vmatmul.mubr.msk.f32.gmra.mrb[30].mxu0 %vm1538_vm2, %v15762_v28  ;;  %v1462_v15 = vcombine.low %v12607_v14, %v12639_v7  ;;  %v12821_v53 = vsel %vm11658_vm9, %v1144_v42, %v1145_v60  ;;  %v1150_v44 = vrot.slane %v1148_v58, 2  ;;  %v1463_v28 = vcombine.low %v12656_v29, %v12667_v54  ;;  %v15768_v42 = vld [vmem:[#allocation114_spill] sm:$0xff] }
  0xd8   : > { %9709 = vmatprep.mubr.msk.f32.mxu0 %vm10873_vm1, %v15553_v47  ;;  %v12827_v40 = vcombine.high %v15764_v30, %v15764_v30  ;;  %v3762_v21 = vcombine.low %v3754_v32, %v3761_v46  ;;  %9429 = vmatmul.mubr.msk.f32.gmra.mrb[34].mxu1 %vm1538_vm2, %v1461_v31  ;;  %v12832_v0 = vsel %vm11658_vm9, %v1147_v4, %v1148_v58  ;;  %v1153_v58 = vrot.slane %v1151_v1, 2  ;;  %v15769_v31 = vld [vmem:[#allocation118_spill] sm:$0xff] }
  0xd9   : > { %v3763_v14 = vcombine.low %v12808_v51, %v12821_v53  ;;  %v12837_v7 = vrot.slane %v1462_v15, %v10972_v8  ;;  %v12842_v29 = vsel %vm11658_vm9, %v1150_v44, %v1151_v1  ;;  %9431 = vmatprep.mubr.msk.f32.mxu1 %vm10873_vm1, %v15553_v47  ;;  %v12847_v54 = vrot.slane %v1463_v28, %v10972_v8  ;;  %v15770_v44 = vld [vmem:[#allocation116_spill] sm:$0xff] }
  0xda   : > { %15765 = vst [vmem:[#allocation109_spill] sm:$0xff] %v12827_v40  ;;  %v1154_v32 = vrot.slane %v12827_v40, 7  ;;  %v3764_v60 = vcombine.low %v12832_v0, %v12842_v29  ;;  %v8704_v46 = vrot.slane %v15768_v42, 9  ;;  %v3414_v4 = vrot.slane %v15769_v31, 7 }
  0xdb   : > { %15766 = vst [vmem:[#allocation153_spill] sm:$0xff] %v12837_v7  ;;  %9710 = vmatmul.mubr.msk.f32.gmra.mrb[32].mxu0 %vm1538_vm2, %v3728_v43  ;;  %15767 = vst [vmem:[#allocation154_spill] sm:$0xff] %v12847_v54  ;;  %v3771_v43 = vrot.slane %v3763_v14, %v10972_v8  ;;  %v1478_v15 = vcombine.low %v12837_v7, %v12847_v54  ;;  %v3417_v28 = vrot.slane %v15770_v44, 7  ;;  %v3420_v40 = vrot.slane %v15771_v50, 7 }
  0xdc   : > { %9712 = vmatprep.mubr.msk.f32.mxu0 %vm10873_vm1, %v15553_v47  ;;  %v12861_v1 = vsel %vm11658_vm9, %v1153_v58, %v1154_v32  ;;  %v3778_v30 = vrot.slane %v3764_v60, %v10972_v8  ;;  %v12868_v14 = vsel %vm11658_vm9, %v8704_v46, %v3414_v4  ;;  %v3416_v42 = vrot.slane %v3414_v4, 2 }
  0xdd   : > { %15772 = vst [vmem:[#allocation116_spill] sm:$0xff] %v12868_v14  ;;  %v1479_v31 = vcombine.low %v12677_v56, %v12711_v63  ;;  %9432 = vmatmul.mubr.msk.f32.gmra.mrb[36].mxu1 %vm1538_vm2, %v1478_v15  ;;  %v3419_v58 = vrot.slane %v3417_v28, 2  ;;  %v3780_v32 = vcombine.low %v12861_v1, %v12868_v14  ;;  %v1480_v54 = vcombine.low %v12728_v57, %v12732_v25  ;;  %v15775_v63 = vld [vmem:[#allocation122_spill] sm:$0xff]  ;;  %v15780_v14 = vld [vmem:[#allocation123_spill] sm:$0xff] }
  0xde   : > { %v3422_v60 = vrot.slane %v3420_v40, 2  ;;  %v3779_v46 = vcombine.low %v3771_v43, %v3778_v30  ;;  %v12882_v4 = vsel %vm11658_vm9, %v3416_v42, %v3417_v28  ;;  %9434 = vmatprep.mubr.msk.f32.mxu1 %vm10873_vm1, %v15553_v47  ;;  %v15778_v43 = vld [vmem:[#allocation125_spill] sm:$0xff]  ;;  %v3429_v7 = vrot.slane %v15780_v14, 7 }
  0xdf   : > { %9713 = vmatmul.mubr.msk.f32.gmra.mrb[34].mxu0 %vm1538_vm2, %v3745_v52  ;;  %15773 = vst [vmem:[#allocation121_spill] sm:$0xff] %v12882_v4  ;;  %v12887_v56 = vrot.slane %v1479_v31, %v10972_v8  ;;  %v3423_v52 = vrot.slane %v15775_v63, 7  ;;  %v12892_v57 = vsel %vm11658_vm9, %v3419_v58, %v3420_v40  ;;  %v3788_v25 = vrot.slane %v3780_v32, %v10972_v8  ;;  %v15781_v58 = vld [vmem:[#allocation126_spill] sm:$0xff] }
  0xe0   : > { %9715 = vmatprep.mubr.msk.f32.mxu0 %vm10873_vm1, %v15553_v47  ;;  %15776 = vst [vmem:[#allocation156_spill] sm:$0xff] %v12892_v57  ;;  %v12896_v30 = vrot.slane %v1480_v54, %v10972_v8  ;;  %v3426_v42 = vrot.slane %v15778_v43, 7  ;;  %v3781_v15 = vcombine.low %v12882_v4, %v12892_v57  ;;  %v3432_v32 = vrot.slane %v15781_v58, 7 }
  0xe1   : > { %15774 = vst [vmem:[#allocation155_spill] sm:$0xff] %v12887_v56  ;;  %v12903_v31 = vsel %vm11658_vm9, %v3422_v60, %v3423_v52  ;;  %v3425_v28 = vrot.slane %v3423_v52, 2  ;;  %v1496_v63 = vcombine.low %v12741_v34, %v12753_v11  ;;  %v3431_v57 = vrot.slane %v3429_v7, 2 }
  0xe2   : > { %15777 = vst [vmem:[#allocation157_spill] sm:$0xff] %v12896_v30  ;;  %15779 = vst [vmem:[#allocation125_spill] sm:$0xff] %v12903_v31  ;;  %v1495_v40 = vcombine.low %v12887_v56, %v12896_v30  ;;  %v3428_v54 = vrot.slane %v3426_v42, 2  ;;  %v3795_v60 = vrot.slane %v3781_v15, %v10972_v8  ;;  %v15839_v56 = vld [vmem:[#allocation68_spill] sm:$0xff] }
  0xe3   : > { %9716 = vmatmul.mubr.msk.f32.gmra.mrb[36].mxu0 %vm1538_vm2, %v3762_v21  ;;  %v12917_v52 = vsel %vm11658_vm9, %v3425_v28, %v3426_v42  ;;  %v1497_v21 = vcombine.low %v12769_v13, %v12778_v6  ;;  %v12929_v11 = vrot.slane %v1496_v63, %v10972_v8  ;;  %v12932_v15 = vld.sshfl [vmem:[%s11400_s11 + $0x40] sm:$0x33 pattern:$0x76325410]  ;;  %v12940_v13 = vsel %vm11658_vm9, %v3431_v57, %v3432_v32 }
  0xe4   : > { %9718 = vmatprep.mubr.msk.f32.mxu0 %vm10873_vm1, %v15553_v47  ;;  %15782 = vst [vmem:[#allocation123_spill] sm:$0xff] %v12917_v52  ;;  %9435 = vmatmul.mubr.msk.f32.gmra.mrb[38].mxu1 %vm1538_vm2, %v1495_v40  ;;  %v12924_v4 = vsel %vm11658_vm9, %v3428_v54, %v3429_v7  ;;  %v3797_v34 = vcombine.low %v12903_v31, %v12917_v52  ;;  %15785 = vst [vmem:[#allocation159_spill] sm:$0xff] %v12940_v13  ;;  %v3434_v7 = vrot.slane %v3432_v32, 2  ;;  %v15789_v52 = vld [vmem:[#allocation9_spill] sm:$0xff] }
  0xe5   : > { %15783 = vst [vmem:[#allocation126_spill] sm:$0xff] %v12924_v4  ;;  %15784 = vst [vmem:[#allocation158_spill] sm:$0xff] %v12929_v11  ;;  %v12936_v42 = vcombine.high %v12932_v15, %v12932_v15  ;;  %v3796_v28 = vcombine.low %v3788_v25, %v3795_v60  ;;  %9437 = vmatprep.mubr.msk.f32.mxu1 %vm10873_vm1, %v15553_v47  ;;  %v12945_v6 = vrot.slane %v1497_v21, %v10972_v8 }
  0xe6   : > { %v3798_v63 = vcombine.low %v12924_v4, %v12940_v13  ;;  %v3805_v40 = vrot.slane %v3797_v34, %v10972_v8  ;;  %v3435_v25 = vrot.slane %v12932_v15, 7  ;;  %v1513_v32 = vcombine.low %v12787_v45, %v12808_v51  ;;  %v15788_v13 = vld [vmem:[#allocation8_spill] sm:$0xff]  ;;  %v15792_v51 = vld [vmem:[#allocation5_spill] sm:$0xff] }
  0xe7   : > { %15786 = vst [vmem:[#allocation160_spill] sm:$0xff] %v12945_v6  ;;  %9719 = vmatmul.mubr.msk.f32.gmra.mrb[38].mxu0 %vm1538_vm2, %v3779_v46  ;;  %v3438_v54 = vrot.slane %v12936_v42, 7  ;;  %v1512_v57 = vcombine.low %v12929_v11, %v12945_v6  ;;  %v1514_v46 = vcombine.low %v12821_v53, %v12832_v0  ;;  %v1804_v4 = vcombine.low %v15789_v52, %v15788_v13  ;;  %v15793_v0 = vld [vmem:[#allocation14_spill] sm:$0xff] }
  0xe8   : > { %9721 = vmatprep.mubr.msk.f32.mxu0 %vm10873_vm1, %v15553_v47  ;;  %v3812_v60 = vrot.slane %v3798_v63, %v10972_v8  ;;  %v12964_v21 = vsel %vm11658_vm9, %v3434_v7, %v3435_v25  ;;  %v3437_v34 = vrot.slane %v3435_v25, 2  ;;  %v12970_v6 = vrot.slane %v1513_v32, %v10972_v8  ;;  %v15799_v32 = vld [vmem:[#allocation12_spill] sm:$0xff] }
  0xe9   : > { %15787 = vst [vmem:[#allocation161_spill] sm:$0xff] %v12964_v21  ;;  %9438 = vmatmul.mubr.msk.f32.gmra.mrb[40].mxu1 %vm1538_vm2, %v1512_v57  ;;  %v12973_v45 = vrot.slane %v1514_v46, %v10972_v8  ;;  %v1820_v53 = vcombine.low %v15793_v0, %v15792_v51  ;;  %v1530_v7 = vcombine.low %v12842_v29, %v12861_v1  ;;  %v15795_v1 = vld [vmem:[#allocation3_spill] sm:$0xff]  ;;  %v15798_v57 = vld [vmem:[#allocation6_spill] sm:$0xff] }
  0xea   : > { %15790 = vst [vmem:[#allocation8_spill] sm:$0xff] %v12970_v6  ;;  %v3813_v63 = vcombine.low %v3805_v40, %v3812_v60  ;;  %v12982_v52 = vsel %vm11658_vm9, %v3437_v34, %v3438_v54  ;;  %9440 = vmatprep.mubr.msk.f32.mxu1 %vm10873_vm1, %v15553_v47  ;;  %v1818_v29 = vrot.slane %v1804_v4, %v10972_v8  ;;  %v15802_v0 = vld [vmem:[#allocation10_spill] sm:$0xff]  ;;  %v15803_v4 = vld [vmem:[#allocation11_spill] sm:$0xff] }
  0xeb   : > { %15791 = vst [vmem:[#allocation9_spill] sm:$0xff] %v12973_v45  ;;  %9722 = vmatmul.mubr.msk.f32.gmra.mrb[40].mxu0 %vm1538_vm2, %v3796_v28  ;;  %15794 = vst [vmem:[#allocation5_spill] sm:$0xff] %v12982_v52  ;;  %v3814_v13 = vcombine.low %v12964_v21, %v12982_v52  ;;  %v1529_v25 = vcombine.low %v12970_v6, %v12973_v45  ;;  %v15796_v28 = vld [vmem:[#allocation7_spill] sm:$0xff]  ;;  %v15800_v46 = vcombine.low %v15798_v57, %v15799_v32  ;;  %v15805_v57 = vld [vmem:[#allocation16_spill] sm:$0xff] }
  0xec   : > { %9724 = vmatprep.mubr.msk.f32.mxu0 %vm10873_vm1, %v15553_v47  ;;  %v15797_v40 = vcombine.low %v15795_v1, %v15796_v28  ;;  %v13003_v34 = vrot.slane %v1820_v53, %v10972_v8  ;;  %v13006_v51 = vrot.slane %v1530_v7, %v10972_v8  ;;  %v1821_v52 = vcombine.low %v15803_v4, %v15802_v0  ;;  %v15804_v1 = vld [vmem:[#allocation15_spill] sm:$0xff]  ;;  %v15810_v6 = vld [vmem:[#allocation21_spill] sm:$0xff] }
  0xed   : > { %v1784_v60 = vrot.slane %v15800_v46, %v10972_v8  ;;  %9441 = vmatmul.mubr.msk.f32.gmra.mrb[42].mxu1 %vm1538_vm2, %v1529_v25  ;;  %v1837_v28 = vcombine.low %v15804_v1, %v13011_v3  ;;  %v1786_v7 = vcombine.low %v11001_v23, %v11857_v39  ;;  %v1787_v25 = vcombine.low %v11029_v33, %v11865_v20  ;;  %v13034_v23 = vld.sshfl [vmem:[%s10977_s16 + $0x10] sm:$0x33 pattern:$0x76325410] }
  0xee   : > { %v1777_v54 = vrot.slane %v15797_v40, %v10972_v8  ;;  %15801 = vst [vmem:[#allocation14_spill] sm:$0xff] %v13006_v51  ;;  %v3821_v40 = vrot.slane %v3814_v13, %v10972_v8  ;;  %9443 = vmatprep.mubr.msk.f32.mxu1 %vm10873_vm1, %v15553_v47  ;;  %v1854_v32 = vcombine.low %v15805_v57, %v11085_v59  ;;  %v15808_v57 = vld [vmem:[#allocation17_spill] sm:$0xff] }
  0xef   : > { %9725 = vmatmul.mubr.msk.f32.gmra.mrb[42].mxu0 %vm1538_vm2, %v3813_v63  ;;  %v15806_v63 = vld [vmem:[#allocation13_spill] sm:$0xff]  ;;  %v1801_v46 = vrot.slane %v1787_v25, %v10972_v8  ;;  %v4074_v4 = vcombine.low %v1818_v29, %v13003_v34  ;;  %v1835_v59 = vrot.slane %v1821_v52, %v10972_v8  ;;  %v1845_v1 = vrot.slane %v1837_v28, %v10972_v8 }
  0xf0   : > { %v1785_v53 = vcombine.low %v1777_v54, %v1784_v60  ;;  %9727 = vmatprep.mubr.msk.f32.mxu0 %vm10873_vm1, %v15553_v47  ;;  %v8729_v13 = vcombine.high %v13011_v3, %v15806_v63  ;;  %v1794_v54 = vrot.slane %v1786_v7, %v10972_v8  ;;  %v15807_v60 = vld [vmem:[#allocation4_spill] sm:$0xff]  ;;  %v416_v7 = vld [vmem:[%s15229_s2 + $0x18] sm:$0xf]  ;;  %v13050_v25 = vrot.slane %v1854_v32, %v10972_v8 }
  0xf1   : > { %9444 = vmatmul.mubr.msk.f32.gmra.mrb[44].mxu1 %vm1538_vm2, %v13006_v51  ;;  %v1803_v0 = vcombine.low %v13034_v23, %v15807_v60  ;;  %v1838_v21 = vcombine.low %v15806_v63, %v15808_v57  ;;  %v4075_v45 = vcombine.low %v1835_v59, %v1845_v1  ;;  %v15809_v51 = vld [vmem:[#allocation19_spill] sm:$0xff]  ;;  %v2075_v11 = vcombine.low %v15732_v2, %v15733_v16 }
  0xf2   : > { %9448 = vmatprep.mubr.msk.f32.mxu1 %vm10873_vm1, %v15553_v47  ;;  %v1802_v52 = vcombine.low %v1794_v54, %v1801_v46  ;;  %v1855_v32 = vcombine.low %v15809_v51, %v11108_v5  ;;  %v1888_v5 = vcombine.low %v11139_v24, %v11144_v35  ;;  %v4086_v51 = vcombine.low %v11076_v55, %v11943_v41  ;;  %v10796_v24 = vld [vmem:[%s15229_s2 + $0x8] sm:$0xf] }
  0xf3   : > { %9728 = vmatmul.mubr.msk.f32.gmra.mrb[44].mxu0 %vm1538_vm2, %v3821_v40  ;;  %v4083_v40 = vrot.slane %v8729_v13, %v10972_v8  ;;  %v1811_v28 = vrot.slane %v1803_v0, %v10972_v8  ;;  %v13068_v13 = vrot.slane %v1838_v21, %v10972_v8  ;;  %v15811_v0 = vld [vmem:[#allocation27_spill] sm:$0xff] }
  0xf4   : > { %9732 = vmatprep.mubr.msk.f32.mxu0 %vm10873_vm1, %v15553_v47  ;;  %v13092_v35 = vrot.slane %v1888_v5, %v10972_v8  ;;  %v4093_v46 = vrot.slane %v4086_v51, %v10972_v8  ;;  %v15815_v5 = vld [vmem:[#allocation35_spill] sm:$0xff] }
  0xf5   : > { %9449 = vmatmul.mubr.msk.f32.vlgmr.msra.gmra.mrb[0].mxu1 %vm1538_vm2, %v1785_v53  ;;  %v1871_v53 = vcombine.low %v15810_v6, %v11118_v10  ;;  %v4084_v63 = vcombine.low %v4083_v40, %v13050_v25  ;;  %v1819_v54 = vcombine.low %v1811_v28, %v1818_v29  ;;  %v1869_v6 = vrot.slane %v1855_v32, %v10972_v8  ;;  %v15814_v40 = vld [vmem:[#allocation23_spill] sm:$0xff] }
  0xf6   : > { %9451 = vmatprep.mubr.msk.f32.mxu1 %vm10873_vm1, %v15553_v47  ;;  %10249 = vmatpush3.msk.msra.mxu1 %vm1585_vm0, %v10796_v24  ;;  %v1889_v29 = vcombine.low %v11170_v48, %v11134_v17  ;;  %v15812_v17 = vld [vmem:[#allocation24_spill] sm:$0xff]  ;;  %v1923_v51 = vcombine.low %v15815_v5, %v15669_v62  ;;  %v15816_v24 = vld [vmem:[#allocation42_spill] sm:$0xff] }
  0xf7   : > { %9733 = vmatmul.mubr.msk.f32.vlgmr.msra.gmra.mrb[0].mxu0 %vm1538_vm2, %v4074_v4  ;;  %v1879_v21 = vrot.slane %v1871_v53, %v10972_v8  ;;  %v1905_v4 = vcombine.low %v15811_v0, %v15657_v19  ;;  %v15813_v48 = vld [vmem:[#allocation32_spill] sm:$0xff]  ;;  %v4094_v19 = vcombine.low %v4093_v46, %v13092_v35  ;;  %v1870_v53 = vcombine.low %v13050_v25, %v1869_v6  ;;  %v15818_v0 = vld [vmem:[#allocation49_spill] sm:$0xff] }
  0xf8   : > { %9802 = vmatpush3.msk.msra.mxu0 %vm1585_vm0, %v416_v7  ;;  %9735 = vmatprep.mubr.msk.f32.mxu0 %vm10873_vm1, %v15553_v47  ;;  %v8730_v7 = vcombine.high %v15812_v17, %v15662_v38  ;;  %v1903_v28 = vrot.slane %v1889_v29, %v10972_v8  ;;  %v1937_v62 = vrot.slane %v1923_v51, %v10972_v8 }
  0xf9   : > { %9872 = vmatprep.subr.mxu0 %v15553_v47  ;;  %9452 = vmatmul.mubr.msk.f32.gmra.mrb[2].mxu1 %vm1538_vm2, %v1802_v52  ;;  %v13098_v41 = vcombine.low %v1869_v6, %v1879_v21  ;;  %v1872_v52 = vcombine.low %v11076_v55, %v15814_v40  ;;  %v1913_v57 = vrot.slane %v1905_v4, %v10972_v8  ;;  %v15819_v4 = vld [vmem:[#allocation44_spill] sm:$0xff] }
  0xfa   : > { %9454 = vmatprep.mubr.msk.f32.mxu1 %vm10873_vm1, %v15553_v47  ;;  %v4103_v32 = vrot.slane %v8730_v7, %v10972_v8  ;;  %v15821_v7 = vld [vmem:[#allocation37_spill] sm:$0xff] }
  0xfb   : > { %9736 = vmatmul.mubr.msk.f32.gmra.mrb[2].mxu0 %vm1538_vm2, %v4075_v45  ;;  %v1836_v45 = vcombine.low %v13003_v34, %v1835_v59  ;;  %v1853_v34 = vcombine.low %v1845_v1, %v13068_v13  ;;  %v1906_v59 = vcombine.low %v15813_v48, %v15812_v17 }
  0xfc   : > { %9738 = vmatprep.mubr.msk.f32.mxu0 %vm10873_vm1, %v15553_v47 }
  0xfd   : > { %9455 = vmatmul.mubr.msk.f32.gmra.mrb[4].mxu1 %vm1538_vm2, %v1819_v54  ;;  %v13126_v1 = vrot.slane %v1906_v59, %v10972_v8  ;;  %v13134_v54 = vcombine.low %v1903_v28, %v1913_v57  ;;  %v15820_v59 = vld [vmem:[#allocation39_spill] sm:$0xff] }
  0xfe   : > { %9457 = vmatprep.mubr.msk.f32.mxu1 %vm10873_vm1, %v15553_v47 }
  0xff   : > { %9739 = vmatmul.mubr.msk.f32.gmra.mrb[4].mxu0 %vm1538_vm2, %v4084_v63  ;;  %v13131_v63 = vrot.slane %v1872_v52, %v10972_v8  ;;  %v4104_v6 = vcombine.low %v13126_v1, %v4103_v32  ;;  %v4106_v52 = vcombine.low %v15821_v7, %v15820_v59  ;;  %v15823_v32 = vld [vmem:[#allocation47_spill] sm:$0xff] }
 0x100   : > { %9741 = vmatprep.mubr.msk.f32.mxu0 %vm10873_vm1, %v15553_v47 }
 0x101   : > { %9458 = vmatmul.mubr.msk.f32.gmra.mrb[6].mxu1 %vm1538_vm2, %v1836_v45  ;;  %v15817_v45 = vld [vmem:[#allocation33_spill] sm:$0xff]  ;;  %v1887_v46 = vcombine.low %v1879_v21, %v13131_v63  ;;  %v15822_v21 = vld [vmem:[#allocation51_spill] sm:$0xff] }
 0x102   : > { %9460 = vmatprep.mubr.msk.f32.mxu1 %vm10873_vm1, %v15553_v47  ;;  %v1939_v29 = vcombine.low %v15817_v45, %v15816_v24  ;;  %v15825_v24 = vld [vmem:[#allocation36_spill] sm:$0xff]  ;;  %v1904_v45 = vcombine.low %v13092_v35, %v1903_v28  ;;  %v15828_v28 = vld [vmem:[#allocation57_spill] sm:$0xff] }
 0x103   : > { %9742 = vmatmul.mubr.msk.f32.gmra.mrb[6].mxu0 %vm1538_vm2, %v13098_v41  ;;  %v1922_v51 = vcombine.low %v15662_v38, %v15825_v24  ;;  %v15826_v38 = vld [vmem:[#allocation52_spill] sm:$0xff] }
 0x104   : > { %9744 = vmatprep.mubr.msk.f32.mxu0 %vm10873_vm1, %v15553_v47  ;;  %v13153_v48 = vrot.slane %v1939_v29, %v10972_v8 }
 0x105   : > { %9461 = vmatmul.mubr.msk.f32.gmra.mrb[8].mxu1 %vm1538_vm2, %v1853_v34  ;;  %v1940_v34 = vcombine.low %v15819_v4, %v15818_v0 }
 0x106   : > { %9463 = vmatprep.mubr.msk.f32.mxu1 %vm10873_vm1, %v15553_v47  ;;  %v13171_v29 = vcombine.low %v1937_v62, %v13153_v48 }
 0x107   : > { %9745 = vmatmul.mubr.msk.f32.gmra.mrb[8].mxu0 %vm1538_vm2, %v4094_v19  ;;  %v1957_v19 = vcombine.low %v15822_v21, %v15683_v49  ;;  %v13174_v0 = vrot.slane %v1940_v34, %v10972_v8  ;;  %v4113_v49 = vrot.slane %v4106_v52, %v10972_v8  ;;  %v13190_v34 = vrot.slane %v1922_v51, %v10972_v8 }
 0x108   : > { %9747 = vmatprep.mubr.msk.f32.mxu0 %vm10873_vm1, %v15553_v47  ;;  %v2007_v52 = vcombine.low %v15700_v9, %v15701_v22 }
 0x109   : > { %9464 = vmatmul.mubr.msk.f32.gmra.mrb[10].mxu1 %vm1538_vm2, %v1870_v53  ;;  %v15824_v53 = vld [vmem:[#allocation56_spill] sm:$0xff]  ;;  %v1971_v59 = vrot.slane %v1957_v19, %v10972_v8  ;;  %v4114_v19 = vcombine.low %v13174_v0, %v4113_v49  ;;  %v1938_v31 = vcombine.low %v13190_v34, %v1937_v62  ;;  %v1955_v62 = vcombine.low %v13153_v48, %v13174_v0 }
 0x10a   : > { %9466 = vmatprep.mubr.msk.f32.mxu1 %vm10873_vm1, %v15553_v47  ;;  %v1973_v5 = vcombine.low %v15824_v53, %v15823_v32  ;;  %v1921_v32 = vcombine.low %v1913_v57, %v13126_v1  ;;  %v15829_v53 = vld [vmem:[#allocation46_spill] sm:$0xff]  ;;  %v15831_v57 = vld [vmem:[#allocation79_spill] sm:$0xff]  ;;  %v15840_v48 = vld [vmem:[#allocation72_spill] sm:$0xff] }
 0x10b   : > { %9748 = vmatmul.mubr.msk.f32.gmra.mrb[10].mxu0 %vm1538_vm2, %v13134_v54  ;;  %v1956_v24 = vcombine.low %v15821_v7, %v15829_v53 }
 0x10c   : > { %9750 = vmatprep.mubr.msk.f32.mxu0 %vm10873_vm1, %v15553_v47  ;;  %v13187_v21 = vrot.slane %v1973_v5, %v10972_v8  ;;  %v15830_v5 = vld [vmem:[#allocation59_spill] sm:$0xff] }
 0x10d   : > { %9467 = vmatmul.mubr.msk.f32.gmra.mrb[12].mxu1 %vm1538_vm2, %v1887_v46  ;;  %v15827_v46 = vld [vmem:[#allocation53_spill] sm:$0xff]  ;;  %v1991_v51 = vcombine.low %v15830_v5, %v15699_v61  ;;  %v13220_v61 = vrot.slane %v2007_v52, %v10972_v8 }
 0x10e   : > { %9469 = vmatprep.mubr.msk.f32.mxu1 %vm10873_vm1, %v15553_v47  ;;  %v1974_v4 = vcombine.low %v15827_v46, %v15826_v38  ;;  %v15833_v46 = vld [vmem:[#allocation74_spill] sm:$0xff]  ;;  %v13216_v10 = vcombine.low %v1971_v59, %v13187_v21 }
 0x10f   : > { %9751 = vmatmul.mubr.msk.f32.gmra.mrb[12].mxu0 %vm1538_vm2, %v4104_v6  ;;  %v1990_v6 = vcombine.low %v15828_v28, %v15693_v18  ;;  %v15834_v28 = vld [vmem:[#allocation62_spill] sm:$0xff]  ;;  %v13238_v52 = vrot.slane %v1991_v51, %v10972_v8  ;;  %v13271_v51 = vrot.slane %v2075_v11, %v10972_v8 }
 0x110   : > { %9753 = vmatprep.mubr.msk.f32.mxu0 %vm10873_vm1, %v15553_v47  ;;  %v1988_v22 = vrot.slane %v1974_v4, %v10972_v8  ;;  %v2025_v49 = vcombine.low %v15834_v28, %v15833_v46  ;;  %v8731_v4 = vcombine.high %v15693_v18, %v15830_v5  ;;  %v2109_v5 = vcombine.low %v15742_v12, %v15750_v26 }
 0x111   : > { %9470 = vmatmul.mubr.msk.f32.gmra.mrb[14].mxu1 %vm1538_vm2, %v1904_v45  ;;  %v13209_v9 = vrot.slane %v1990_v6, %v10972_v8  ;;  %v15832_v45 = vld [vmem:[#allocation78_spill] sm:$0xff]  ;;  %v13226_v6 = vrot.slane %v1956_v24, %v10972_v8 }
 0x112   : > { %9472 = vmatprep.mubr.msk.f32.mxu1 %vm10873_vm1, %v15553_v47  ;;  %v2041_v38 = vcombine.low %v15832_v45, %v15831_v57  ;;  %v15835_v57 = vld [vmem:[#allocation76_spill] sm:$0xff]  ;;  %v15836_v45 = vld [vmem:[#allocation87_spill] sm:$0xff] }
 0x113   : > { %9754 = vmatmul.mubr.msk.f32.gmra.mrb[14].mxu0 %vm1538_vm2, %v13171_v29  ;;  %v2059_v30 = vcombine.low %v15836_v45, %v15835_v57 }
 0x114   : > { %9756 = vmatprep.mubr.msk.f32.mxu0 %vm10873_vm1, %v15553_v47  ;;  %v13247_v16 = vrot.slane %v2041_v38, %v10972_v8 }
 0x115   : > { %9473 = vmatmul.mubr.msk.f32.gmra.mrb[16].mxu1 %vm1538_vm2, %v1921_v32  ;;  %v15837_v32 = vld [vmem:[#allocation97_spill] sm:$0xff]  ;;  %v13268_v45 = vrot.slane %v2059_v30, %v10972_v8  ;;  %v13285_v30 = vrot.slane %v2109_v5, %v10972_v8 }
 0x116   : > { %9475 = vmatprep.mubr.msk.f32.mxu1 %vm10873_vm1, %v15553_v47  ;;  %v2093_v24 = vcombine.low %v15837_v32, %v15748_v36  ;;  %v13257_v36 = vcombine.low %v1988_v22, %v13209_v9  ;;  %v4124_v32 = vrot.slane %v8731_v4, %v10972_v8 }
 0x117   : > { %9757 = vmatmul.mubr.msk.f32.gmra.mrb[16].mxu0 %vm1538_vm2, %v4114_v19  ;;  %v13250_v19 = vrot.slane %v2025_v49, %v10972_v8  ;;  %v15838_v49 = vld [vmem:[#allocation71_spill] sm:$0xff] }
 0x118   : > { %9759 = vmatprep.mubr.msk.f32.mxu0 %vm10873_vm1, %v15553_v47  ;;  %v2008_v26 = vcombine.low %v15839_v56, %v15838_v49  ;;  %v13282_v56 = vrot.slane %v2093_v24, %v10972_v8  ;;  %v4125_v4 = vcombine.low %v4124_v32, %v13220_v61  ;;  %v15844_v32 = vld [vmem:[#allocation84_spill] sm:$0xff] }
 0x119   : > { %9476 = vmatmul.mubr.msk.f32.gmra.mrb[18].mxu1 %vm1538_vm2, %v1938_v31  ;;  %v15841_v31 = vld [vmem:[#allocation69_spill] sm:$0xff] }
 0x11a   : > { %9478 = vmatprep.mubr.msk.f32.mxu1 %vm10873_vm1, %v15553_v47  ;;  %v2024_v38 = vcombine.low %v15841_v31, %v15840_v48  ;;  %v1972_v48 = vcombine.low %v13226_v6, %v1971_v59  ;;  %v2022_v24 = vrot.slane %v2008_v26, %v10972_v8  ;;  %v15842_v31 = vld [vmem:[#allocation67_spill] sm:$0xff]  ;;  %v1989_v59 = vcombine.low %v13187_v21, %v1988_v22 }
 0x11b   : > { %9760 = vmatmul.mubr.msk.f32.gmra.mrb[18].mxu0 %vm1538_vm2, %v13216_v10  ;;  %v4127_v11 = vcombine.low %v15834_v28, %v15842_v31  ;;  %v15845_v31 = vld [vmem:[#allocation83_spill] sm:$0xff]  ;;  %v15846_v28 = vld [vmem:[#allocation80_spill] sm:$0xff]  ;;  %v2006_v22 = vcombine.low %v13209_v9, %v13238_v52 }
 0x11c   : > { %9762 = vmatprep.mubr.msk.f32.mxu0 %vm10873_vm1, %v15553_v47  ;;  %v2032_v5 = vrot.slane %v2024_v38, %v10972_v8  ;;  %v2058_v46 = vcombine.low %v15846_v28, %v15845_v31  ;;  %v8732_v28 = vcombine.high %v15835_v57, %v15732_v2  ;;  %v2023_v9 = vcombine.low %v13220_v61, %v2022_v24  ;;  %v15849_v2 = vld [vmem:[#allocation94_spill] sm:$0xff] }
 0x11d   : > { %9479 = vmatmul.mubr.msk.f32.gmra.mrb[20].mxu1 %vm1538_vm2, %v1955_v62  ;;  %v15843_v62 = vld [vmem:[#allocation75_spill] sm:$0xff]  ;;  %v4134_v38 = vrot.slane %v4127_v11, %v10972_v8 }
 0x11e   : > { %9481 = vmatprep.mubr.msk.f32.mxu1 %vm10873_vm1, %v15553_v47  ;;  %v2042_v49 = vcombine.low %v15844_v32, %v15843_v62  ;;  %v13311_v26 = vcombine.low %v2022_v24, %v2032_v5  ;;  %v2066_v11 = vrot.slane %v2058_v46, %v10972_v8  ;;  %v4144_v46 = vrot.slane %v8732_v28, %v10972_v8  ;;  %v15850_v32 = vld [vmem:[#allocation88_spill] sm:$0xff] }
 0x11f   : > { %9763 = vmatmul.mubr.msk.f32.gmra.mrb[20].mxu0 %vm1538_vm2, %v13257_v36  ;;  %v2040_v31 = vcombine.low %v2032_v5, %v13250_v19  ;;  %v15851_v28 = vld [vmem:[#allocation92_spill] sm:$0xff] }
 0x120   : > { %9765 = vmatprep.mubr.msk.f32.mxu0 %vm10873_vm1, %v15553_v47  ;;  %v2056_v21 = vrot.slane %v2042_v49, %v10972_v8  ;;  %v15847_v49 = vld [vmem:[#allocation96_spill] sm:$0xff] }
 0x121   : > { %9482 = vmatmul.mubr.msk.f32.gmra.mrb[22].mxu1 %vm1538_vm2, %v1972_v48  ;;  %v15848_v48 = vld [vmem:[#allocation90_spill] sm:$0xff] }
 0x122   : > { %9484 = vmatprep.mubr.msk.f32.mxu1 %vm10873_vm1, %v15553_v47  ;;  %v13339_v62 = vcombine.low %v2056_v21, %v2066_v11  ;;  %v2057_v5 = vcombine.low %v13247_v16, %v2056_v21 }
 0x123   : > { %9766 = vmatmul.mubr.msk.f32.gmra.mrb[22].mxu0 %vm1538_vm2, %v4125_v4  ;;  %v4135_v4 = vcombine.low %v4134_v38, %v13247_v16  ;;  %v2092_v38 = vcombine.low %v15850_v32, %v15849_v2  ;;  %v15854_v32 = vld [vmem:[#allocation108_spill] sm:$0xff] }
 0x124   : > { %9768 = vmatprep.mubr.msk.f32.mxu0 %vm10873_vm1, %v15553_v47 }
 0x125   : > { %9485 = vmatmul.mubr.msk.f32.gmra.mrb[24].mxu1 %vm1538_vm2, %v1989_v59  ;;  %v2076_v59 = vcombine.low %v15848_v48, %v15847_v49  ;;  %v4147_v49 = vcombine.low %v15742_v12, %v15851_v28  ;;  %v15853_v48 = vld [vmem:[#allocation104_spill] sm:$0xff] }
 0x126   : > { %9487 = vmatprep.mubr.msk.f32.mxu1 %vm10873_vm1, %v15553_v47 }
 0x127   : > { %9769 = vmatmul.mubr.msk.f32.gmra.mrb[24].mxu0 %vm1538_vm2, %v13311_v26  ;;  %v2090_v24 = vrot.slane %v2076_v59, %v10972_v8  ;;  %v4154_v2 = vrot.slane %v4147_v49, %v10972_v8 }
 0x128   : > { %9771 = vmatprep.mubr.msk.f32.mxu0 %vm10873_vm1, %v15553_v47 }
 0x129   : > { %9488 = vmatmul.mubr.msk.f32.gmra.mrb[26].mxu1 %vm1538_vm2, %v2006_v22  ;;  %v4145_v22 = vcombine.low %v13268_v45, %v4144_v46  ;;  %v4155_v49 = vcombine.low %v13282_v56, %v4154_v2 }
 0x12a   : > { %9490 = vmatprep.mubr.msk.f32.mxu1 %vm10873_vm1, %v15553_v47 }
 0x12b   : > { %9772 = vmatmul.mubr.msk.f32.gmra.mrb[26].mxu0 %vm1538_vm2, %v4135_v4  ;;  %v2100_v4 = vrot.slane %v2092_v38, %v10972_v8  ;;  %v2126_v38 = vcombine.low %v15854_v32, %v15756_v27  ;;  %v15856_v27 = vld [vmem:[#allocation100_spill] sm:$0xff] }
 0x12c   : > { %9774 = vmatprep.mubr.msk.f32.mxu0 %vm10873_vm1, %v15553_v47 }
 0x12d   : > { %9491 = vmatmul.mubr.msk.f32.gmra.mrb[28].mxu1 %vm1538_vm2, %v2023_v9  ;;  %v15852_v9 = vld [vmem:[#allocation103_spill] sm:$0xff]  ;;  %v13366_v46 = vcombine.low %v2090_v24, %v2100_v4 }
 0x12e   : > { %9493 = vmatprep.mubr.msk.f32.mxu1 %vm10873_vm1, %v15553_v47  ;;  %v2110_v59 = vcombine.low %v15853_v48, %v15852_v9  ;;  %v2134_v9 = vrot.slane %v2126_v38, %v10972_v8  ;;  %v15857_v48 = vld [vmem:[#allocation113_spill] sm:$0xff] }
 0x12f   : > { %9775 = vmatmul.mubr.msk.f32.gmra.mrb[28].mxu0 %vm1538_vm2, %v13339_v62 }
 0x130   : > { %9777 = vmatprep.mubr.msk.f32.mxu0 %vm10873_vm1, %v15553_v47  ;;  %v2124_v21 = vrot.slane %v2110_v59, %v10972_v8  ;;  %v15858_v59 = vld [vmem:[#allocation114_spill] sm:$0xff] }
 0x131   : > { %9494 = vmatmul.mubr.msk.f32.gmra.mrb[30].mxu1 %vm1538_vm2, %v2040_v31  ;;  %v2074_v31 = vcombine.low %v2066_v11, %v13268_v45  ;;  %v2091_v11 = vcombine.low %v13271_v51, %v2090_v24  ;;  %v8733_v2 = vcombine.high %v15856_v27, %v15858_v59 }
 0x132   : > { %9496 = vmatprep.mubr.msk.f32.mxu1 %vm10873_vm1, %v15553_v47  ;;  %v13396_v32 = vcombine.low %v2124_v21, %v2134_v9 }
 0x133   : > { %9778 = vmatmul.mubr.msk.f32.gmra.mrb[30].mxu0 %vm1538_vm2, %v4145_v22  ;;  %v15855_v22 = vld [vmem:[#allocation112_spill] sm:$0xff]  ;;  %v4166_v24 = vrot.slane %v8733_v2, %v10972_v8 }
 0x134   : > { %9780 = vmatprep.mubr.msk.f32.mxu0 %vm10873_vm1, %v15553_v47  ;;  %v2127_v28 = vcombine.low %v15855_v22, %v15761_v37  ;;  %v4159_v22 = vcombine.low %v15770_v44, %v15771_v50  ;;  %v4176_v50 = vcombine.low %v15780_v14, %v15781_v58  ;;  %v2125_v44 = vcombine.low %v13285_v30, %v2124_v21 }
 0x135   : > { %9497 = vmatmul.mubr.msk.f32.gmra.mrb[32].mxu1 %vm1538_vm2, %v2057_v5  ;;  %v2143_v5 = vcombine.low %v15857_v48, %v15856_v27  ;;  %v2397_v58 = vcombine.low %v11857_v39, %v11029_v33  ;;  %v2398_v21 = vcombine.low %v11865_v20, %v13034_v23  ;;  %v8650_v20 = vcombine.high %v13034_v23, %v15807_v60  ;;  %v417_v23 = vld [vmem:[%s15229_s2 + $0x1c] sm:$0xf]  ;;  %v15860_v60 = vld [vmem:[#allocation18_spill] sm:$0xff] }
 0x136   : > { %9499 = vmatprep.mubr.msk.f32.mxu1 %vm10873_vm1, %v15553_v47  ;;  %v2141_v37 = vrot.slane %v2127_v28, %v10972_v8  ;;  %v15859_v28 = vld [vmem:[#allocation122_spill] sm:$0xff] }
 0x137   : > { %9781 = vmatmul.mubr.msk.f32.gmra.mrb[32].mxu0 %vm1538_vm2, %v13366_v46  ;;  %v2150_v38 = vrot.slane %v2143_v5, %v10972_v8  ;;  %v13415_v5 = vrot.slane %v4159_v22, %v10972_v8  ;;  %v4192_v22 = vcombine.low %v12932_v15, %v12936_v42  ;;  %v2405_v33 = vrot.slane %v2397_v58, %v10972_v8 }
 0x138   : > { %9783 = vmatprep.mubr.msk.f32.mxu0 %vm10873_vm1, %v15553_v47  ;;  %v2142_v14 = vcombine.low %v2134_v9, %v2141_v37  ;;  %v2412_v39 = vrot.slane %v2398_v21, %v10972_v8  ;;  %v15877_v21 = vcombine.low %v13238_v52, %v13220_v61  ;;  %v15879_v61 = vld [vmem:[#allocation73_spill] sm:$0xff] }
 0x139   : > { %9500 = vmatmul.mubr.msk.f32.gmra.mrb[34].mxu1 %vm1538_vm2, %v2074_v31  ;;  %v2108_v31 = vcombine.low %v2100_v4, %v13282_v56  ;;  %v13412_v48 = vcombine.low %v2141_v37, %v2150_v38  ;;  %v4199_v42 = vrot.slane %v4192_v22, %v10972_v8  ;;  %v2422_v37 = vrot.slane %v8650_v20, %v10972_v8  ;;  %v15880_v22 = vld [vmem:[#allocation74_spill] sm:$0xff] }
 0x13a   : > { %9502 = vmatprep.mubr.msk.f32.mxu1 %vm10873_vm1, %v15553_v47  ;;  %v2413_v9 = vcombine.low %v2405_v33, %v2412_v39  ;;  %v15881_v33 = vld [vmem:[#allocation62_spill] sm:$0xff]  ;;  %v15882_v20 = vcombine.low %v13250_v19, %v13247_v16 }
 0x13b   : > { %9784 = vmatmul.mubr.msk.f32.gmra.mrb[34].mxu0 %vm1538_vm2, %v4155_v49  ;;  %v4175_v49 = vcombine.low %v15859_v28, %v15778_v43  ;;  %v4174_v43 = vcombine.low %v4166_v24, %v13415_v5  ;;  %v2430_v24 = vcombine.low %v2422_v37, %v15860_v60  ;;  %v15862_v28 = vcombine.low %v13068_v13, %v13050_v25  ;;  %v15864_v25 = vld [vmem:[#allocation22_spill] sm:$0xff] }
 0x13c   : > { %9786 = vmatprep.mubr.msk.f32.mxu0 %vm10873_vm1, %v15553_v47  ;;  %v8653_v39 = vcombine.high %v15881_v33, %v15880_v22  ;;  %v15883_v16 = vld [vmem:[#allocation86_spill] sm:$0xff]  ;;  %v15896_v22 = vld [vmem:[#allocation127_spill] sm:$0xff] }
 0x13d   : > { %9503 = vmatmul.mubr.msk.f32.gmra.mrb[36].mxu1 %vm1538_vm2, %v2091_v11  ;;  %v4183_v4 = vrot.slane %v4175_v49, %v10972_v8  ;;  %v4190_v11 = vrot.slane %v4176_v50, %v10972_v8  ;;  %v8651_v50 = vcombine.high %v11076_v55, %v15814_v40  ;;  %v15866_v55 = vld [vmem:[#allocation30_spill] sm:$0xff] }
 0x13e   : > { %9505 = vmatprep.mubr.msk.f32.mxu1 %vm10873_vm1, %v15553_v47  ;;  %v15884_v19 = vld [vmem:[#allocation82_spill] sm:$0xff] }
 0x13f   : > { %9787 = vmatmul.mubr.msk.f32.gmra.mrb[36].mxu0 %vm1538_vm2, %v13396_v32  ;;  %v13440_v2 = vcombine.low %v4183_v4, %v4190_v11  ;;  %v15869_v4 = vcombine.low %v13126_v1, %v13190_v34  ;;  %v15871_v1 = vld [vmem:[#allocation41_spill] sm:$0xff]  ;;  %v15872_v11 = vcombine.low %v13174_v0, %v13226_v6  ;;  %v15873_v0 = vld [vmem:[#allocation54_spill] sm:$0xff] }
 0x140   : > { %9789 = vmatprep.mubr.msk.f32.mxu0 %vm10873_vm1, %v15553_v47 }
 0x141   : > { %9506 = vmatmul.mubr.msk.f32.gmra.mrb[38].mxu1 %vm1538_vm2, %v2108_v31 }
 0x142   : > { %9508 = vmatprep.mubr.msk.f32.mxu1 %vm10873_vm1, %v15553_v47 }
 0x143   : > { %9790 = vmatmul.mubr.msk.f32.gmra.mrb[38].mxu0 %vm1538_vm2, %v13412_v48 }
 0x144   : > { %9792 = vmatprep.mubr.msk.f32.mxu0 %vm10873_vm1, %v15553_v47 }
 0x145   : > { %9509 = vmatmul.mubr.msk.f32.gmra.mrb[40].mxu1 %vm1538_vm2, %v2125_v44  ;;  %v15865_v44 = vcombine.low %v13131_v63, %v13092_v35  ;;  %v15867_v35 = vld [vmem:[#allocation28_spill] sm:$0xff]  ;;  %v15868_v63 = vld [vmem:[#allocation29_spill] sm:$0xff] }
 0x146   : > { %9511 = vmatprep.mubr.msk.f32.mxu1 %vm10873_vm1, %v15553_v47 }
 0x147   : > { %9793 = vmatmul.mubr.msk.f32.gmra.mrb[40].mxu0 %vm1538_vm2, %v4174_v43  ;;  %v2517_v43 = vcombine.low %v15812_v17, %v15868_v63  ;;  %v15870_v17 = vld [vmem:[#allocation40_spill] sm:$0xff] }
 0x148   : > { %9795 = vmatprep.mubr.msk.f32.mxu0 %vm10873_vm1, %v15553_v47 }
 0x149   : > { %9512 = vmatmul.mubr.msk.f32.gmra.mrb[42].mxu1 %vm1538_vm2, %v2142_v14  ;;  %v15876_v14 = vld [vmem:[#allocation45_spill] sm:$0xff] }
 0x14a   : > { %9514 = vmatprep.mubr.msk.f32.mxu1 %vm10873_vm1, %v15553_v47  ;;  %v2601_v58 = vcombine.low %v15693_v18, %v15876_v14  ;;  %v15878_v18 = vld [vmem:[#allocation70_spill] sm:$0xff] }
 0x14b   : > { %9796 = vmatmul.mubr.msk.f32.gmra.mrb[42].mxu0 %vm1538_vm2, %v13440_v2 }
 0x14c   : > { %9798 = vmatprep.mubr.msk.f32.mxu0 %vm10873_vm1, %v15553_v47 }
 0x14d   : > { %9515 = vmatmul.mubr.msk.f32.gmra.mrb[44].mxu1 %vm1538_vm2, %v2150_v38  ;;  %v15861_v38 = vld [vmem:[#allocation132_spill] sm:$0xff] }
 0x14e   : > { %9522 = vmatprep.mubr.msk.f32.mxu1 %vm10873_vm1, %v15553_v47  ;;  %v2448_v31 = vcombine.low %v13011_v3, %v15861_v38  ;;  %v15863_v3 = vld [vmem:[#allocation20_spill] sm:$0xff] }
 0x14f   : > { %9799 = vmatmul.mubr.msk.f32.gmra.mrb[44].mxu0 %vm1538_vm2, %v4199_v42 }
 0x150   : > { %9803 = vmatprep.mubr.msk.f32.mxu0 %vm10873_vm1, %v15553_v47  ;;  %v2456_v49 = vrot.slane %v2448_v31, %v10972_v8 }
 0x151   : > { %9523 = vmatmul.mubr.msk.f32.vlgmr.msra.gmra.mrb[2].mxu1 %vm1538_vm2, %v2413_v9  ;;  %v15885_v9 = vld [vmem:[#allocation146_spill] sm:$0xff] }
 0x152   : > { %9525 = vmatprep.mubr.msk.f32.mxu1 %vm10873_vm1, %v15553_v47  ;;  %v2464_v13 = vcombine.low %v2456_v49, %v15864_v25  ;;  %v2670_v37 = vcombine.low %v15835_v57, %v15885_v9  ;;  %v407_v57 = vld [vmem:[%s11400_s11 + $0x48] sm:$0xff]  ;;  %v408_v49 = vld [vmem:[%s11400_s11 + $0x50] sm:$0xff] }
 0x153   : > { %9804 = vmatmul.mubr.msk.f32.vlgmr.msra.gmra.mrb[0].mxu0 %vm1538_vm2, %v15862_v28  ;;  %v4455_v31 = vcombine.high %v407_v57, %v407_v57  ;;  %v13651_v28 = vrot.slane %v407_v57, %v10972_v8 }
 0x154   : > { %9873 = vmatpush3.msk.msra.mxu0 %vm1585_vm0, %v417_v23  ;;  %9806 = vmatprep.mubr.msk.f32.mxu0 %vm10873_vm1, %v15553_v47  ;;  %v15886_v23 = vcombine.low %v13268_v45, %v13271_v51  ;;  %v15887_v45 = vld [vmem:[#allocation98_spill] sm:$0xff]  ;;  %v15888_v51 = vld [vmem:[#allocation95_spill] sm:$0xff] }
 0x155   : > { %9943 = vmatprep.subr.mxu0 %v15553_v47  ;;  %9526 = vmatmul.mubr.msk.f32.gmra.mrb[4].mxu1 %vm1538_vm2, %v2430_v24  ;;  %v15889_v24 = vld [vmem:[#allocation118_spill] sm:$0xff] }
 0x156   : > { %9528 = vmatprep.mubr.msk.f32.mxu1 %vm10873_vm1, %v15553_v47  ;;  %v4504_v38 = vcombine.low %v15858_v59, %v15889_v24 }
 0x157   : > { %9807 = vmatmul.mubr.msk.f32.gmra.mrb[2].mxu0 %vm1538_vm2, %v13098_v41  ;;  %v13507_v41 = vrot.slane %v8651_v50, %v10972_v8  ;;  %v4472_v50 = vcombine.high %v408_v49, %v408_v49 }
 0x158   : > { %9809 = vmatprep.mubr.msk.f32.mxu0 %vm10873_vm1, %v15553_v47  ;;  %v4511_v59 = vrot.slane %v4504_v38, %v10972_v8  ;;  %v15904_v38 = vld [vmem:[#allocation50_spill] sm:$0xff] }
 0x159   : > { %9529 = vmatmul.mubr.msk.f32.gmra.mrb[6].mxu1 %vm1538_vm2, %v15863_v3  ;;  %v2498_v40 = vcombine.low %v15867_v35, %v13507_v41  ;;  %v13665_v3 = vrot.slane %v4455_v31, %v10972_v8  ;;  %v15905_v31 = vld [vmem:[#allocation138_spill] sm:$0xff] }
 0x15a   : > { %9531 = vmatprep.mubr.msk.f32.mxu1 %vm10873_vm1, %v15553_v47 }
 0x15b   : > { %9810 = vmatmul.mubr.msk.f32.gmra.mrb[4].mxu0 %vm1538_vm2, %v15865_v44  ;;  %v13678_v44 = vrot.slane %v408_v49, %v10972_v8  ;;  %v15906_v49 = vld [vmem:[#allocation140_spill] sm:$0xff] }
 0x15c   : > { %9812 = vmatprep.mubr.msk.f32.mxu0 %vm10873_vm1, %v15553_v47 }
 0x15d   : > { %9532 = vmatmul.mubr.msk.f32.gmra.mrb[8].mxu1 %vm1538_vm2, %v2464_v13  ;;  %v13669_v13 = vcombine.high %v13651_v28, %v13651_v28 }
 0x15e   : > { %9534 = vmatprep.mubr.msk.f32.mxu1 %vm10873_vm1, %v15553_v47 }
 0x15f   : > { %9813 = vmatmul.mubr.msk.f32.gmra.mrb[6].mxu0 %vm1538_vm2, %v13134_v54  ;;  %v13531_v54 = vrot.slane %v2517_v43, %v10972_v8  ;;  %v13701_v43 = vrot.slane %v4472_v50, %v10972_v8  ;;  %v15909_v50 = vld [vmem:[#allocation141_spill] sm:$0xff] }
 0x160   : > { %9815 = vmatprep.mubr.msk.f32.mxu0 %vm10873_vm1, %v15553_v47 }
 0x161   : > { %9535 = vmatmul.mubr.msk.f32.gmra.mrb[10].mxu1 %vm1538_vm2, %v15866_v55  ;;  %v2532_v34 = vcombine.low %v15871_v1, %v13531_v54  ;;  %v4512_v55 = vcombine.low %v4511_v59, %v13415_v5  ;;  %v13698_v5 = vcombine.high %v13665_v3, %v13665_v3  ;;  %v15907_v59 = vld [vmem:[#allocation139_spill] sm:$0xff] }
 0x162   : > { %9537 = vmatprep.mubr.msk.f32.mxu1 %vm10873_vm1, %v15553_v47 }
 0x163   : > { %9816 = vmatmul.mubr.msk.f32.gmra.mrb[8].mxu0 %vm1538_vm2, %v15869_v4  ;;  %v15893_v4 = vld [vmem:[#allocation115_spill] sm:$0xff] }
 0x164   : > { %9818 = vmatprep.mubr.msk.f32.mxu0 %vm10873_vm1, %v15553_v47 }
 0x165   : > { %9538 = vmatmul.mubr.msk.f32.gmra.mrb[12].mxu1 %vm1538_vm2, %v2498_v40  ;;  %v15892_v40 = vld [vmem:[#allocation110_spill] sm:$0xff] }
 0x166   : > { %9540 = vmatprep.mubr.msk.f32.mxu1 %vm10873_vm1, %v15553_v47 }
 0x167   : > { %9819 = vmatmul.mubr.msk.f32.gmra.mrb[10].mxu0 %vm1538_vm2, %v13171_v29  ;;  %v8652_v29 = vcombine.high %v15821_v7, %v15829_v53  ;;  %v15875_v7 = vld [vmem:[#allocation64_spill] sm:$0xff] }
 0x168   : > { %9821 = vmatprep.mubr.msk.f32.mxu0 %vm10873_vm1, %v15553_v47 }
 0x169   : > { %9541 = vmatmul.mubr.msk.f32.gmra.mrb[14].mxu1 %vm1538_vm2, %v15870_v17  ;;  %v13563_v6 = vrot.slane %v8652_v29, %v10972_v8  ;;  %v15894_v17 = vld [vmem:[#allocation117_spill] sm:$0xff]  ;;  %v4530_v29 = vcombine.low %v13698_v5, %v13678_v44 }
 0x16a   : > { %9543 = vmatprep.mubr.msk.f32.mxu1 %vm10873_vm1, %v15553_v47 }
 0x16b   : > { %9822 = vmatmul.mubr.msk.f32.gmra.mrb[12].mxu0 %vm1538_vm2, %v15872_v11  ;;  %v2583_v53 = vcombine.low %v13563_v6, %v15875_v7 }
 0x16c   : > { %9824 = vmatprep.mubr.msk.f32.mxu0 %vm10873_vm1, %v15553_v47 }
 0x16d   : > { %9544 = vmatmul.mubr.msk.f32.gmra.mrb[16].mxu1 %vm1538_vm2, %v2532_v34 }
 0x16e   : > { %9546 = vmatprep.mubr.msk.f32.mxu1 %vm10873_vm1, %v15553_v47 }
 0x16f   : > { %9825 = vmatmul.mubr.msk.f32.gmra.mrb[14].mxu0 %vm1538_vm2, %v13216_v10  ;;  %v15874_v10 = vld [vmem:[#allocation63_spill] sm:$0xff] }
 0x170   : > { %9827 = vmatprep.mubr.msk.f32.mxu0 %vm10873_vm1, %v15553_v47 }
 0x171   : > { %9547 = vmatmul.mubr.msk.f32.gmra.mrb[18].mxu1 %vm1538_vm2, %v15873_v0 }
 0x172   : > { %9549 = vmatprep.mubr.msk.f32.mxu1 %vm10873_vm1, %v15553_v47 }
 0x173   : > { %9828 = vmatmul.mubr.msk.f32.gmra.mrb[16].mxu0 %vm1538_vm2, %v13257_v36  ;;  %v13587_v36 = vrot.slane %v2601_v58, %v10972_v8 }
 0x174   : > { %9830 = vmatprep.mubr.msk.f32.mxu0 %vm10873_vm1, %v15553_v47 }
 0x175   : > { %9550 = vmatmul.mubr.msk.f32.gmra.mrb[20].mxu1 %vm1538_vm2, %v15874_v10  ;;  %v2617_v52 = vcombine.low %v13587_v36, %v15879_v61  ;;  %v13727_v10 = vcombine.high %v13701_v43, %v13701_v43 }
 0x176   : > { %9552 = vmatprep.mubr.msk.f32.mxu1 %vm10873_vm1, %v15553_v47 }
 0x177   : > { %9831 = vmatmul.mubr.msk.f32.gmra.mrb[18].mxu0 %vm1538_vm2, %v15877_v21  ;;  %v4538_v21 = vrot.slane %v4530_v29, %v10972_v8 }
 0x178   : > { %9833 = vmatprep.mubr.msk.f32.mxu0 %vm10873_vm1, %v15553_v47 }
 0x179   : > { %9553 = vmatmul.mubr.msk.f32.gmra.mrb[22].mxu1 %vm1538_vm2, %v2583_v53  ;;  %v15895_v53 = vld [vmem:[#allocation109_spill] sm:$0xff] }
 0x17a   : > { %9555 = vmatprep.mubr.msk.f32.mxu1 %vm10873_vm1, %v15553_v47  ;;  %v2754_v14 = vcombine.low %v15856_v27, %v15895_v53  ;;  %v15915_v53 = vld [vmem:[#allocation145_spill] sm:$0xff] }
 0x17b   : > { %9834 = vmatmul.mubr.msk.f32.gmra.mrb[20].mxu0 %vm1538_vm2, %v13311_v26  ;;  %v13611_v26 = vrot.slane %v8653_v39, %v10972_v8 }
 0x17c   : > { %9836 = vmatprep.mubr.msk.f32.mxu0 %vm10873_vm1, %v15553_v47  ;;  %v13745_v27 = vrot.slane %v2754_v14, %v10972_v8 }
 0x17d   : > { %9556 = vmatmul.mubr.msk.f32.gmra.mrb[24].mxu1 %vm1538_vm2, %v15878_v18  ;;  %v2651_v42 = vcombine.low %v15884_v19, %v13611_v26 }
 0x17e   : > { %9558 = vmatprep.mubr.msk.f32.mxu1 %vm10873_vm1, %v15553_v47 }
 0x17f   : > { %9837 = vmatmul.mubr.msk.f32.gmra.mrb[22].mxu0 %vm1538_vm2, %v15882_v20  ;;  %v418_v20 = vld [vmem:[%s15229_s2 + $0x20] sm:$0xf] }
 0x180   : > { %9839 = vmatprep.mubr.msk.f32.mxu0 %vm10873_vm1, %v15553_v47 }
 0x181   : > { %9559 = vmatmul.mubr.msk.f32.gmra.mrb[26].mxu1 %vm1538_vm2, %v2617_v52  ;;  %v13740_v52 = vld.sshfl [vmem:[%s11400_s11 + $0x58] sm:$0x33 pattern:$0x76325410] }
 0x182   : > { %9561 = vmatprep.mubr.msk.f32.mxu1 %vm10873_vm1, %v15553_v47  ;;  %v4547_v33 = vcombine.low %v13727_v10, %v13740_v52 }
 0x183   : > { %9840 = vmatmul.mubr.msk.f32.gmra.mrb[24].mxu0 %vm1538_vm2, %v13339_v62  ;;  %v13635_v62 = vrot.slane %v2670_v37, %v10972_v8  ;;  %v15900_v37 = vld [vmem:[#allocation135_spill] sm:$0xff] }
 0x184   : > { %9842 = vmatprep.mubr.msk.f32.mxu0 %vm10873_vm1, %v15553_v47  ;;  %v4554_v39 = vrot.slane %v4547_v33, %v10972_v8 }
 0x185   : > { %9562 = vmatmul.mubr.msk.f32.gmra.mrb[28].mxu1 %vm1538_vm2, %v15883_v16  ;;  %v2685_v60 = vcombine.low %v15888_v51, %v13635_v62  ;;  %v15897_v16 = vld [vmem:[#allocation133_spill] sm:$0xff] }
 0x186   : > { %9564 = vmatprep.mubr.msk.f32.mxu1 %vm10873_vm1, %v15553_v47 }
 0x187   : > { %9843 = vmatmul.mubr.msk.f32.gmra.mrb[26].mxu0 %vm1538_vm2, %v15886_v23  ;;  %v15901_v23 = vld [vmem:[#allocation134_spill] sm:$0xff] }
 0x188   : > { %9845 = vmatprep.mubr.msk.f32.mxu0 %vm10873_vm1, %v15553_v47  ;;  %v4815_v57 = vcombine.low %v15901_v23, %v15900_v37  ;;  %v15924_v23 = vld [vmem:[#allocation153_spill] sm:$0xff] }
 0x189   : > { %9565 = vmatmul.mubr.msk.f32.gmra.mrb[30].mxu1 %vm1538_vm2, %v2651_v42  ;;  %v15898_v42 = vld [vmem:[#allocation31_spill] sm:$0xff] }
 0x18a   : > { %9567 = vmatprep.mubr.msk.f32.mxu1 %vm10873_vm1, %v15553_v47  ;;  %v15899_v9 = vcombine.low %v15897_v16, %v15898_v42  ;;  %v15922_v42 = vld [vmem:[#allocation106_spill] sm:$0xff] }
 0x18b   : > { %9846 = vmatmul.mubr.msk.f32.gmra.mrb[28].mxu0 %vm1538_vm2, %v13366_v46  ;;  %v15890_v46 = vcombine.low %v13282_v56, %v13285_v30  ;;  %v15891_v56 = vld [vmem:[#allocation99_spill] sm:$0xff] }
 0x18c   : > { %9848 = vmatprep.mubr.msk.f32.mxu0 %vm10873_vm1, %v15553_v47  ;;  %v8654_v30 = vcombine.high %v15742_v12, %v15891_v56  ;;  %v4513_v12 = vcombine.low %v12932_v15, %v13651_v28  ;;  %v13705_v15 = vcombine.high %v13678_v44, %v13678_v44  ;;  %v4818_v56 = vcombine.low %v15907_v59, %v15906_v49  ;;  %v15929_v49 = vld [vmem:[#allocation157_spill] sm:$0xff] }
 0x18d   : > { %9568 = vmatmul.mubr.msk.f32.gmra.mrb[32].mxu1 %vm1538_vm2, %v15887_v45  ;;  %v15902_v45 = vld [vmem:[#allocation137_spill] sm:$0xff] }
 0x18e   : > { %9570 = vmatprep.mubr.msk.f32.mxu1 %vm10873_vm1, %v15553_v47  ;;  %v13690_v63 = vrot.slane %v8654_v30, %v10972_v8  ;;  %v4531_v0 = vcombine.low %v13705_v15, %v13701_v43  ;;  %v15908_v30 = vld [vmem:[#allocation65_spill] sm:$0xff] }
 0x18f   : > { %9849 = vmatmul.mubr.msk.f32.gmra.mrb[30].mxu0 %vm1538_vm2, %v15890_v46  ;;  %v4817_v46 = vcombine.low %v15905_v31, %v15904_v38  ;;  %v4788_v31 = vrot.slane %v13669_v13, 7 }
 0x190   : > { %9851 = vmatprep.mubr.msk.f32.mxu0 %vm10873_vm1, %v15553_v47  ;;  %v2736_v34 = vcombine.low %v13690_v63, %v15894_v17  ;;  %v4545_v18 = vrot.slane %v4531_v0, %v10972_v8  ;;  %v15914_v0 = vld [vmem:[#allocation147_spill] sm:$0xff] }
 0x191   : > { %9571 = vmatmul.mubr.msk.f32.gmra.mrb[34].mxu1 %vm1538_vm2, %v2685_v60  ;;  %v15903_v60 = vld [vmem:[#allocation136_spill] sm:$0xff]  ;;  %v4822_v14 = vcombine.low %v15915_v53, %v15914_v0  ;;  %v4797_v0 = vrot.slane %v13678_v44, 7 }
 0x192   : > { %9573 = vmatprep.mubr.msk.f32.mxu1 %vm10873_vm1, %v15553_v47  ;;  %v4816_v24 = vcombine.low %v15903_v60, %v15902_v45  ;;  %v15926_v60 = vld [vmem:[#allocation155_spill] sm:$0xff] }
 0x193   : > { %9852 = vmatmul.mubr.msk.f32.gmra.mrb[32].mxu0 %vm1538_vm2, %v13396_v32  ;;  %v4514_v32 = vcombine.low %v13669_v13, %v13665_v3  ;;  %v15935_v13 = vld [vmem:[#allocation160_spill] sm:$0xff] }
 0x194   : > { %9854 = vmatprep.mubr.msk.f32.mxu0 %vm10873_vm1, %v15553_v47 }
 0x195   : > { %9574 = vmatmul.mubr.msk.f32.gmra.mrb[36].mxu1 %vm1538_vm2, %v15892_v40  ;;  %v4528_v11 = vrot.slane %v4514_v32, %v10972_v8  ;;  %v15910_v40 = vld [vmem:[#allocation142_spill] sm:$0xff] }
 0x196   : > { %9576 = vmatprep.mubr.msk.f32.mxu1 %vm10873_vm1, %v15553_v47 }
 0x197   : > { %9855 = vmatmul.mubr.msk.f32.gmra.mrb[34].mxu0 %vm1538_vm2, %v13412_v48  ;;  %v4521_v48 = vrot.slane %v4513_v12, %v10972_v8  ;;  %v15911_v12 = vld [vmem:[#allocation61_spill] sm:$0xff] }
 0x198   : > { %9857 = vmatprep.mubr.msk.f32.mxu0 %vm10873_vm1, %v15553_v47  ;;  %v4820_v32 = vcombine.low %v15911_v12, %v15910_v40  ;;  %v15932_v40 = vld [vmem:[#allocation125_spill] sm:$0xff]  ;;  %v15933_v12 = vld [vmem:[#allocation156_spill] sm:$0xff] }
 0x199   : > { %9577 = vmatmul.mubr.msk.f32.gmra.mrb[38].mxu1 %vm1538_vm2, %v15893_v4  ;;  %v4529_v58 = vcombine.low %v4521_v48, %v4528_v11  ;;  %v15912_v4 = vld [vmem:[#allocation144_spill] sm:$0xff]  ;;  %v15913_v48 = vld [vmem:[#allocation143_spill] sm:$0xff] }
 0x19a   : > { %9579 = vmatprep.mubr.msk.f32.mxu1 %vm10873_vm1, %v15553_v47 }
 0x19b   : > { %9858 = vmatmul.mubr.msk.f32.gmra.mrb[36].mxu0 %vm1538_vm2, %v4512_v55  ;;  %v4819_v55 = vcombine.low %v15909_v50, %v15908_v30  ;;  %v15930_v30 = vld [vmem:[#allocation121_spill] sm:$0xff]  ;;  %v15931_v50 = vld [vmem:[#allocation116_spill] sm:$0xff] }
 0x19c   : > { %9860 = vmatprep.mubr.msk.f32.mxu0 %vm10873_vm1, %v15553_v47 }
 0x19d   : > { %9580 = vmatmul.mubr.msk.f32.gmra.mrb[40].mxu1 %vm1538_vm2, %v2736_v34  ;;  %v4821_v34 = vcombine.low %v15913_v48, %v15912_v4  ;;  %v15934_v4 = vld [vmem:[#allocation8_spill] sm:$0xff] }
 0x19e   : > { %9582 = vmatprep.mubr.msk.f32.mxu1 %vm10873_vm1, %v15553_v47  ;;  %v4830_v48 = vcombine.low %v15935_v13, %v15934_v4 }
 0x19f   : > { %9861 = vmatmul.mubr.msk.f32.gmra.mrb[38].mxu0 %vm1538_vm2, %v13440_v2  ;;  %v4546_v2 = vcombine.low %v4538_v21, %v4545_v18  ;;  %v15917_v21 = vld [vmem:[#allocation148_spill] sm:$0xff] }
 0x1a0   : > { %9863 = vmatprep.mubr.msk.f32.mxu0 %vm10873_vm1, %v15553_v47 }
 0x1a1   : > { %9583 = vmatmul.mubr.msk.f32.gmra.mrb[42].mxu1 %vm1538_vm2, %v15896_v22  ;;  %v15918_v22 = vld [vmem:[#allocation149_spill] sm:$0xff] }
 0x1a2   : > { %9585 = vmatprep.mubr.msk.f32.mxu1 %vm10873_vm1, %v15553_v47 }
 0x1a3   : > { %9864 = vmatmul.mubr.msk.f32.gmra.mrb[40].mxu0 %vm1538_vm2, %v4529_v58  ;;  %v15916_v58 = vld [vmem:[#allocation85_spill] sm:$0xff] }
 0x1a4   : > { %9866 = vmatprep.mubr.msk.f32.mxu0 %vm10873_vm1, %v15553_v47  ;;  %v4823_v18 = vcombine.low %v15917_v21, %v15916_v58  ;;  %v4800_v58 = vrot.slane %v13705_v15, 7  ;;  %v4803_v21 = vrot.slane %v13701_v43, 7 }
 0x1a5   : > { %9586 = vmatmul.mubr.msk.f32.gmra.mrb[44].mxu1 %vm1538_vm2, %v13745_v27 }
 0x1a7   : > { %9867 = vmatmul.mubr.msk.f32.gmra.mrb[42].mxu0 %vm1538_vm2, %v4546_v2  ;;  %v15919_v2 = vld [vmem:[#allocation91_spill] sm:$0xff] }
 0x1a8   : > { %9869 = vmatprep.mubr.msk.f32.mxu0 %vm10873_vm1, %v15553_v47  ;;  %v4824_v33 = vcombine.low %v15919_v2, %v15918_v22  ;;  %v15937_v22 = vld [vmem:[#allocation9_spill] sm:$0xff] }
 0x1ab   : > { %9870 = vmatmul.mubr.msk.f32.gmra.mrb[44].mxu0 %vm1538_vm2, %v4554_v39  ;;  %v15920_v39 = vld [vmem:[#allocation102_spill] sm:$0xff] }
 0x1ac   : > { %9874 = vmatprep.mubr.msk.f32.mxu0 %vm10873_vm1, %v15553_v47 }
 0x1af   : > { %9875 = vmatmul.mubr.msk.f32.vlgmr.msra.gmra.mrb[0].mxu0 %vm1538_vm2, %v15899_v9  ;;  %v15923_v9 = vld [vmem:[#allocation151_spill] sm:$0xff] }
 0x1b0   : > { %9944 = vmatpush3.msk.msra.mxu0 %vm1585_vm0, %v418_v20  ;;  %9877 = vmatprep.mubr.msk.f32.mxu0 %vm10873_vm1, %v15553_v47  ;;  %v15921_v20 = vld [vmem:[#allocation150_spill] sm:$0xff]  ;;  %v4826_v37 = vcombine.low %v15923_v9, %v15922_v42  ;;  %v15940_v9 = vld [vmem:[#allocation161_spill] sm:$0xff] }
 0x1b1   : > { %v4825_v16 = vcombine.low %v15921_v20, %v15920_v39  ;;  %v15938_v20 = vld [vmem:[#allocation126_spill] sm:$0xff] }
 0x1b3   : > { %9878 = vmatmul.mubr.msk.f32.gmra.mrb[2].mxu0 %vm1538_vm2, %v4815_v57  ;;  %v15925_v57 = vld [vmem:[#allocation152_spill] sm:$0xff] }
 0x1b4   : > { %9880 = vmatprep.mubr.msk.f32.mxu0 %vm10873_vm1, %v15553_v47  ;;  %v4827_v45 = vcombine.low %v15925_v57, %v15924_v23 }
 0x1b7   : > { %9881 = vmatmul.mubr.msk.f32.gmra.mrb[4].mxu0 %vm1538_vm2, %v4816_v24  ;;  %v15927_v24 = vld [vmem:[#allocation154_spill] sm:$0xff] }
 0x1b8   : > { %9883 = vmatprep.mubr.msk.f32.mxu0 %vm10873_vm1, %v15553_v47  ;;  %v4828_v38 = vcombine.low %v15927_v24, %v15926_v60 }
 0x1bb   : > { %9884 = vmatmul.mubr.msk.f32.gmra.mrb[6].mxu0 %vm1538_vm2, %v4817_v46  ;;  %v15928_v46 = vld [vmem:[#allocation158_spill] sm:$0xff] }
 0x1bc   : > { %9886 = vmatprep.mubr.msk.f32.mxu0 %vm10873_vm1, %v15553_v47  ;;  %v4829_v59 = vcombine.low %v15929_v49, %v15928_v46  ;;  %v4802_v49 = vrot.slane %v4800_v58, 2 }
 0x1be   : > { %v4804_v13 = vsel %vm11658_vm9, %v4802_v49, %v4803_v21 }
 0x1bf   : > { %9887 = vmatmul.mubr.msk.f32.gmra.mrb[8].mxu0 %vm1538_vm2, %v4818_v56  ;;  %v4791_v56 = vrot.slane %v13665_v3, 7 }
 0x1c0   : > { %9889 = vmatprep.mubr.msk.f32.mxu0 %vm10873_vm1, %v15553_v47 }
 0x1c1   : > { %v4793_v53 = vrot.slane %v4791_v56, 2 }
 0x1c3   : > { %9890 = vmatmul.mubr.msk.f32.gmra.mrb[10].mxu0 %vm1538_vm2, %v4819_v55  ;;  %v4832_v55 = vcombine.low %v15931_v50, %v15930_v30  ;;  %v4806_v30 = vrot.slane %v13727_v10, 7 }
 0x1c4   : > { %9892 = vmatprep.mubr.msk.f32.mxu0 %vm10873_vm1, %v15553_v47 }
 0x1c7   : > { %9893 = vmatmul.mubr.msk.f32.gmra.mrb[12].mxu0 %vm1538_vm2, %v4820_v32  ;;  %v4833_v32 = vcombine.low %v15933_v12, %v15932_v40 }
 0x1c8   : > { %9895 = vmatprep.mubr.msk.f32.mxu0 %vm10873_vm1, %v15553_v47  ;;  %v13805_v11 = vpop.f32.mrb[0].mxu1 }
 0x1c9   : > { %v9450_v29 = vpop.f32.mrb[1].mxu1  ;;  %v4847_v39 = vrot.slane %v4833_v32, %v10972_v8 }
 0x1ca   : > { %v4790_v29 = vrot.slane %v4788_v31, 2 }
 0x1cb   : > { %9896 = vmatmul.mubr.msk.f32.gmra.mrb[14].mxu0 %vm1538_vm2, %v4821_v34  ;;  %v8783_v34 = vrot.slane %v13651_v28, 9 }
 0x1cc   : > { %9898 = vmatprep.mubr.msk.f32.mxu0 %vm10873_vm1, %v15553_v47  ;;  %v4792_v60 = vsel %vm11658_vm9, %v4790_v29, %v4791_v56  ;;  %v15943_v56 = vld [vmem:[#allocation5_spill] sm:$0xff]  ;;  %v4809_v29 = vrot.slane %v13740_v52, 7 }
 0x1cf   : > { %9899 = vmatmul.mubr.msk.f32.gmra.mrb[16].mxu0 %vm1538_vm2, %v4822_v14  ;;  %v4794_v14 = vrot.slane %v13698_v5, 7 }
 0x1d0   : > { %9901 = vmatprep.mubr.msk.f32.mxu0 %vm10873_vm1, %v15553_v47 }
 0x1d1   : > { %v4796_v24 = vrot.slane %v4794_v14, 2  ;;  %v4795_v46 = vsel %vm11658_vm9, %v4793_v53, %v4794_v14 }
 0x1d2   : > { %v4867_v12 = vcombine.low %v4792_v60, %v4795_v46  ;;  %v15944_v60 = vld [vmem:[#allocation25_spill] sm:$0xff]  ;;  %v15946_v46 = vld [vmem:[#allocation38_spill] sm:$0xff] }
 0x1d3   : > { %9902 = vmatmul.mubr.msk.f32.gmra.mrb[18].mxu0 %vm1538_vm2, %v4823_v18  ;;  %v15936_v18 = vld [vmem:[#allocation14_spill] sm:$0xff]  ;;  %v4798_v32 = vsel %vm11658_vm9, %v4796_v24, %v4797_v0  ;;  %v5160_v57 = vcombine.low %v15864_v25, %v15944_v60  ;;  %v5162_v49 = vcombine.low %v13507_v41, %v15946_v46  ;;  %v15949_v41 = vld [vmem:[#allocation55_spill] sm:$0xff] }
 0x1d4   : > { %9904 = vmatprep.mubr.msk.f32.mxu0 %vm10873_vm1, %v15553_v47  ;;  %v4831_v2 = vcombine.low %v15937_v22, %v15936_v18  ;;  %v4881_v14 = vrot.slane %v4867_v12, %v10972_v8  ;;  %v4811_v22 = vrot.slane %v4809_v29, 2  ;;  %v15945_v24 = vld [vmem:[#allocation26_spill] sm:$0xff] }
 0x1d5   : > { %v15947_v25 = vld [vmem:[#allocation34_spill] sm:$0xff] }
 0x1d7   : > { %9905 = vmatmul.mubr.msk.f32.gmra.mrb[20].mxu0 %vm1538_vm2, %v4824_v33  ;;  %v4840_v33 = vrot.slane %v4832_v55, %v10972_v8 }
 0x1d8   : > { %9907 = vmatprep.mubr.msk.f32.mxu0 %vm10873_vm1, %v15553_v47 }
 0x1d9   : > { %v4848_v50 = vcombine.low %v4840_v33, %v4847_v39  ;;  %v6604_v33 = vld [vmem:[%s15231_s4 + $0x4] sm:$0xf] }
 0x1da   : > { %10014 = vmatprep.subr.msk.mxu1 %vm1585_vm0, %v6604_v33 }
 0x1db   : > { %9908 = vmatmul.mubr.msk.f32.gmra.mrb[22].mxu0 %vm1538_vm2, %v4825_v16  ;;  %v15939_v16 = vld [vmem:[#allocation123_spill] sm:$0xff]  ;;  %10015 = vmatpush3.msk.msra.mxu1 %vm1585_vm0, %v6604_v33 }
 0x1dc   : > { %9910 = vmatprep.mubr.msk.f32.mxu0 %vm10873_vm1, %v15553_v47  ;;  %v4849_v42 = vcombine.low %v15939_v16, %v15938_v20 }
 0x1de   : > { %v4857_v55 = vrot.slane %v4849_v42, %v10972_v8 }
 0x1df   : > { %9911 = vmatmul.mubr.msk.f32.gmra.mrb[24].mxu0 %vm1538_vm2, %v4826_v37  ;;  %v15941_v37 = vld [vmem:[#allocation159_spill] sm:$0xff] }
 0x1e0   : > { %9913 = vmatprep.mubr.msk.f32.mxu0 %vm10873_vm1, %v15553_v47  ;;  %v4850_v23 = vcombine.low %v15941_v37, %v15940_v9 }
 0x1e3   : > { %9914 = vmatmul.mubr.msk.f32.gmra.mrb[26].mxu0 %vm1538_vm2, %v4827_v45  ;;  %v4789_v45 = vsel %vm11658_vm9, %v8783_v34, %v4788_v31  ;;  %v4864_v31 = vrot.slane %v4850_v23, %v10972_v8  ;;  %v13897_v34 = vcombine.high %v13740_v52, %v13740_v52 }
 0x1e4   : > { %9916 = vmatprep.mubr.msk.f32.mxu0 %vm10873_vm1, %v15553_v47  ;;  %v4866_v40 = vcombine.low %v15943_v56, %v4789_v45 }
 0x1e5   : > { %v4865_v53 = vcombine.low %v4857_v55, %v4864_v31 }
 0x1e7   : > { %9917 = vmatmul.mubr.msk.f32.gmra.mrb[28].mxu0 %vm1538_vm2, %v4828_v38  ;;  %v4799_v38 = vrot.slane %v4797_v0, 2  ;;  %v4874_v0 = vrot.slane %v4866_v40, %v10972_v8 }
 0x1e8   : > { %9919 = vmatprep.mubr.msk.f32.mxu0 %vm10873_vm1, %v15553_v47 }
 0x1e9   : > { %v4801_v4 = vsel %vm11658_vm9, %v4799_v38, %v4800_v58  ;;  %v4882_v39 = vcombine.low %v4874_v0, %v4881_v14  ;;  %v5161_v38 = vcombine.low %v15945_v24, %v15867_v35  ;;  %v15948_v35 = vld [vmem:[#allocation43_spill] sm:$0xff] }
 0x1ea   : > { %v4883_v58 = vcombine.low %v4798_v32, %v4801_v4  ;;  %v15953_v32 = vld [vmem:[#allocation66_spill] sm:$0xff] }
 0x1eb   : > { %9920 = vmatmul.mubr.msk.f32.gmra.mrb[30].mxu0 %vm1538_vm2, %v4829_v59  ;;  %v4805_v59 = vrot.slane %v4803_v21, 2  ;;  %v4808_v21 = vrot.slane %v4806_v30, 2  ;;  %v5168_v4 = vcombine.low %v15953_v32, %v13587_v36  ;;  %v15955_v36 = vld [vmem:[#allocation81_spill] sm:$0xff] }
 0x1ec   : > { %9922 = vmatprep.mubr.msk.f32.mxu0 %vm10873_vm1, %v15553_v47  ;;  %v4891_v20 = vrot.slane %v4883_v58, %v10972_v8  ;;  %v5170_v0 = vcombine.low %v15955_v36, %v15884_v19  ;;  %v15957_v19 = vld [vmem:[#allocation89_spill] sm:$0xff] }
 0x1ed   : > { %v4810_v42 = vsel %vm11658_vm9, %v4808_v21, %v4809_v29 }
 0x1ef   : > { %9923 = vmatmul.mubr.msk.f32.gmra.mrb[32].mxu0 %vm1538_vm2, %v4830_v48  ;;  %v4807_v48 = vsel %vm11658_vm9, %v4805_v59, %v4806_v30  ;;  %v5163_v59 = vcombine.low %v15947_v25, %v15871_v1  ;;  %v5164_v30 = vcombine.low %v13531_v54, %v15948_v35  ;;  %v15951_v1 = vld [vmem:[#allocation58_spill] sm:$0xff]  ;;  %v15952_v54 = vld [vmem:[#allocation60_spill] sm:$0xff] }
 0x1f0   : > { %9925 = vmatprep.mubr.msk.f32.mxu0 %vm10873_vm1, %v15553_v47  ;;  %v4884_v18 = vcombine.low %v4804_v13, %v4807_v48  ;;  %v5166_v31 = vcombine.low %v15951_v1, %v13563_v6  ;;  %v5167_v56 = vcombine.low %v15875_v7, %v15952_v54  ;;  %v15954_v7 = vld [vmem:[#allocation77_spill] sm:$0xff]  ;;  %v15966_v54 = vld [vmem:[#allocation131_spill] sm:$0xff] }
 0x1f1   : > { %v5169_v48 = vcombine.low %v15879_v61, %v15954_v7  ;;  %v15956_v61 = vld [vmem:[#allocation93_spill] sm:$0xff] }
 0x1f2   : > { %v4898_v16 = vrot.slane %v4884_v18, %v10972_v8  ;;  %v5171_v18 = vcombine.low %v13611_v26, %v15956_v61  ;;  %v15958_v26 = vld [vmem:[#allocation101_spill] sm:$0xff] }
 0x1f3   : > { %9926 = vmatmul.mubr.msk.f32.gmra.mrb[34].mxu0 %vm1538_vm2, %v4831_v2  ;;  %v4812_v2 = vrot.slane %v13897_v34, 7 }
 0x1f4   : > { %9928 = vmatprep.mubr.msk.f32.mxu0 %vm10873_vm1, %v15553_v47  ;;  %v4899_v37 = vcombine.low %v4891_v20, %v4898_v16  ;;  %v5173_v20 = vcombine.low %v13635_v62, %v15958_v26  ;;  %v15961_v62 = vld [vmem:[#allocation111_spill] sm:$0xff] }
 0x1f5   : > { %v4813_v9 = vsel %vm11658_vm9, %v4811_v22, %v4812_v2  ;;  %v5172_v2 = vcombine.low %v15957_v19, %v15888_v51  ;;  %v15959_v51 = vld [vmem:[#allocation107_spill] sm:$0xff]  ;;  %v5175_v60 = vcombine.low %v15961_v62, %v13690_v63  ;;  %v15963_v63 = vld [vmem:[#allocation124_spill] sm:$0xff] }
 0x1f6   : > { %v4900_v23 = vcombine.low %v4810_v42, %v4813_v9  ;;  %v15960_v9 = vld [vmem:[#allocation105_spill] sm:$0xff] }
 0x1f7   : > { %9929 = vmatmul.mubr.msk.f32.gmra.mrb[36].mxu0 %vm1538_vm2, %v4848_v50  ;;  %v15950_v50 = vld [vmem:[#allocation48_spill] sm:$0xff] }
 0x1f8   : > { %9931 = vmatprep.mubr.msk.f32.mxu0 %vm10873_vm1, %v15553_v47  ;;  %v4907_v45 = vrot.slane %v4900_v23, %v10972_v8  ;;  %v5165_v55 = vcombine.low %v15950_v50, %v15949_v41  ;;  %v15965_v41 = vld [vmem:[#allocation128_spill] sm:$0xff] }
 0x1fb   : > { %9932 = vmatmul.mubr.msk.f32.gmra.mrb[38].mxu0 %vm1538_vm2, %v4865_v53 }
 0x1fc   : > { %9934 = vmatprep.mubr.msk.f32.mxu0 %vm10873_vm1, %v15553_v47 }
 0x1ff   : > { %9935 = vmatmul.mubr.msk.f32.gmra.mrb[40].mxu0 %vm1538_vm2, %v4882_v39 }
 0x200   : > { %9937 = vmatprep.mubr.msk.f32.mxu0 %vm10873_vm1, %v15553_v47 }
 0x203   : > { %9938 = vmatmul.mubr.msk.f32.gmra.mrb[42].mxu0 %vm1538_vm2, %v4899_v37  ;;  %v5174_v37 = vcombine.low %v15960_v9, %v15959_v51 }
 0x204   : > { %9940 = vmatprep.mubr.msk.f32.mxu0 %vm10873_vm1, %v15553_v47 }
 0x207   : > { %9941 = vmatmul.mubr.msk.f32.gmra.mrb[44].mxu0 %vm1538_vm2, %v4907_v45 }
 0x208   : > { %9945 = vmatprep.mubr.msk.f32.mxu0 %vm10873_vm1, %v15553_v47 }
 0x20b   : > { %9946 = vmatmul.mubr.msk.f32.vlgmr.msra.gmra.mrb[0].mxu0 %vm1538_vm2, %v5160_v57 }
 0x20c   : > { %9948 = vmatprep.mubr.msk.f32.mxu0 %vm10873_vm1, %v15553_v47 }
 0x20f   : > { %9949 = vmatmul.mubr.msk.f32.gmra.mrb[2].mxu0 %vm1538_vm2, %v5161_v38  ;;  %v15962_v38 = vld [vmem:[#allocation120_spill] sm:$0xff] }
 0x210   : > { %9951 = vmatprep.mubr.msk.f32.mxu0 %vm10873_vm1, %v15553_v47  ;;  %v5176_v46 = vcombine.low %v15894_v17, %v15962_v38  ;;  %v15964_v17 = vld [vmem:[#allocation129_spill] sm:$0xff] }
 0x211   : > { %v5178_v50 = vcombine.low %v15965_v41, %v15964_v17 }
 0x213   : > { %9952 = vmatmul.mubr.msk.f32.gmra.mrb[4].mxu0 %vm1538_vm2, %v5162_v49 }
 0x214   : > { %9954 = vmatprep.mubr.msk.f32.mxu0 %vm10873_vm1, %v15553_v47 }
 0x217   : > { %9955 = vmatmul.mubr.msk.f32.gmra.mrb[6].mxu0 %vm1538_vm2, %v5163_v59  ;;  %v5177_v59 = vcombine.low %v15963_v63, %v13745_v27 }
 0x218   : > { %9957 = vmatprep.mubr.msk.f32.mxu0 %vm10873_vm1, %v15553_v47 }
 0x21b   : > { %9958 = vmatmul.mubr.msk.f32.gmra.mrb[8].mxu0 %vm1538_vm2, %v5164_v30 }
 0x21c   : > { %9960 = vmatprep.mubr.msk.f32.mxu0 %vm10873_vm1, %v15553_v47 }
 0x21f   : > { %9961 = vmatmul.mubr.msk.f32.gmra.mrb[10].mxu0 %vm1538_vm2, %v5165_v55  ;;  %v10797_v55 = vld.sshfl [vmem:[%s11400_s11 + $0x40] sm:$0x33 pattern:$0x76325410] }
 0x220   : > { %9963 = vmatprep.mubr.msk.f32.mxu0 %vm10873_vm1, %v15553_v47  ;;  %v8808_v1 = vcombine.high %v10797_v55, %v13651_v28  ;;  %v5197_v28 = vcombine.low %v13678_v44, %v13705_v15 }
 0x223   : > { %9964 = vmatmul.mubr.msk.f32.gmra.mrb[12].mxu0 %vm1538_vm2, %v5166_v31  ;;  %v5181_v31 = vcombine.low %v13665_v3, %v13698_v5  ;;  %v5198_v3 = vcombine.low %v13701_v43, %v13727_v10  ;;  %v5214_v10 = vcombine.low %v13740_v52, %v13897_v34 }
 0x224   : > { %9966 = vmatprep.mubr.msk.f32.mxu0 %vm10873_vm1, %v15553_v47  ;;  %v13967_v40 = vpop.f32.mrb[2].mxu1 }
 0x225   : > { %v9524_v12 = vpop.f32.mrb[3].mxu1  ;;  %v5212_v36 = vrot.slane %v5198_v3, %v10972_v8  ;;  %v5221_v61 = vrot.slane %v5214_v10, %v10972_v8 }
 0x227   : > { %9967 = vmatmul.mubr.msk.f32.gmra.mrb[14].mxu0 %vm1538_vm2, %v5167_v56  ;;  %v15967_v56 = vld [vmem:[#allocation130_spill] sm:$0xff] }
 0x228   : > { %9969 = vmatprep.mubr.msk.f32.mxu0 %vm10873_vm1, %v15553_v47  ;;  %v13974_v6 = vpop.f32.mrb[4].mxu1  ;;  %v5179_v12 = vcombine.low %v15967_v56, %v15966_v54 }
 0x229   : > { %v9527_v13 = vpop.f32.mrb[5].mxu1 }
 0x22a   : > { %v5195_v13 = vrot.slane %v5181_v31, %v10972_v8  ;;  %v14120_v31 = vstv %s8836_s18 }
 0x22b   : > { %9970 = vmatmul.mubr.msk.f32.gmra.mrb[16].mxu0 %vm1538_vm2, %v5168_v4  ;;  %v5188_v4 = vrot.slane %v8808_v1, %v10972_v8  ;;  %vm5977_vm10 = vcmp.ge.s32.totalorder %v14120_v31, 0  ;;  %vm5987_vm11 = vcmp.lt.s32.totalorder %v14120_v31, 16 }
 0x22c   : > { %9972 = vmatprep.mubr.msk.f32.mxu0 %vm10873_vm1, %v15553_v47  ;;  %v13981_v29 = vpop.f32.mrb[6].mxu1 }
 0x22d   : > { %v9530_v53 = vpop.f32.mrb[7].mxu1 }
 0x22e   : > { %v5205_v53 = vrot.slane %v5197_v28, %v10972_v8  ;;  %v14131_v28 = vadd.s32 1, %v14120_v31 }
 0x22f   : > { %9973 = vmatmul.mubr.msk.f32.gmra.mrb[18].mxu0 %vm1538_vm2, %v5169_v48  ;;  %v5196_v48 = vcombine.low %v5188_v4, %v5195_v13 }
 0x230   : > { %9975 = vmatprep.mubr.msk.f32.mxu0 %vm10873_vm1, %v15553_v47  ;;  %v13988_v14 = vpop.f32.mrb[8].mxu1  ;;  %v5213_v43 = vcombine.low %v5205_v53, %v5212_v36  ;;  %vm5978_vm14 = vcmp.ge.s32.totalorder %v14131_v28, 0  ;;  %vm5988_vm15 = vcmp.lt.s32.totalorder %v14131_v28, 16 }
 0x231   : > { %v9533_v58 = vpop.f32.mrb[9].mxu1  ;;  %vm14208_vm6 = vmand %vm5978_vm14, %vm5988_vm15 }
 0x233   : > { %9976 = vmatmul.mubr.msk.f32.gmra.mrb[20].mxu0 %vm1538_vm2, %v5170_v0 }
 0x234   : > { %9978 = vmatprep.mubr.msk.f32.mxu0 %vm10873_vm1, %v15553_v47  ;;  %v13995_v21 = vpop.f32.mrb[10].mxu1 }
 0x235   : > { %v9536_v22 = vpop.f32.mrb[11].mxu1 }
 0x237   : > { %9979 = vmatmul.mubr.msk.f32.gmra.mrb[22].mxu0 %vm1538_vm2, %v5171_v18 }
 0x238   : > { %9981 = vmatprep.mubr.msk.f32.mxu0 %vm10873_vm1, %v15553_v47  ;;  %v14002_v33 = vpop.f32.mrb[12].mxu1 }
 0x239   : > { %v9539_v39 = vpop.f32.mrb[13].mxu1 }
 0x23b   : > { %9982 = vmatmul.mubr.msk.f32.gmra.mrb[24].mxu0 %vm1538_vm2, %v5172_v2 }
 0x23c   : > { %9984 = vmatprep.mubr.msk.f32.mxu0 %vm10873_vm1, %v15553_v47  ;;  %v14009_v16 = vpop.f32.mrb[14].mxu1 }
 0x23d   : > { %v9542_v42 = vpop.f32.mrb[15].mxu1 }
 0x23f   : > { %9985 = vmatmul.mubr.msk.f32.gmra.mrb[26].mxu0 %vm1538_vm2, %v5173_v20 }
 0x240   : > { %9987 = vmatprep.mubr.msk.f32.mxu0 %vm10873_vm1, %v15553_v47  ;;  %v14016_v23 = vpop.f32.mrb[16].mxu1 }
 0x241   : > { %v9545_v45 = vpop.f32.mrb[17].mxu1 }
 0x242   : > { %v14099_v45 = vld [vmem:[%s15231_s4] sm:$0xf] }
 0x243   : > { %9988 = vmatmul.mubr.msk.f32.gmra.mrb[28].mxu0 %vm1538_vm2, %v5174_v37  ;;  %10040 = vmatprep.subr.msk.mxu1 %vm1585_vm0, %v14099_v45 }
 0x244   : > { %9990 = vmatprep.mubr.msk.f32.mxu0 %vm10873_vm1, %v15553_v47  ;;  %v14023_v57 = vpop.f32.mrb[18].mxu1 }
 0x245   : > { %v9548_v24 = vpop.f32.mrb[19].mxu1 }
 0x247   : > { %9991 = vmatmul.mubr.msk.f32.gmra.mrb[30].mxu0 %vm1538_vm2, %v5175_v60  ;;  %v14106_v60 = vld [vmem:[%s15230_s3] ss:$0 sm:$0xff] }
 0x248   : > { %9993 = vmatprep.mubr.msk.f32.mxu0 %vm10873_vm1, %v15553_v47  ;;  %v14030_v49 = vpop.f32.mrb[20].mxu1 }
 0x249   : > { %v9551_v25 = vpop.f32.mrb[21].mxu1 }
 0x24b   : > { %9994 = vmatmul.mubr.msk.f32.gmra.mrb[32].mxu0 %vm1538_vm2, %v5176_v46  ;;  %v14112_v46 = vld [vmem:[%s15230_s3 + $0x1] ss:$0 sm:$0xff] }
 0x24c   : > { %9996 = vmatprep.mubr.msk.f32.mxu0 %vm10873_vm1, %v15553_v47  ;;  %v14037_v35 = vpop.f32.mrb[22].mxu1 }
 0x24d   : > { %v9554_v30 = vpop.f32.mrb[23].mxu1 }
 0x24f   : > { %9997 = vmatmul.mubr.msk.f32.gmra.mrb[34].mxu0 %vm1538_vm2, %v5177_v59  ;;  %v15968_v59 = vld [vmem:[#allocation2_spill] sm:$0xff] }
 0x250   : > { %9999 = vmatprep.mubr.msk.f32.mxu0 %vm10873_vm1, %v15553_v47  ;;  %v14048_v27 = vpop.f32.mrb[24].mxu1  ;;  %v5973_v30 = vadd.s32 16, %v15968_v59  ;;  %v14125_v56 = vadd.s32 4294967295, %v15968_v59 }
 0x251   : > { %v9557_v32 = vpop.f32.mrb[25].mxu1 }
 0x252   : > { %v14122_v54 = vadd.s32 4294967295, %v5973_v30  ;;  %vm6007_vm13 = vcmp.ge.s32.totalorder %v14125_v56, 0  ;;  %v6609_v56 = vld [vmem:[%s15231_s4 + $0x18] sm:$0xf] }
 0x253   : > { %10000 = vmatmul.mubr.msk.f32.gmra.mrb[36].mxu0 %vm1538_vm2, %v5178_v50  ;;  %vm6013_vm9 = vmand %vm14208_vm6, %vm6007_vm13 }
 0x254   : > { %10002 = vmatprep.mubr.msk.f32.mxu0 %vm10873_vm1, %v15553_v47  ;;  %v14061_v5 = vpop.f32.mrb[26].mxu1  ;;  %vm6042_vm12 = vcmp.lt.s32.totalorder %v14122_v54, 16 }
 0x255   : > { %v9560_v7 = vpop.f32.mrb[27].mxu1 }
 0x257   : > { %10003 = vmatmul.mubr.msk.f32.gmra.mrb[38].mxu0 %vm1538_vm2, %v5179_v12 }
 0x258   : > { %10005 = vmatprep.mubr.msk.f32.mxu0 %vm10873_vm1, %v15553_v47  ;;  %v14068_v44 = vpop.f32.mrb[28].mxu1 }
 0x259   : > { %v9563_v15 = vpop.f32.mrb[29].mxu1 }
 0x25b   : > { %10006 = vmatmul.mubr.msk.f32.gmra.mrb[40].mxu0 %vm1538_vm2, %v5196_v48 }
 0x25c   : > { %10008 = vmatprep.mubr.msk.f32.mxu0 %vm10873_vm1, %v15553_v47  ;;  %v14075_v0 = vpop.f32.mrb[30].mxu1 }
 0x25d   : > { %v9566_v58 = vpop.f32.mrb[31].mxu1 }
 0x25f   : > { %10009 = vmatmul.mubr.msk.f32.gmra.mrb[42].mxu0 %vm1538_vm2, %v5213_v43 }
 0x260   : > { %10011 = vmatprep.mubr.msk.f32.mxu0 %vm10873_vm1, %v15553_v47  ;;  %v14081_v18 = vpop.f32.mrb[32].mxu1  ;;  %vm14153_vm1 = vmand %vm5977_vm10, %vm5987_vm11 }
 0x261   : > { %v9569_v22 = vpop.f32.mrb[33].mxu1  ;;  %vm14172_vm3 = vmand %vm14153_vm1, %vm6042_vm12 }
 0x262   : > { %vm6010_vm4 = vmand %vm14153_vm1, %vm6007_vm13 }
 0x263   : > { %10012 = vmatmul.mubr.msk.f32.gmra.mrb[44].mxu0 %vm1538_vm2, %v5221_v61  ;;  %vm6048_vm11 = vmand %vm14208_vm6, %vm6042_vm12 }
 0x264   : > { %v14084_v19 = vpop.f32.mrb[34].mxu1 }
 0x265   : > { %v9572_v52 = vpop.f32.mrb[35].mxu1 }
 0x268   : > { %v14086_v34 = vpop.f32.mrb[36].mxu1 }
 0x269   : > { %v9575_v2 = vpop.f32.mrb[37].mxu1 }
 0x26c   : > { %v14088_v39 = vpop.f32.mrb[38].mxu1 }
 0x26d   : > { %v9578_v26 = vpop.f32.mrb[39].mxu1 }
 0x270   : > { %v14090_v20 = vpop.f32.mrb[40].mxu1 }
 0x271   : > { %v9581_v42 = vpop.f32.mrb[41].mxu1 }
 0x272   : > { %v14146_v42 = vadd.s32 2, %v14120_v31 }
 0x274   : > { %v14092_v51 = vpop.f32.mrb[42].mxu1  ;;  %vm5979_vm7 = vcmp.ge.s32.totalorder %v14146_v42, 0  ;;  %vm5989_vm8 = vcmp.lt.s32.totalorder %v14146_v42, 16 }
 0x275   : > { %v9584_v47 = vpop.f32.mrb[43].mxu1  ;;  %vm14277_vm10 = vmand %vm5979_vm7, %vm5989_vm8 }
 0x276   : > { %vm6016_vm14 = vmand %vm14277_vm10, %vm6007_vm13 }
 0x278   : > { %v14094_v9 = vpop.f32.mrb[44].mxu1 }
 0x279   : > { %v9587_v37 = vpop.f32.mrb[45].mxu1 }
 0x2de   : > { %v5337_v62 = vpop.f32.mrb[0].mxu0 }
 0x2df   : > { %v10250_v24 = vadd.f32 %v5337_v62, %v13805_v11  ;;  %v9947_v38 = vpop.f32.mrb[1].mxu0 }
 0x2e0   : > { %v14159_v38 = vadd.s32 3, %v14120_v31 }
 0x2e1   : > { %v5479_v25 = vmul.f32 %v10250_v24, %v14106_v60 }
 0x2e2   : > { %v5342_v63 = vpop.f32.mrb[2].mxu0  ;;  %vm5980_vm15 = vcmp.ge.s32.totalorder %v14159_v38, 0 }
 0x2e3   : > { %v5507_v17 = vadd.f32 %v14112_v46, %v5479_v25  ;;  %v10251_v41 = vadd.f32 %v5342_v63, %v13967_v40  ;;  %v9950_v50 = vpop.f32.mrb[3].mxu0 }
 0x2e5   : > { %v5530_v55 = vmax.f32 %v5507_v17, 0.0  ;;  %v5480_v11 = vmul.f32 %v10251_v41, %v14106_v60 }
 0x2e6   : > { %v5347_v1 = vpop.f32.mrb[4].mxu0 }
 0x2e7   : > { %v5576_v12 = vcombine.high %v5530_v55, %v5530_v55  ;;  %v5583_v32 = vrot.slane %v5530_v55, %v10972_v8  ;;  %v5508_v4 = vadd.f32 %v14112_v46, %v5480_v11  ;;  %v10252_v40 = vadd.f32 %v5347_v1, %v13974_v6  ;;  %v9953_v13 = vpop.f32.mrb[5].mxu0 }
 0x2e8   : > { %v14166_v11 = vadd.s32 4, %v14120_v31 }
 0x2e9   : > { %v5590_v3 = vrot.slane %v5576_v12, %v10972_v8  ;;  %v5591_v7 = vcombine.high %v5583_v32, %v5583_v32  ;;  %v5531_v48 = vmax.f32 %v5508_v4, 0.0  ;;  %v5481_v53 = vmul.f32 %v10252_v40, %v14106_v60 }
 0x2ea   : > { %v5352_v36 = vpop.f32.mrb[6].mxu0  ;;  %v14178_v4 = vadd.s32 5, %v14120_v31 }
 0x2eb   : > { %v5592_v6 = vcombine.high %v5590_v3, %v5590_v3  ;;  %v6133_v15 = vcombine.low %v5583_v32, %v5591_v7  ;;  %v5593_v43 = vcombine.high %v5531_v48, %v5531_v48  ;;  %v5600_v10 = vrot.slane %v5531_v48, %v10972_v8  ;;  %v9956_v58 = vpop.f32.mrb[7].mxu0 }
 0x2ec   : > { %v5509_v61 = vadd.f32 %v14112_v46, %v5481_v53  ;;  %v10253_v22 = vadd.f32 %v5352_v36, %v13981_v29 }
 0x2ed   : > { %v6134_v52 = vcombine.low %v5590_v3, %v5592_v6  ;;  %v5607_v2 = vrot.slane %v5593_v43, %v10972_v8  ;;  %v5608_v26 = vcombine.high %v5600_v10, %v5600_v10  ;;  %v6141_v47 = vrot.slane %v6133_v15, %v10972_v8 }
 0x2ee   : > { %v5532_v37 = vmax.f32 %v5509_v61, 0.0  ;;  %v5482_v62 = vmul.f32 %v10253_v22, %v14106_v60  ;;  %v5357_v24 = vpop.f32.mrb[8].mxu0 }
 0x2ef   : > { %v6148_v25 = vrot.slane %v6134_v52, %v10972_v8  ;;  %v5609_v63 = vcombine.high %v5607_v2, %v5607_v2  ;;  %v6150_v59 = vcombine.low %v5600_v10, %v5608_v26  ;;  %v10254_v30 = vadd.f32 %v5357_v24, %v13988_v14  ;;  %v9959_v17 = vpop.f32.mrb[9].mxu0 }
 0x2f0   : > { %v5610_v41 = vcombine.high %v5532_v37, %v5532_v37  ;;  %v5617_v50 = vrot.slane %v5532_v37, %v10972_v8  ;;  %v5510_v55 = vadd.f32 %v14112_v46, %v5482_v62 }
 0x2f1   : > { %v6151_v1 = vcombine.low %v5607_v2, %v5609_v63  ;;  %v5483_v14 = vmul.f32 %v10254_v30, %v14106_v60  ;;  %v6149_v32 = vcombine.low %v6141_v47, %v6148_v25  ;;  %v6158_v53 = vrot.slane %v6150_v59, %v10972_v8 }
 0x2f2   : > { %v5624_v40 = vrot.slane %v5610_v41, %v10972_v8  ;;  %v5625_v13 = vcombine.high %v5617_v50, %v5617_v50  ;;  %v6173_v3 = vrot.slane %v5617_v50, %v10972_v8  ;;  %v5533_v7 = vmax.f32 %v5510_v55, 0.0  ;;  %v5362_v48 = vpop.f32.mrb[10].mxu0 }
 0x2f3   : > { %v6165_v36 = vrot.slane %v6151_v1, %v10972_v8  ;;  %v5511_v6 = vadd.f32 %v14112_v46, %v5483_v14  ;;  %v10255_v15 = vadd.f32 %v5362_v48, %v13995_v21  ;;  %v9962_v43 = vpop.f32.mrb[11].mxu0  ;;  %v14196_v47 = vsel %vm6010_vm4, %v6149_v32, 0.0 }
 0x2f4   : > { %v6174_v10 = vcombine.low %v5625_v13, %v5624_v40  ;;  %v14192_v58 = vsel %vm14172_vm3, %v6173_v3, 0.0  ;;  %v5626_v61 = vcombine.high %v5624_v40, %v5624_v40  ;;  %v5627_v22 = vcombine.high %v5533_v7, %v5533_v7  ;;  %vm14348_vm3 = vmand %vm14277_vm10, %vm6042_vm12 }
 0x2f5   : > { %v6640_v52 = vrot.slane %v14192_v58, 1  ;;  %v5634_v2 = vrot.slane %v5533_v7, %v10972_v8  ;;  %v5534_v26 = vmax.f32 %v5511_v6, 0.0  ;;  %v5484_v62 = vmul.f32 %v10255_v15, %v14106_v60 }
 0x2f6   : > { %v6182_v37 = vrot.slane %v6174_v10, %v10972_v8  ;;  %v5641_v21 = vrot.slane %v5627_v22, %v10972_v8  ;;  %v5367_v24 = vpop.f32.mrb[12].mxu0  ;;  %v6166_v25 = vcombine.low %v6158_v53, %v6165_v36  ;;  %v6637_v48 = vrot.slane %v14196_v47, 1 }
 0x2f7   : > { %v5642_v63 = vcombine.high %v5634_v2, %v5634_v2  ;;  %v6175_v59 = vcombine.low %v5626_v61, %v5634_v2  ;;  %v5644_v30 = vcombine.high %v5534_v26, %v5534_v26  ;;  %v14202_v17 = vrot.slane %v5534_v26, %v10972_v8  ;;  %v9965_v41 = vpop.f32.mrb[13].mxu0 }
 0x2f8   : > { %v5643_v55 = vcombine.high %v5641_v21, %v5641_v21  ;;  %v5512_v1 = vadd.f32 %v14112_v46, %v5484_v62  ;;  %v10256_v12 = vadd.f32 %v5367_v24, %v14002_v33  ;;  %v14216_v14 = vsel %vm14153_vm1, %v6166_v25, 0.0 }
 0x2f9   : > { %v6189_v32 = vrot.slane %v6175_v59, %v10972_v8  ;;  %v6191_v40 = vcombine.low %v5642_v63, %v5641_v21  ;;  %v5658_v13 = vrot.slane %v5644_v30, %v10972_v8  ;;  %v5659_v28 = vcombine.high %v14202_v17, %v14202_v17 }
 0x2fa   : > { %v6192_v3 = vcombine.low %v5643_v55, %v14202_v17  ;;  %v5535_v7 = vmax.f32 %v5512_v1, 0.0  ;;  %v5485_v33 = vmul.f32 %v10256_v12, %v14106_v60  ;;  %v5372_v29 = vpop.f32.mrb[14].mxu0  ;;  %v6638_v62 = vrot.slane %v14216_v14, 1 }
 0x2fb   : > { %v6190_v53 = vcombine.low %v6182_v37, %v6189_v32  ;;  %v6199_v36 = vrot.slane %v6191_v40, %v10972_v8  ;;  %v5660_v6 = vcombine.high %v5658_v13, %v5658_v13  ;;  %v10257_v15 = vadd.f32 %v5372_v29, %v14009_v16  ;;  %v9968_v43 = vpop.f32.mrb[15].mxu0 }
 0x2fc   : > { %v6206_v10 = vrot.slane %v6192_v3, %v10972_v8  ;;  %v5661_v61 = vcombine.high %v5535_v7, %v5535_v7  ;;  %v5668_v22 = vrot.slane %v5535_v7, %v10972_v8  ;;  %v5513_v2 = vadd.f32 %v14112_v46, %v5485_v33  ;;  %v14250_v7 = vld [vmem:[%s15231_s4 + $0x8] sm:$0xf] }
 0x2fd   : > { %v6215_v26 = vcombine.low %v5658_v13, %v5660_v6  ;;  %v5486_v21 = vmul.f32 %v10257_v15, %v14106_v60  ;;  %v14238_v24 = vsel %vm6013_vm9, %v6190_v53, 0.0  ;;  %v6639_v55 = vsel %vm6636_vm5, %v6637_v48, %v6638_v62 }
 0x2fe   : > { %v6207_v37 = vcombine.low %v6199_v36, %v6206_v10  ;;  %v5675_v25 = vrot.slane %v5661_v61, %v10972_v8  ;;  %v5676_v63 = vcombine.high %v5668_v22, %v5668_v22  ;;  %v5536_v16 = vmax.f32 %v5513_v2, 0.0  ;;  %v5377_v59 = vpop.f32.mrb[16].mxu0  ;;  %10016 = vmatprep.mubr.msk.f32.mxu1 %vm1538_vm2, %v6639_v55 }
 0x2ff   : > { %v6223_v30 = vrot.slane %v6215_v26, %v10972_v8  ;;  %v5514_v41 = vadd.f32 %v14112_v46, %v5486_v21  ;;  %v6641_v1 = vsel %vm6636_vm5, %v6638_v62, %v6640_v52  ;;  %v9971_v12 = vpop.f32.mrb[17].mxu0  ;;  %v10258_v29 = vadd.f32 %v5377_v59, %v14016_v23 }
 0x300   : > { %v5677_v32 = vcombine.high %v5675_v25, %v5675_v25  ;;  %v6216_v40 = vcombine.low %v5668_v22, %v5676_v63  ;;  %v5678_v13 = vcombine.high %v5536_v16, %v5536_v16  ;;  %v5685_v3 = vrot.slane %v5536_v16, %v10972_v8  ;;  %10017 = vmatmul.mubr.msk.f32.vlgmr.msra.gmra.mrb[46].mxu1 %vm1538_vm2, %v6641_v1 }
 0x301   : > { %v5537_v33 = vmax.f32 %v5514_v41, 0.0  ;;  %v14256_v52 = vsel %vm14208_vm6, %v6207_v37, 0.0  ;;  %v6642_v48 = vrot.slane %v14238_v24, 1  ;;  %10041 = vmatpush3.msk.msra.mxu1 %vm1585_vm0, %v14099_v45  ;;  %v5487_v61 = vmul.f32 %v10258_v29, %v14106_v60 }
 0x302   : > { %v6230_v53 = vrot.slane %v6216_v40, %v10972_v8  ;;  %v6232_v36 = vcombine.low %v5675_v25, %v5677_v32  ;;  %v14261_v6 = vrot.slane %v5678_v13, %v10972_v8  ;;  %v5693_v15 = vcombine.high %v5685_v3, %v5685_v3  ;;  %v5382_v43 = vpop.f32.mrb[18].mxu0  ;;  %10066 = vmatprep.subr.msk.mxu1 %vm1585_vm0, %v14250_v7 }
 0x303   : > { %v5695_v10 = vcombine.high %v5537_v33, %v5537_v33  ;;  %v5702_v23 = vrot.slane %v5537_v33, %v10972_v8  ;;  %v10259_v22 = vadd.f32 %v5382_v43, %v14023_v57  ;;  %v9974_v2 = vpop.f32.mrb[19].mxu0  ;;  %v5515_v63 = vadd.f32 %v14112_v46, %v5487_v61 }
 0x304   : > { %v6231_v26 = vcombine.low %v6223_v30, %v6230_v53  ;;  %v6240_v21 = vrot.slane %v6232_v36, %v10972_v8  ;;  %v6233_v62 = vcombine.low %v5685_v3, %v5693_v15  ;;  %v5694_v37 = vcombine.high %v14261_v6, %v14261_v6 }
 0x305   : > { %v5709_v57 = vrot.slane %v5695_v10, %v10972_v8  ;;  %v5710_v25 = vcombine.high %v5702_v23, %v5702_v23  ;;  %v5488_v16 = vmul.f32 %v10259_v22, %v14106_v60  ;;  %v6643_v42 = vrot.slane %v14256_v52, 1 }
 0x306   : > { %v6247_v59 = vrot.slane %v6233_v62, %v10972_v8  ;;  %v6256_v30 = vcombine.low %v5694_v37, %v5702_v23  ;;  %v6214_v41 = vrot.slane %v5659_v28, %v10972_v8  ;;  %v5387_v55 = vpop.f32.mrb[20].mxu0  ;;  %v5538_v12 = vmax.f32 %v5515_v63, 0.0 }
 0x307   : > { %v6257_v1 = vcombine.low %v5710_v25, %v5709_v57  ;;  %v5711_v32 = vcombine.high %v5709_v57, %v5709_v57  ;;  %v5516_v40 = vadd.f32 %v14112_v46, %v5488_v16  ;;  %v9977_v13 = vpop.f32.mrb[21].mxu0  ;;  %v14301_v33 = vsel %vm6636_vm5, %v6642_v48, %v6643_v42 }
 0x308   : > { %v6248_v50 = vcombine.low %v6240_v21, %v6247_v59  ;;  %v6264_v3 = vrot.slane %v6256_v30, %v10972_v8  ;;  %v14303_v17 = vsel %vm6048_vm11, %v6214_v41, 0.0  ;;  %vm5990_vm1 = vcmp.lt.s32.totalorder %v14159_v38, 16  ;;  %10019 = vmatprep.mubr.msk.f32.mxu1 %vm1538_vm2, %v14301_v33 }
 0x309   : > { %v6271_v28 = vrot.slane %v6257_v1, %v10972_v8  ;;  %v5712_v29 = vcombine.high %v5538_v12, %v5538_v12  ;;  %v5719_v53 = vrot.slane %v5538_v12, %v10972_v8  ;;  %v5539_v36 = vmax.f32 %v5516_v40, 0.0  ;;  %vm14375_vm7 = vmand %vm5980_vm15, %vm5990_vm1 }
 0x30a   : > { %v6645_v15 = vrot.slane %v14303_v17, 1  ;;  %v10260_v48 = vadd.f32 %v5387_v55, %v14030_v49  ;;  %v5392_v43 = vpop.f32.mrb[22].mxu0  ;;  %v14313_v10 = vsel %vm6016_vm14, %v6231_v26, 0.0  ;;  %v14317_v23 = vsel %vm14277_vm10, %v6248_v50, 0.0  ;;  %vm6019_vm8 = vmand %vm14375_vm7, %vm6007_vm13 }
 0x30b   : > { %v14319_v61 = vcombine.low %v6264_v3, %v6271_v28  ;;  %v14322_v22 = vrot.slane %v5712_v29, %v10972_v8  ;;  %v5727_v2 = vcombine.high %v5719_v53, %v5719_v53  ;;  %v6273_v21 = vcombine.low %v5711_v32, %v5719_v53  ;;  %v9980_v62 = vpop.f32.mrb[23].mxu0  ;;  %vm6054_vm14 = vmand %vm14375_vm7, %vm6042_vm12 }
 0x30c   : > { %v5729_v37 = vcombine.high %v5539_v36, %v5539_v36  ;;  %v5736_v57 = vrot.slane %v5539_v36, %v10972_v8  ;;  %v14326_v49 = vsel %vm6636_vm5, %v6643_v42, %v6645_v15  ;;  %v5489_v26 = vmul.f32 %v10260_v48, %v14106_v60 }
 0x30d   : > { %v6274_v25 = vcombine.low %v5727_v2, %v14322_v22  ;;  %v6281_v63 = vrot.slane %v6273_v21, %v10972_v8  ;;  %10020 = vmatmul.mubr.msk.f32.gmra.mrb[48].mxu1 %vm1538_vm2, %v14326_v49  ;;  %v10261_v16 = vadd.f32 %v5392_v43, %v14037_v35  ;;  %v14335_v59 = vadd.s32 6, %v14120_v31 }
 0x30e   : > { %v5743_v30 = vrot.slane %v5729_v37, %v10972_v8  ;;  %v5744_v41 = vcombine.high %v5736_v57, %v5736_v57  ;;  %v5517_v42 = vadd.f32 %v14112_v46, %v5489_v26  ;;  %v6647_v55 = vrot.slane %v14313_v10, 1  ;;  %v5397_v1 = vpop.f32.mrb[24].mxu0 }
 0x30f   : > { %v6288_v12 = vrot.slane %v6274_v25, %v10972_v8  ;;  %v5490_v32 = vmul.f32 %v10261_v16, %v14106_v60  ;;  %v6648_v40 = vrot.slane %v14317_v23, 1  ;;  %v10262_v13 = vadd.f32 %v5397_v1, %v14048_v27  ;;  %v9983_v35 = vpop.f32.mrb[25].mxu0 }
 0x310   : > { %v5745_v50 = vcombine.high %v5743_v30, %v5743_v30  ;;  %v6297_v3 = vcombine.low %v5736_v57, %v5744_v41  ;;  %v5540_v28 = vmax.f32 %v5517_v42, 0.0  ;;  %v6255_v53 = vrot.slane %v14261_v6, %v10972_v8 }
 0x311   : > { %vm5981_vm4 = vcmp.ge.s32.totalorder %v14166_v11, 0  ;;  %vm5991_vm6 = vcmp.lt.s32.totalorder %v14166_v11, 16  ;;  %v6289_v27 = vcombine.low %v6281_v63, %v6288_v12  ;;  %v5518_v36 = vadd.f32 %v14112_v46, %v5490_v32 }
 0x312   : > { %v14358_v15 = vsel %vm6636_vm5, %v6647_v55, %v6648_v40  ;;  %v5491_v48 = vmul.f32 %v10262_v13, %v14106_v60  ;;  %v6298_v45 = vcombine.low %v5743_v30, %v5745_v50  ;;  %v6305_v43 = vrot.slane %v6297_v3, %v10972_v8  ;;  %v5402_v6 = vpop.f32.mrb[26].mxu0  ;;  %vm14420_vm11 = vmand %vm5981_vm4, %vm5991_vm6 }
 0x313   : > { %v5746_v2 = vcombine.high %v5540_v28, %v5540_v28  ;;  %v5753_v21 = vrot.slane %v5540_v28, %v10972_v8  ;;  %10022 = vmatprep.mubr.msk.f32.mxu1 %vm1538_vm2, %v14358_v15  ;;  %v5541_v62 = vmax.f32 %v5518_v36, 0.0  ;;  %v14368_v57 = vsel %vm14348_vm3, %v6255_v53, 0.0  ;;  %v9986_v25 = vpop.f32.mrb[27].mxu0  ;;  %vm6022_vm15 = vmand %vm14420_vm11, %vm6007_vm13 }
 0x314   : > { %v5519_v37 = vadd.f32 %v14112_v46, %v5491_v48  ;;  %v10263_v26 = vadd.f32 %v5402_v6, %v14061_v5  ;;  %v6312_v16 = vrot.slane %v6298_v45, %v10972_v8  ;;  %v6650_v42 = vrot.slane %v14368_v57, 1  ;;  %vm6057_vm1 = vmand %vm14420_vm11, %vm6042_vm12 }
 0x315   : > { %v5760_v30 = vrot.slane %v5746_v2, %v10972_v8  ;;  %v5761_v41 = vcombine.high %v5753_v21, %v5753_v21  ;;  %v5763_v55 = vcombine.high %v5541_v62, %v5541_v62  ;;  %v14383_v1 = vrot.slane %v5541_v62, %v10972_v8 }
 0x316   : > { %v5542_v5 = vmax.f32 %v5519_v37, 0.0  ;;  %v5492_v12 = vmul.f32 %v10263_v26, %v14106_v60  ;;  %v5728_v38 = vcombine.high %v14322_v22, %v14322_v22  ;;  %v14389_v35 = vsel %vm6636_vm5, %v6648_v40, %v6650_v42  ;;  %v5407_v50 = vpop.f32.mrb[28].mxu0 }
 0x317   : > { %v5762_v32 = vcombine.high %v5760_v30, %v5760_v30  ;;  %v6314_v13 = vcombine.low %v5753_v21, %v5761_v41  ;;  %v6313_v3 = vcombine.low %v6305_v43, %v6312_v16  ;;  %v5777_v28 = vrot.slane %v5763_v55, %v10972_v8  ;;  %10023 = vmatmul.mubr.msk.f32.gmra.mrb[50].mxu1 %vm1538_vm2, %v14389_v35  ;;  %v9989_v22 = vpop.f32.mrb[29].mxu0 }
 0x318   : > { %v5778_v29 = vcombine.high %v14383_v1, %v14383_v1  ;;  %v5780_v53 = vcombine.high %v5542_v5, %v5542_v5  ;;  %v5787_v48 = vrot.slane %v5542_v5, %v10972_v8  ;;  %v5520_v45 = vadd.f32 %v14112_v46, %v5492_v12 }
 0x319   : > { %v6315_v36 = vcombine.low %v5760_v30, %v5762_v32  ;;  %v6322_v40 = vrot.slane %v6314_v13, %v10972_v8  ;;  %v5779_v21 = vcombine.high %v5777_v28, %v5777_v28  ;;  %v14405_v6 = vsel %vm6019_vm8, %v14319_v61, 0.0 }
 0x31a   : > { %v6338_v2 = vcombine.low %v5778_v29, %v5777_v28  ;;  %v5794_v43 = vrot.slane %v5780_v53, %v10972_v8  ;;  %vm5982_vm9 = vcmp.ge.s32.totalorder %v14178_v4, 0  ;;  %vm5992_vm10 = vcmp.lt.s32.totalorder %v14178_v4, 16  ;;  %v5412_v16 = vpop.f32.mrb[30].mxu0 }
 0x31b   : > { %v6329_v62 = vrot.slane %v6315_v36, %v10972_v8  ;;  %v5795_v37 = vcombine.high %v5787_v48, %v5787_v48  ;;  %v5543_v26 = vmax.f32 %v5520_v45, 0.0  ;;  %v14412_v25 = vsel %vm14375_vm7, %v6289_v27, 0.0  ;;  %v9992_v55 = vpop.f32.mrb[31].mxu0  ;;  %vm14488_vm3 = vmand %vm5982_vm9, %vm5992_vm10 }
 0x31c   : > { %v6346_v30 = vrot.slane %v6338_v2, %v10972_v8  ;;  %v6339_v41 = vcombine.low %v5779_v21, %v5787_v48  ;;  %v5796_v42 = vcombine.high %v5794_v43, %v5794_v43  ;;  %v6652_v61 = vrot.slane %v14405_v6, 1  ;;  %vm6025_vm7 = vmand %vm14488_vm3, %vm6007_vm13 }
 0x31d   : > { %v6330_v12 = vcombine.low %v6322_v40, %v6329_v62  ;;  %v6355_v32 = vcombine.low %v5795_v37, %v5794_v43  ;;  %v5797_v27 = vcombine.high %v5543_v26, %v5543_v26  ;;  %v14425_v13 = vrot.slane %v5543_v26, %v10972_v8  ;;  %vm6060_vm9 = vmand %vm14488_vm3, %vm6042_vm12 }
 0x31e   : > { %v6353_v28 = vrot.slane %v6339_v41, %v10972_v8  ;;  %v6653_v29 = vrot.slane %v14412_v25, 1  ;;  %v10264_v11 = vadd.f32 %v5407_v50, %v14068_v44  ;;  %v6296_v53 = vrot.slane %v5728_v38, %v10972_v8  ;;  %v5417_v45 = vpop.f32.mrb[32].mxu0 }
 0x31f   : > { %v6337_v22 = vrot.slane %v14383_v1, %v10972_v8  ;;  %v6363_v36 = vrot.slane %v6355_v32, %v10972_v8  ;;  %v5811_v40 = vrot.slane %v5797_v27, %v10972_v8  ;;  %v6356_v48 = vcombine.low %v5796_v42, %v14425_v13  ;;  %v9995_v1 = vpop.f32.mrb[33].mxu0 }
 0x320   : > { %v6354_v63 = vcombine.low %v6346_v30, %v6353_v28  ;;  %v14445_v44 = vsel %vm6636_vm5, %v6652_v61, %v6653_v29  ;;  %v5493_v38 = vmul.f32 %v10264_v11, %v14106_v60  ;;  %v14448_v50 = vsel %vm6054_vm14, %v6296_v53, 0.0 }
 0x321   : > { %v5813_v2 = vcombine.high %v5811_v40, %v5811_v40  ;;  %v6370_v21 = vrot.slane %v6356_v48, %v10972_v8  ;;  %10025 = vmatprep.mubr.msk.f32.mxu1 %vm1538_vm2, %v14445_v44  ;;  %v6655_v43 = vrot.slane %v14448_v50, 1  ;;  %v10265_v62 = vadd.f32 %v5412_v16, %v14075_v0 }
 0x322   : > { %v5521_v37 = vadd.f32 %v14112_v46, %v5493_v38  ;;  %v10266_v26 = vadd.f32 %v5417_v45, %v14081_v18  ;;  %v14457_v30 = vsel %vm6022_vm15, %v6313_v3, 0.0  ;;  %v14461_v41 = vsel %vm14420_vm11, %v6330_v12, 0.0  ;;  %v5422_v18 = vpop.f32.mrb[34].mxu0 }
 0x323   : > { %v14467_v42 = vcombine.low %v6363_v36, %v6370_v21  ;;  %v6379_v61 = vcombine.low %v5811_v40, %v5813_v2  ;;  %v14470_v0 = vsel %vm6636_vm5, %v6653_v29, %v6655_v43  ;;  %v5494_v16 = vmul.f32 %v10265_v62, %v14106_v60  ;;  %v9998_v32 = vpop.f32.mrb[35].mxu0 }
 0x324   : > { %v5544_v3 = vmax.f32 %v5521_v37, 0.0  ;;  %10026 = vmatmul.mubr.msk.f32.gmra.mrb[52].mxu1 %vm1538_vm2, %v14470_v0  ;;  %v5495_v55 = vmul.f32 %v10266_v26, %v14106_v60  ;;  %v6657_v12 = vrot.slane %v14457_v30, 1  ;;  %v6658_v5 = vrot.slane %v14461_v41, 1 }
 0x325   : > { %v5522_v28 = vadd.f32 %v14112_v46, %v5494_v16  ;;  %v14481_v29 = vsel %vm6057_vm1, %v6337_v22, 0.0  ;;  %v10267_v11 = vadd.f32 %v5422_v18, %v14084_v19  ;;  %vm5983_vm4 = vcmp.ge.s32.totalorder %v14335_v59, 0 }
 0x326   : > { %vm5993_vm6 = vcmp.lt.s32.totalorder %v14335_v59, 16  ;;  %v5814_v36 = vcombine.high %v5544_v3, %v5544_v3  ;;  %v5821_v40 = vrot.slane %v5544_v3, %v10972_v8  ;;  %v5523_v22 = vadd.f32 %v14112_v46, %v5495_v55  ;;  %v5427_v1 = vpop.f32.mrb[36].mxu0 }
 0x327   : > { %v14497_v48 = vsel %vm6636_vm5, %v6657_v12, %v6658_v5  ;;  %v6387_v19 = vrot.slane %v6379_v61, %v10972_v8  ;;  %v5545_v45 = vmax.f32 %v5522_v28, 0.0  ;;  %v6660_v4 = vrot.slane %v14481_v29, 1  ;;  %v10001_v37 = vpop.f32.mrb[37].mxu0  ;;  %vm14545_vm8 = vmand %vm5983_vm4, %vm5993_vm6 }
 0x328   : > { %10028 = vmatprep.mubr.msk.f32.mxu1 %vm1538_vm2, %v14497_v48  ;;  %v5496_v38 = vmul.f32 %v10267_v11, %v14106_v60  ;;  %v5828_v2 = vrot.slane %v5814_v36, %v10972_v8  ;;  %v5829_v21 = vcombine.high %v5821_v40, %v5821_v40  ;;  %v5546_v43 = vmax.f32 %v5523_v22, 0.0  ;;  %vm6028_vm10 = vmand %vm14545_vm8, %vm6007_vm13 }
 0x329   : > { %v14506_v62 = vadd.f32 %v5427_v1, %v14086_v34  ;;  %v5831_v26 = vcombine.high %v5545_v45, %v5545_v45  ;;  %v5838_v61 = vrot.slane %v5545_v45, %v10972_v8  ;;  %v14514_v16 = vsel %vm6636_vm5, %v6658_v5, %v6660_v4  ;;  %vm6063_vm1 = vmand %vm14545_vm8, %vm6042_vm12 }
 0x32a   : > { %15985 = vst [vmem:[#allocation3_spill] sm:$0xff] %v14514_v16  ;;  %v5524_v18 = vadd.f32 %v14112_v46, %v5496_v38  ;;  %v5830_v3 = vcombine.high %v5828_v2, %v5828_v2  ;;  %v6380_v55 = vcombine.low %v5821_v40, %v5829_v21  ;;  %v5848_v12 = vcombine.high %v5546_v43, %v5546_v43  ;;  %v5432_v22 = vpop.f32.mrb[38].mxu0 }
 0x32b   : > { %v5855_v34 = vrot.slane %v5546_v43, %v10972_v8  ;;  %10029 = vmatmul.mubr.msk.f32.gmra.mrb[54].mxu1 %vm1538_vm2, %v14514_v16  ;;  %v14521_v32 = vrot.slane %v5831_v26, %v10972_v8  ;;  %v5846_v28 = vcombine.high %v5838_v61, %v5838_v61  ;;  %v14523_v36 = vsel %vm6025_vm7, %v6354_v63, 0.0  ;;  %v10004_v38 = vpop.f32.mrb[39].mxu0 }
 0x32c   : > { %v5547_v11 = vmax.f32 %v5524_v18, 0.0  ;;  %v6394_v5 = vrot.slane %v6380_v55, %v10972_v8  ;;  %v6396_v45 = vcombine.low %v5828_v2, %v5830_v3  ;;  %v5862_v4 = vrot.slane %v5848_v12, %v10972_v8 }
 0x32d   : > { %v5863_v40 = vcombine.high %v5855_v34, %v5855_v34  ;;  %v6397_v1 = vcombine.low %v5838_v61, %v5846_v28  ;;  %v5847_v21 = vcombine.high %v14521_v32, %v14521_v32 }
 0x32e   : > { %v5865_v43 = vcombine.high %v5547_v11, %v5547_v11  ;;  %v5872_v37 = vrot.slane %v5547_v11, %v10972_v8  ;;  %v6395_v26 = vcombine.low %v6387_v19, %v6394_v5  ;;  %v6404_v18 = vrot.slane %v6396_v45, %v10972_v8  ;;  %v5437_v12 = vpop.f32.mrb[40].mxu0 }
 0x32f   : > { %v6421_v63 = vcombine.low %v5863_v40, %v5862_v4  ;;  %v5864_v27 = vcombine.high %v5862_v4, %v5862_v4  ;;  %v6411_v16 = vrot.slane %v6397_v1, %v10972_v8  ;;  %v6420_v55 = vcombine.low %v5847_v21, %v5855_v34  ;;  %v10007_v19 = vpop.f32.mrb[41].mxu0 }
 0x330   : > { %v14533_v2 = vrot.slane %v5865_v43, %v10972_v8  ;;  %v5880_v3 = vcombine.high %v5872_v37, %v5872_v37  ;;  %v14539_v11 = vsel %vm14488_vm3, %v14467_v42, 0.0  ;;  %v5967_v5 = vadd.s32 7, %v14120_v31 }
 0x331   : > { %v6435_v61 = vrot.slane %v6421_v63, %v10972_v8  ;;  %v6437_v28 = vcombine.low %v5864_v27, %v5872_v37  ;;  %v6412_v45 = vcombine.low %v6404_v18, %v6411_v16  ;;  %v6428_v4 = vrot.slane %v6420_v55, %v10972_v8 }
 0x332   : > { %v6438_v27 = vcombine.low %v5880_v3, %v14533_v2  ;;  %v6662_v42 = vrot.slane %v14523_v36, 1  ;;  %v6663_v38 = vrot.slane %v14539_v11, 1  ;;  %v15988_v16 = vcombine.high %v14425_v13, %v14425_v13  ;;  %v5442_v37 = vpop.f32.mrb[42].mxu0 }
 0x333   : > { %v6445_v40 = vrot.slane %v6437_v28, %v10972_v8  ;;  %v6436_v59 = vcombine.low %v6428_v4, %v6435_v61  ;;  %v14565_v43 = vadd.f32 %v5432_v22, %v14088_v39  ;;  %v10270_v18 = vadd.f32 %v5437_v12, %v14090_v20  ;;  %v10010_v63 = vpop.f32.mrb[43].mxu0 }
 0x334   : > { %v6452_v1 = vrot.slane %v6438_v27, %v10972_v8  ;;  %v6378_v21 = vrot.slane %v15988_v16, %v10972_v8  ;;  %v14572_v53 = vsel %vm6636_vm5, %v6662_v42, %v6663_v38  ;;  %vm5984_vm11 = vcmp.ge.s32.totalorder %v5967_v5, 0 }
 0x335   : > { %vm5994_vm14 = vcmp.lt.s32.totalorder %v5967_v5, 16  ;;  %10031 = vmatprep.mubr.msk.f32.mxu1 %vm1538_vm2, %v14572_v53  ;;  %v5499_v22 = vmul.f32 %v10270_v18, %v14106_v60  ;;  %v14581_v3 = vsel %vm6028_vm10, %v6395_v26, 0.0  ;;  %v14585_v61 = vsel %vm14545_vm8, %v6412_v45, 0.0 }
 0x336   : > { %v6453_v55 = vcombine.low %v6445_v40, %v6452_v1  ;;  %v14577_v39 = vsel %vm6060_vm9, %v6378_v21, 0.0  ;;  %v10271_v20 = vadd.f32 %v5442_v37, %v14092_v51  ;;  %v5447_v12 = vpop.f32.mrb[44].mxu0  ;;  %vm14588_vm15 = vmand %vm5984_vm11, %vm5994_vm14  ;;  %v6667_v26 = vrot.slane %v14581_v3, 1 }
 0x337   : > { %v6665_v13 = vrot.slane %v14577_v39, 1  ;;  %v5527_v5 = vadd.f32 %v14112_v46, %v5499_v22  ;;  %v10013_v4 = vpop.f32.mrb[45].mxu0  ;;  %v6668_v45 = vrot.slane %v14585_v61, 1  ;;  %v6419_v27 = vrot.slane %v14521_v32, %v10972_v8  ;;  %vm6031_vm3 = vmand %vm14588_vm15, %vm6007_vm13 }
 0x338   : > { %v5500_v51 = vmul.f32 %v10271_v20, %v14106_v60  ;;  %v10272_v42 = vadd.f32 %v5447_v12, %v14094_v9  ;;  %v5881_v9 = vcombine.high %v14533_v2, %v14533_v2  ;;  %v14623_v37 = vsel %vm6031_vm3, %v6436_v59, 0.0  ;;  %vm6066_vm4 = vmand %vm14588_vm15, %vm6042_vm12 }
 0x339   : > { %v14593_v19 = vsel %vm6636_vm5, %v6663_v38, %v6665_v13  ;;  %v5550_v40 = vmax.f32 %v5527_v5, 0.0  ;;  %v14613_v38 = vsel %vm6636_vm5, %v6667_v26, %v6668_v45  ;;  %v14618_v34 = vsel %vm6063_vm1, %v6419_v27, 0.0 }
 0x33a   : > { %10032 = vmatmul.mubr.msk.f32.gmra.mrb[56].mxu1 %vm1538_vm2, %v14593_v19  ;;  %v5528_v1 = vadd.f32 %v14112_v46, %v5500_v51  ;;  %v5501_v32 = vmul.f32 %v10272_v42, %v14106_v60  ;;  %v6670_v63 = vrot.slane %v14618_v34, 1  ;;  %v14630_v22 = vsel %vm14588_vm15, %v6453_v55, 0.0 }
 0x33b   : > { %v5916_v16 = vcombine.high %v5550_v40, %v5550_v40  ;;  %10034 = vmatprep.mubr.msk.f32.mxu1 %vm1538_vm2, %v14613_v38  ;;  %v6673_v55 = vrot.slane %v14630_v22, 1  ;;  %v6460_v4 = vrot.slane %v5881_v9, %v10972_v8  ;;  %v6606_v9 = vld [vmem:[%s15231_s4 + $0xc] sm:$0xf]  ;;  %vm7037_vm11 = vcmask 1045504  }
 0x33c   : > { %v5551_v21 = vmax.f32 %v5528_v1, 0.0  ;;  %v5529_v13 = vadd.f32 %v14112_v46, %v5501_v32  ;;  %v14634_v5 = vsel %vm6636_vm5, %v6668_v45, %v6670_v63  ;;  %v6672_v46 = vrot.slane %v14623_v37, 1 }
 0x33d   : > { %v5930_v18 = vrot.slane %v5916_v16, %v10972_v8  ;;  %v14650_v28 = vsel %vm6066_vm4, %v6460_v4, 0.0  ;;  %v14661_v32 = vrot.slane %v5550_v40, %v10972_v8 }
 0x33e   : > { %v5933_v20 = vcombine.high %v5551_v21, %v5551_v21  ;;  %v5940_v12 = vrot.slane %v5551_v21, %v10972_v8  ;;  %v5552_v2 = vmax.f32 %v5529_v13, 0.0  ;;  %10035 = vmatmul.mubr.msk.f32.gmra.mrb[58].mxu1 %vm1538_vm2, %v14634_v5  ;;  %v14648_v27 = vsel %vm6636_vm5, %v6672_v46, %v6673_v55 }
 0x33f   : > { %v5932_v60 = vcombine.high %v5930_v18, %v5930_v18  ;;  %10037 = vmatprep.mubr.msk.f32.mxu1 %vm1538_vm2, %v14648_v27  ;;  %v6675_v42 = vrot.slane %v14650_v28, 1  ;;  %v5931_v21 = vcombine.high %v14661_v32, %v14661_v32  ;;  %v5969_v13 = vadd.s32 9, %v14120_v31 }
 0x340   : > { %v5947_v59 = vrot.slane %v5933_v20, %v10972_v8  ;;  %v5956_v45 = vrot.slane %v5552_v2, %v10972_v8  ;;  %v5948_v40 = vcombine.high %v5940_v12, %v5940_v12 }
 0x341   : > { %v6503_v26 = vcombine.low %v5932_v60, %v5940_v12  ;;  %v14656_v16 = vsel %vm6636_vm5, %v6673_v55, %v6675_v42  ;;  %v6502_v20 = vcombine.low %v5931_v21, %v5930_v18  ;;  %vm5986_vm6 = vcmp.ge.s32.totalorder %v5969_v13, 0 }
 0x342   : > { %v5949_v51 = vcombine.high %v5947_v59, %v5947_v59  ;;  %10038 = vmatmul.mubr.msk.f32.gmra.mrb[60].mxu1 %vm1538_vm2, %v14656_v16  ;;  %v5957_v63 = vcombine.high %v5956_v45, %v5956_v45  ;;  %v6519_v2 = vcombine.low %v5948_v40, %v5947_v59  ;;  %vm5996_vm7 = vcmp.lt.s32.totalorder %v5969_v13, 16 }
 0x343   : > { %10042 = vmatprep.mubr.msk.f32.mxu1 %vm1538_vm2, %v14196_v47  ;;  %v6517_v60 = vrot.slane %v6503_v26, %v10972_v8  ;;  %vm6006_vm8 = vmand %vm5986_vm6, %vm5996_vm7  ;;  %v6510_v46 = vrot.slane %v6502_v20, %v10972_v8 }
 0x344   : > { %v6520_v1 = vcombine.low %v5949_v51, %v5956_v45  ;;  %v6542_v12 = vrot.slane %v5957_v63, %v10972_v8  ;;  %vm6037_vm9 = vmand %vm6006_vm8, %vm6007_vm13  ;;  %v6527_v18 = vrot.slane %v6519_v2, %v10972_v8 }
 0x345   : > { %vm6072_vm10 = vmand %vm6006_vm8, %vm6042_vm12  ;;  %v6518_v59 = vcombine.low %v6510_v46, %v6517_v60 }
 0x346   : > { %10043 = vmatmul.mubr.msk.f32.vlgmr.msra.gmra.mrb[46].mxu1 %vm1538_vm2, %v14216_v14  ;;  %v6602_v4 = vsel %vm6072_vm10, %v6542_v12, 0.0  ;;  %v7038_v12 = vrot.slane %v14196_v47, 2 }
 0x347   : > { %10067 = vmatpush3.msk.msra.mxu1 %vm1585_vm0, %v14250_v7  ;;  %10045 = vmatprep.mubr.msk.f32.mxu1 %vm1538_vm2, %v14238_v24  ;;  %v6534_v7 = vrot.slane %v6520_v1, %v10972_v8  ;;  %v14699_v26 = vsel %vm6037_vm9, %v6518_v59, 0.0  ;;  %v7965_v51 = vrot.slane %v6602_v4, 1  ;;  %v8138_v42 = vrot.slane %v6602_v4, 2  ;;  %v14744_v4 = vld [vmem:[%s15231_s4 + $0x10] sm:$0xf] }
 0x348   : > { %10092 = vmatprep.subr.msk.mxu1 %vm1585_vm0, %v6606_v9  ;;  %v7962_v1 = vrot.slane %v14699_v26, 1  ;;  %v8135_v21 = vrot.slane %v14699_v26, 2  ;;  %v7041_v59 = vrot.slane %v14192_v58, 2  ;;  %v7046_v58 = vrot.slane %v14303_v17, 2 }
 0x349   : > { %v6535_v55 = vcombine.low %v6527_v18, %v6534_v7  ;;  %v7039_v7 = vrot.slane %v14216_v14, 2  ;;  %v7044_v18 = vrot.slane %v14256_v52, 2  ;;  %v7051_v17 = vrot.slane %v14368_v57, 2 }
 0x34a   : > { %10046 = vmatmul.mubr.msk.f32.gmra.mrb[48].mxu1 %vm1538_vm2, %v14256_v52  ;;  %v7058_v57 = vrot.slane %v14457_v30, 2 }
 0x34b   : > { %10048 = vmatprep.mubr.msk.f32.mxu1 %vm1538_vm2, %v14313_v10  ;;  %v14701_v45 = vsel %vm6006_vm8, %v6535_v55, 0.0  ;;  %v7040_v46 = vsel %vm7037_vm11, %v7038_v12, %v7039_v7  ;;  %v7043_v55 = vrot.slane %v14238_v24, 2  ;;  %v7042_v14 = vsel %vm7037_vm11, %v7039_v7, %v7041_v59 }
 0x34c   : > { %v7963_v40 = vrot.slane %v14701_v45, 1  ;;  %v8136_v63 = vrot.slane %v14701_v45, 2  ;;  %v7059_v12 = vrot.slane %v14461_v41, 2 }
 0x34d   : > { %v14748_v47 = vsel %vm7037_vm11, %v7043_v55, %v7044_v18  ;;  %v7064_v55 = vrot.slane %v14539_v11, 2 }
 0x34e   : > { %10049 = vmatmul.mubr.msk.f32.gmra.mrb[50].mxu1 %vm1538_vm2, %v14317_v23  ;;  %v14710_v13 = vsel %vm6636_vm5, %v7962_v1, %v7963_v40  ;;  %v14713_v20 = vsel %vm6636_vm5, %v7963_v40, %v7965_v51  ;;  %v14716_v60 = vsel %vm7037_vm11, %v8135_v21, %v8136_v63  ;;  %v14719_v2 = vsel %vm7037_vm11, %v8136_v63, %v8138_v42 }
 0x34f   : > { %10051 = vmatprep.mubr.msk.f32.mxu1 %vm1538_vm2, %v14405_v6  ;;  %15991 = vst [vmem:[#allocation7_spill] sm:$0xff] %v14719_v2  ;;  %v7049_v51 = vrot.slane %v14317_v23, 2  ;;  %v7048_v42 = vrot.slane %v14313_v10, 2  ;;  %v14759_v1 = vsel %vm7037_vm11, %v7044_v18, %v7046_v58  ;;  %v7053_v40 = vrot.slane %v14405_v6, 2 }
 0x350   : > { %v14790_v59 = vsel %vm7037_vm11, %v7058_v57, %v7059_v12  ;;  %v7074_v57 = vrot.slane %v14630_v22, 2 }
 0x351   : > { %v14764_v21 = vsel %vm7037_vm11, %v7048_v42, %v7049_v51  ;;  %v14772_v63 = vsel %vm7037_vm11, %v7049_v51, %v7051_v17  ;;  %v7069_v42 = vrot.slane %v14585_v61, 2 }
 0x352   : > { %10052 = vmatmul.mubr.msk.f32.gmra.mrb[52].mxu1 %vm1538_vm2, %v14412_v25 }
 0x353   : > { %10054 = vmatprep.mubr.msk.f32.mxu1 %vm1538_vm2, %v14457_v30 }
 0x356   : > { %10055 = vmatmul.mubr.msk.f32.gmra.mrb[54].mxu1 %vm1538_vm2, %v14461_v41 }
 0x357   : > { %10057 = vmatprep.mubr.msk.f32.mxu1 %vm1538_vm2, %v14523_v36 }
 0x35a   : > { %10058 = vmatmul.mubr.msk.f32.gmra.mrb[56].mxu1 %vm1538_vm2, %v14539_v11 }
 0x35b   : > { %10060 = vmatprep.mubr.msk.f32.mxu1 %vm1538_vm2, %v14581_v3 }
 0x35e   : > { %10061 = vmatmul.mubr.msk.f32.gmra.mrb[58].mxu1 %vm1538_vm2, %v14585_v61 }
 0x35f   : > { %10063 = vmatprep.mubr.msk.f32.mxu1 %vm1538_vm2, %v14623_v37 }
 0x362   : > { %10064 = vmatmul.mubr.msk.f32.gmra.mrb[60].mxu1 %vm1538_vm2, %v14630_v22 }
 0x363   : > { %10068 = vmatprep.mubr.msk.f32.mxu1 %vm1538_vm2, %v7040_v46  ;;  %v7056_v46 = vrot.slane %v14448_v50, 2  ;;  %v7063_v50 = vrot.slane %v14523_v36, 2 }
 0x365   : > { %v14803_v58 = vsel %vm7037_vm11, %v7063_v50, %v7064_v55 }
 0x366   : > { %10069 = vmatmul.mubr.msk.f32.vlgmr.msra.gmra.mrb[46].mxu1 %vm1538_vm2, %v7042_v14  ;;  %v7061_v14 = vrot.slane %v14481_v29, 2  ;;  %v7068_v29 = vrot.slane %v14581_v3, 2 }
 0x367   : > { %10093 = vmatpush3.msk.msra.mxu1 %vm1585_vm0, %v6606_v9  ;;  %10071 = vmatprep.mubr.msk.f32.mxu1 %vm1538_vm2, %v14748_v47  ;;  %v7054_v9 = vrot.slane %v14412_v25, 2 }
 0x368   : > { %10118 = vmatprep.subr.msk.mxu1 %vm1585_vm0, %v14744_v4  ;;  %v14798_v51 = vsel %vm7037_vm11, %v7059_v12, %v7061_v14 }
 0x369   : > { %v14777_v7 = vsel %vm7037_vm11, %v7053_v40, %v7054_v9  ;;  %v14785_v18 = vsel %vm7037_vm11, %v7054_v9, %v7056_v46  ;;  %v7066_v9 = vrot.slane %v14577_v39, 2  ;;  %v10798_v40 = vld [vmem:[%s15230_s3] ss:$0 sm:$0xff]  ;;  %v14820_v46 = vsel %vm7037_vm11, %v7068_v29, %v7069_v42 }
 0x36a   : > { %10072 = vmatmul.mubr.msk.f32.gmra.mrb[48].mxu1 %vm1538_vm2, %v14759_v1  ;;  %v5497_v12 = vmul.f32 %v10798_v40, %v14506_v62  ;;  %v7071_v39 = vrot.slane %v14618_v34, 2  ;;  %v5498_v14 = vmul.f32 %v10798_v40, %v14565_v43  ;;  %v10799_v62 = vld [vmem:[%s15230_s3 + $0x1] ss:$0 sm:$0xff]  ;;  %v7076_v34 = vrot.slane %v14650_v28, 2 }
 0x36b   : > { %10074 = vmatprep.mubr.msk.f32.mxu1 %vm1538_vm2, %v14764_v21  ;;  %v14811_v17 = vsel %vm7037_vm11, %v7064_v55, %v7066_v9  ;;  %v7073_v55 = vrot.slane %v14623_v37, 2 }
 0x36c   : > { %v14829_v50 = vsel %vm7037_vm11, %v7069_v42, %v7071_v39  ;;  %v5525_v9 = vadd.f32 %v10799_v62, %v5497_v12  ;;  %v5526_v43 = vadd.f32 %v10799_v62, %v5498_v14  ;;  %v14843_v42 = vsel %vm7037_vm11, %v7074_v57, %v7076_v34  ;;  %v6608_v39 = vld [vmem:[%s15231_s4 + $0x14] sm:$0xf] }
 0x36d   : > { %v14837_v29 = vsel %vm7037_vm11, %v7073_v55, %v7074_v57  ;;  %v5968_v34 = vadd.s32 8, %v14120_v31 }
 0x36e   : > { %10075 = vmatmul.mubr.msk.f32.gmra.mrb[50].mxu1 %vm1538_vm2, %v14772_v63  ;;  %v5548_v40 = vmax.f32 %v5525_v9, 0.0  ;;  %v5549_v12 = vmax.f32 %v5526_v43, 0.0 }
 0x36f   : > { %10077 = vmatprep.mubr.msk.f32.mxu1 %vm1538_vm2, %v14777_v7  ;;  %vm5985_vm14 = vcmp.ge.s32.totalorder %v5968_v34, 0  ;;  %vm5995_vm15 = vcmp.lt.s32.totalorder %v5968_v34, 16 }
 0x370   : > { %v5882_v55 = vcombine.high %v5548_v40, %v5548_v40  ;;  %v5899_v28 = vcombine.high %v5549_v12, %v5549_v12  ;;  %v5889_v57 = vrot.slane %v5548_v40, %v10972_v8  ;;  %vm14881_vm1 = vmand %vm5985_vm14, %vm5995_vm15 }
 0x371   : > { %vm6034_vm3 = vmand %vm14881_vm1, %vm6007_vm13 }
 0x372   : > { %10078 = vmatmul.mubr.msk.f32.gmra.mrb[52].mxu1 %vm1538_vm2, %v14785_v18  ;;  %v5897_v62 = vcombine.high %v5889_v57, %v5889_v57  ;;  %vm6069_vm13 = vmand %vm14881_vm1, %vm6042_vm12 }
 0x373   : > { %10080 = vmatprep.mubr.msk.f32.mxu1 %vm1538_vm2, %v14790_v59 }
 0x376   : > { %10081 = vmatmul.mubr.msk.f32.gmra.mrb[54].mxu1 %vm1538_vm2, %v14798_v51 }
 0x377   : > { %10083 = vmatprep.mubr.msk.f32.mxu1 %vm1538_vm2, %v14803_v58 }
 0x37a   : > { %10084 = vmatmul.mubr.msk.f32.gmra.mrb[56].mxu1 %vm1538_vm2, %v14811_v17 }
 0x37b   : > { %10086 = vmatprep.mubr.msk.f32.mxu1 %vm1538_vm2, %v14820_v46 }
 0x37e   : > { %10087 = vmatmul.mubr.msk.f32.gmra.mrb[58].mxu1 %vm1538_vm2, %v14829_v50 }
 0x37f   : > { %10089 = vmatprep.mubr.msk.f32.mxu1 %vm1538_vm2, %v14837_v29 }
 0x382   : > { %10090 = vmatmul.mubr.msk.f32.gmra.mrb[60].mxu1 %vm1538_vm2, %v14843_v42 }
 0x383   : > { %10094 = vmatprep.mubr.msk.f32.mxu1 %vm1538_vm2, %v14238_v24  ;;  %v5896_v24 = vrot.slane %v5882_v55, %v10972_v8  ;;  %v6461_v55 = vcombine.low %v5889_v57, %v5897_v62 }
 0x385   : > { %v5898_v14 = vcombine.high %v5896_v24, %v5896_v24 }
 0x386   : > { %10095 = vmatmul.mubr.msk.f32.vlgmr.msra.gmra.mrb[46].mxu1 %vm1538_vm2, %v14256_v52  ;;  %v5913_v52 = vrot.slane %v5899_v28, %v10972_v8 }
 0x387   : > { %10119 = vmatpush3.msk.msra.mxu1 %vm1585_vm0, %v14744_v4  ;;  %10097 = vmatprep.mubr.msk.f32.mxu1 %vm1538_vm2, %v14313_v10  ;;  %v5906_v4 = vrot.slane %v5549_v12, %v10972_v8  ;;  %v6462_v43 = vcombine.low %v5896_v24, %v5898_v14  ;;  %v6469_v24 = vrot.slane %v6461_v55, %v10972_v8 }
 0x388   : > { %10144 = vmatprep.subr.msk.mxu1 %vm1585_vm0, %v6608_v39  ;;  %v5915_v9 = vcombine.high %v5913_v52, %v5913_v52 }
 0x389   : > { %v5914_v40 = vcombine.high %v5906_v4, %v5906_v4  ;;  %v6476_v12 = vrot.slane %v6462_v43, %v10972_v8  ;;  %v6610_v43 = vld [vmem:[%s15231_s4 + $0x1c] sm:$0xf] }
 0x38a   : > { %10098 = vmatmul.mubr.msk.f32.gmra.mrb[48].mxu1 %vm1538_vm2, %v14317_v23  ;;  %v6479_v28 = vcombine.low %v5913_v52, %v5915_v9 }
 0x38b   : > { %10100 = vmatprep.mubr.msk.f32.mxu1 %vm1538_vm2, %v14405_v6  ;;  %v6478_v2 = vcombine.low %v5906_v4, %v5914_v40  ;;  %v6477_v52 = vcombine.low %v6469_v24, %v6476_v12  ;;  %v6611_v12 = vld [vmem:[%s15231_s4 + $0x20] sm:$0xf] }
 0x38c   : > { %v6493_v57 = vrot.slane %v6479_v28, %v10972_v8 }
 0x38d   : > { %v6486_v14 = vrot.slane %v6478_v2, %v10972_v8  ;;  %v14898_v62 = vsel %vm6034_vm3, %v6477_v52, 0.0 }
 0x38e   : > { %10101 = vmatmul.mubr.msk.f32.gmra.mrb[50].mxu1 %vm1538_vm2, %v14412_v25 }
 0x38f   : > { %10103 = vmatprep.mubr.msk.f32.mxu1 %vm1538_vm2, %v14457_v30  ;;  %v6494_v4 = vcombine.low %v6486_v14, %v6493_v57 }
 0x391   : > { %v14904_v9 = vsel %vm14881_vm1, %v6494_v4, 0.0 }
 0x392   : > { %10104 = vmatmul.mubr.msk.f32.gmra.mrb[52].mxu1 %vm1538_vm2, %v14461_v41  ;;  %v7446_v2 = vrot.slane %v14904_v9, 1 }
 0x393   : > { %10106 = vmatprep.mubr.msk.f32.mxu1 %vm1538_vm2, %v14523_v36 }
 0x396   : > { %10107 = vmatmul.mubr.msk.f32.gmra.mrb[54].mxu1 %vm1538_vm2, %v14539_v11 }
 0x397   : > { %10109 = vmatprep.mubr.msk.f32.mxu1 %vm1538_vm2, %v14581_v3 }
 0x39a   : > { %10110 = vmatmul.mubr.msk.f32.gmra.mrb[56].mxu1 %vm1538_vm2, %v14585_v61 }
 0x39b   : > { %10112 = vmatprep.mubr.msk.f32.mxu1 %vm1538_vm2, %v14623_v37 }
 0x39e   : > { %10113 = vmatmul.mubr.msk.f32.gmra.mrb[58].mxu1 %vm1538_vm2, %v14630_v22 }
 0x39f   : > { %10115 = vmatprep.mubr.msk.f32.mxu1 %vm1538_vm2, %v14898_v62 }
 0x3a2   : > { %10116 = vmatmul.mubr.msk.f32.gmra.mrb[60].mxu1 %vm1538_vm2, %v14904_v9 }
 0x3a3   : > { %10120 = vmatprep.mubr.msk.f32.mxu1 %vm1538_vm2, %v14301_v33  ;;  %v15994_v33 = vld [vmem:[#allocation3_spill] sm:$0xff] }
 0x3a6   : > { %10121 = vmatmul.mubr.msk.f32.vlgmr.msra.gmra.mrb[46].mxu1 %vm1538_vm2, %v14326_v49  ;;  %v6501_v49 = vrot.slane %v14661_v32, %v10972_v8 }
 0x3a7   : > { %10145 = vmatpush3.msk.msra.mxu1 %vm1585_vm0, %v6608_v39  ;;  %10123 = vmatprep.mubr.msk.f32.mxu1 %vm1538_vm2, %v14358_v15  ;;  %v7445_v39 = vrot.slane %v14898_v62, 1 }
 0x3a8   : > { %10170 = vmatprep.subr.msk.mxu1 %vm1585_vm0, %v6609_v56  ;;  %v6599_v34 = vsel %vm6069_vm13, %v6501_v49, 0.0  ;;  %v10810_v49 = vld [vmem:[%s10977_s16 + $0x88] sm:$0xf] }
 0x3a9   : > { %v7447_v8 = vsel %vm6636_vm5, %v7445_v39, %v7446_v2  ;;  %v7448_v54 = vrot.slane %v6599_v34, 1  ;;  %v7621_v55 = vrot.slane %v6599_v34, 2 }
 0x3aa   : > { %10124 = vmatmul.mubr.msk.f32.gmra.mrb[48].mxu1 %vm1538_vm2, %v14389_v35 }
 0x3ab   : > { %10126 = vmatprep.mubr.msk.f32.mxu1 %vm1538_vm2, %v14445_v44  ;;  %v7449_v32 = vsel %vm6636_vm5, %v7446_v2, %v7448_v54  ;;  %v8368_v2 = vrot.slane %v10810_v49, 2  ;;  %v10811_v54 = vld [vmem:[%s10977_s16 + $0x78] sm:$0xff] }
 0x3ae   : > { %10127 = vmatmul.mubr.msk.f32.gmra.mrb[50].mxu1 %vm1538_vm2, %v14470_v0 }
 0x3af   : > { %10129 = vmatprep.mubr.msk.f32.mxu1 %vm1538_vm2, %v14497_v48 }
 0x3b2   : > { %10130 = vmatmul.mubr.msk.f32.gmra.mrb[52].mxu1 %vm1538_vm2, %v15994_v33 }
 0x3b3   : > { %10132 = vmatprep.mubr.msk.f32.mxu1 %vm1538_vm2, %v14572_v53 }
 0x3b6   : > { %10133 = vmatmul.mubr.msk.f32.gmra.mrb[54].mxu1 %vm1538_vm2, %v14593_v19 }
 0x3b7   : > { %10135 = vmatprep.mubr.msk.f32.mxu1 %vm1538_vm2, %v14613_v38 }
 0x3ba   : > { %10136 = vmatmul.mubr.msk.f32.gmra.mrb[56].mxu1 %vm1538_vm2, %v14634_v5 }
 0x3bb   : > { %10138 = vmatprep.mubr.msk.f32.mxu1 %vm1538_vm2, %v14648_v27 }
 0x3be   : > { %10139 = vmatmul.mubr.msk.f32.gmra.mrb[58].mxu1 %vm1538_vm2, %v14656_v16 }
 0x3bf   : > { %10141 = vmatprep.mubr.msk.f32.mxu1 %vm1538_vm2, %v7447_v8 }
 0x3c2   : > { %10142 = vmatmul.mubr.msk.f32.gmra.mrb[60].mxu1 %vm1538_vm2, %v7449_v32 }
 0x3c3   : > { %10146 = vmatprep.mubr.msk.f32.mxu1 %vm1538_vm2, %v14748_v47  ;;  %v7619_v47 = vrot.slane %v14904_v9, 2 }
 0x3c5   : > { %v7622_v28 = vsel %vm7037_vm11, %v7619_v47, %v7621_v55 }
 0x3c6   : > { %10147 = vmatmul.mubr.msk.f32.vlgmr.msra.gmra.mrb[46].mxu1 %vm1538_vm2, %v14759_v1  ;;  %v7618_v1 = vrot.slane %v14898_v62, 2 }
 0x3c7   : > { %10171 = vmatpush3.msk.msra.mxu1 %vm1585_vm0, %v6609_v56  ;;  %10149 = vmatprep.mubr.msk.f32.mxu1 %vm1538_vm2, %v14764_v21  ;;  %v10809_v56 = vld [vmem:[%s10977_s16 + $0x80] sm:$0xff] }
 0x3c8   : > { %10196 = vmatprep.subr.msk.mxu1 %vm1585_vm0, %v6610_v43  ;;  %v7620_v40 = vsel %vm7037_vm11, %v7618_v1, %v7619_v47 }
 0x3ca   : > { %10150 = vmatmul.mubr.msk.f32.gmra.mrb[48].mxu1 %vm1538_vm2, %v14772_v63 }
 0x3cb   : > { %10152 = vmatprep.mubr.msk.f32.mxu1 %vm1538_vm2, %v14777_v7 }
 0x3ce   : > { %10153 = vmatmul.mubr.msk.f32.gmra.mrb[50].mxu1 %vm1538_vm2, %v14785_v18 }
 0x3cf   : > { %10155 = vmatprep.mubr.msk.f32.mxu1 %vm1538_vm2, %v14790_v59 }
 0x3d2   : > { %10156 = vmatmul.mubr.msk.f32.gmra.mrb[52].mxu1 %vm1538_vm2, %v14798_v51 }
 0x3d3   : > { %10158 = vmatprep.mubr.msk.f32.mxu1 %vm1538_vm2, %v14803_v58 }
 0x3d6   : > { %10159 = vmatmul.mubr.msk.f32.gmra.mrb[54].mxu1 %vm1538_vm2, %v14811_v17 }
 0x3d7   : > { %10161 = vmatprep.mubr.msk.f32.mxu1 %vm1538_vm2, %v14820_v46 }
 0x3da   : > { %10162 = vmatmul.mubr.msk.f32.gmra.mrb[56].mxu1 %vm1538_vm2, %v14829_v50 }
 0x3db   : > { %10164 = vmatprep.mubr.msk.f32.mxu1 %vm1538_vm2, %v14837_v29 }
 0x3de   : > { %10165 = vmatmul.mubr.msk.f32.gmra.mrb[58].mxu1 %vm1538_vm2, %v14843_v42 }
 0x3df   : > { %10167 = vmatprep.mubr.msk.f32.mxu1 %vm1538_vm2, %v7620_v40 }
 0x3e2   : > { %10168 = vmatmul.mubr.msk.f32.gmra.mrb[60].mxu1 %vm1538_vm2, %v7622_v28 }
 0x3e3   : > { %10172 = vmatprep.mubr.msk.f32.mxu1 %vm1538_vm2, %v14313_v10  ;;  %v15995_v10 = vld [vmem:[#allocation7_spill] sm:$0xff] }
 0x3e6   : > { %10173 = vmatmul.mubr.msk.f32.vlgmr.msra.gmra.mrb[46].mxu1 %vm1538_vm2, %v14317_v23  ;;  %v15096_v23 = vld [vmem:[%s15232_s5] ss:$0 sm:$0xff] }
 0x3e7   : > { %10197 = vmatpush3.msk.msra.mxu1 %vm1585_vm0, %v6610_v43  ;;  %10175 = vmatprep.mubr.msk.f32.mxu1 %vm1538_vm2, %v14405_v6  ;;  %v10801_v6 = vld [vmem:[%s10977_s16 + $0x40] sm:$0xf] }
 0x3e8   : > { %10222 = vmatprep.subr.msk.mxu1 %vm1585_vm0, %v6611_v12 }
 0x3ea   : > { %10176 = vmatmul.mubr.msk.f32.gmra.mrb[48].mxu1 %vm1538_vm2, %v14412_v25  ;;  %v8353_v25 = vrot.slane %v10801_v6, 2 }
 0x3eb   : > { %10178 = vmatprep.mubr.msk.f32.mxu1 %vm1538_vm2, %v14457_v30 }
 0x3ee   : > { %10179 = vmatmul.mubr.msk.f32.gmra.mrb[50].mxu1 %vm1538_vm2, %v14461_v41 }
 0x3ef   : > { %10181 = vmatprep.mubr.msk.f32.mxu1 %vm1538_vm2, %v14523_v36 }
 0x3f2   : > { %10182 = vmatmul.mubr.msk.f32.gmra.mrb[52].mxu1 %vm1538_vm2, %v14539_v11 }
 0x3f3   : > { %10184 = vmatprep.mubr.msk.f32.mxu1 %vm1538_vm2, %v14581_v3  ;;  %v10803_v3 = vld [vmem:[%s10977_s16 + $0x50] sm:$0xff] }
 0x3f6   : > { %10185 = vmatmul.mubr.msk.f32.gmra.mrb[54].mxu1 %vm1538_vm2, %v14585_v61  ;;  %v8356_v61 = vrot.slane %v10803_v3, 2 }
 0x3f7   : > { %10187 = vmatprep.mubr.msk.f32.mxu1 %vm1538_vm2, %v14623_v37 }
 0x3fa   : > { %10188 = vmatmul.mubr.msk.f32.gmra.mrb[56].mxu1 %vm1538_vm2, %v14630_v22 }
 0x3fb   : > { %10190 = vmatprep.mubr.msk.f32.mxu1 %vm1538_vm2, %v14898_v62 }
 0x3fe   : > { %10191 = vmatmul.mubr.msk.f32.gmra.mrb[58].mxu1 %vm1538_vm2, %v14904_v9 }
 0x3ff   : > { %10193 = vmatprep.mubr.msk.f32.mxu1 %vm1538_vm2, %v14699_v26 }
 0x402   : > { %10194 = vmatmul.mubr.msk.f32.gmra.mrb[60].mxu1 %vm1538_vm2, %v14701_v45 }
 0x403   : > { %10198 = vmatprep.mubr.msk.f32.mxu1 %vm1538_vm2, %v14358_v15  ;;  %v10800_v15 = vld [vmem:[%s10977_s16 + $0x38] sm:$0xff] }
 0x406   : > { %10199 = vmatmul.mubr.msk.f32.vlgmr.msra.gmra.mrb[46].mxu1 %vm1538_vm2, %v14389_v35  ;;  %v8351_v35 = vrot.slane %v10800_v15, 2  ;;  %v10813_v15 = vld [vmem:[%s10977_s16 + $0xa0] sm:$0xf] }
 0x407   : > { %10223 = vmatpush3.msk.msra.mxu1 %vm1585_vm0, %v6611_v12  ;;  %10201 = vmatprep.mubr.msk.f32.mxu1 %vm1538_vm2, %v14445_v44  ;;  %v10802_v44 = vld [vmem:[%s10977_s16 + $0x30] sm:$0xff]  ;;  %v10812_v12 = vld [vmem:[%s10977_s16 + $0x98] sm:$0xff] }
 0x408   : > { %v8350_v30 = vrot.slane %v10802_v44, 2  ;;  %v8354_v11 = vsel %vm7037_vm11, %v8351_v35, %v8353_v25 }
 0x40a   : > { %10202 = vmatmul.mubr.msk.f32.gmra.mrb[48].mxu1 %vm1538_vm2, %v14470_v0  ;;  %v15104_v0 = vld [vmem:[%s15232_s5 + $0x1] ss:$0 sm:$0xff]  ;;  %v8352_v22 = vsel %vm7037_vm11, %v8350_v30, %v8351_v35  ;;  %v8373_v35 = vrot.slane %v10813_v15, 2  ;;  %v10823_v15 = vld [vmem:[%s11400_s11 + $0x18] sm:$0xff] }
 0x40b   : > { %10204 = vmatprep.mubr.msk.f32.mxu1 %vm1538_vm2, %v14497_v48 }
 0x40e   : > { %10205 = vmatmul.mubr.msk.f32.gmra.mrb[50].mxu1 %vm1538_vm2, %v15994_v33  ;;  %v8366_v33 = vrot.slane %v10809_v56, 2 }
 0x40f   : > { %10207 = vmatprep.mubr.msk.f32.mxu1 %vm1538_vm2, %v14572_v53 }
 0x410   : > { %v8369_v25 = vsel %vm7037_vm11, %v8366_v33, %v8368_v2 }
 0x412   : > { %10208 = vmatmul.mubr.msk.f32.gmra.mrb[52].mxu1 %vm1538_vm2, %v14593_v19  ;;  %v10804_v19 = vld [vmem:[%s10977_s16 + $0x58] sm:$0xf] }
 0x413   : > { %10210 = vmatprep.mubr.msk.f32.mxu1 %vm1538_vm2, %v14613_v38  ;;  %v8358_v38 = vrot.slane %v10804_v19, 2 }
 0x416   : > { %10211 = vmatmul.mubr.msk.f32.gmra.mrb[54].mxu1 %vm1538_vm2, %v14634_v5  ;;  %v10805_v5 = vld [vmem:[%s10977_s16 + $0x48] sm:$0xff] }
 0x417   : > { %10213 = vmatprep.mubr.msk.f32.mxu1 %vm1538_vm2, %v14648_v27  ;;  %v8355_v27 = vrot.slane %v10805_v5, 2 }
 0x41a   : > { %10214 = vmatmul.mubr.msk.f32.gmra.mrb[56].mxu1 %vm1538_vm2, %v14656_v16 }
 0x41b   : > { %10216 = vmatprep.mubr.msk.f32.mxu1 %vm1538_vm2, %v7447_v8 }
 0x41e   : > { %10217 = vmatmul.mubr.msk.f32.gmra.mrb[58].mxu1 %vm1538_vm2, %v7449_v32  ;;  %v8365_v32 = vrot.slane %v10811_v54, 2 }
 0x41f   : > { %10219 = vmatprep.mubr.msk.f32.mxu1 %vm1538_vm2, %v14710_v13 }
 0x422   : > { %10220 = vmatmul.mubr.msk.f32.gmra.mrb[60].mxu1 %vm1538_vm2, %v14713_v20 }
 0x423   : > { %10224 = vmatprep.mubr.msk.f32.mxu1 %vm1538_vm2, %v14764_v21 }
 0x426   : > { %10225 = vmatmul.mubr.msk.f32.vlgmr.msra.gmra.mrb[46].mxu1 %vm1538_vm2, %v14772_v63  ;;  %v10807_v63 = vld [vmem:[%s10977_s16 + $0x70] sm:$0xf] }
 0x427   : > { %10227 = vmatprep.mubr.msk.f32.mxu1 %vm1538_vm2, %v14777_v7  ;;  %v8363_v7 = vrot.slane %v10807_v63, 2  ;;  %v10817_v63 = vld [vmem:[%s10977_s16 + $0xa8] sm:$0xff] }
 0x42a   : > { %10228 = vmatmul.mubr.msk.f32.gmra.mrb[48].mxu1 %vm1538_vm2, %v14785_v18 }
 0x42b   : > { %10230 = vmatprep.mubr.msk.f32.mxu1 %vm1538_vm2, %v14790_v59  ;;  %v8359_v59 = vsel %vm7037_vm11, %v8356_v61, %v8358_v38 }
 0x42e   : > { %10231 = vmatmul.mubr.msk.f32.gmra.mrb[50].mxu1 %vm1538_vm2, %v14798_v51 }
 0x42f   : > { %10233 = vmatprep.mubr.msk.f32.mxu1 %vm1538_vm2, %v14803_v58 }
 0x432   : > { %10234 = vmatmul.mubr.msk.f32.gmra.mrb[52].mxu1 %vm1538_vm2, %v14811_v17 }
 0x433   : > { %10236 = vmatprep.mubr.msk.f32.mxu1 %vm1538_vm2, %v14820_v46  ;;  %v8357_v46 = vsel %vm7037_vm11, %v8355_v27, %v8356_v61 }
 0x436   : > { %10237 = vmatmul.mubr.msk.f32.gmra.mrb[54].mxu1 %vm1538_vm2, %v14829_v50  ;;  %v10808_v50 = vld [vmem:[%s10977_s16 + $0x60] sm:$0xff] }
 0x437   : > { %10239 = vmatprep.mubr.msk.f32.mxu1 %vm1538_vm2, %v14837_v29  ;;  %v8360_v29 = vrot.slane %v10808_v50, 2  ;;  %v10818_v50 = vld [vmem:[%s11400_s11 + $0x8] sm:$0xff] }
 0x43a   : > { %10240 = vmatmul.mubr.msk.f32.gmra.mrb[56].mxu1 %vm1538_vm2, %v14843_v42 }
 0x43b   : > { %10242 = vmatprep.mubr.msk.f32.mxu1 %vm1538_vm2, %v7620_v40 }
 0x43e   : > { %10243 = vmatmul.mubr.msk.f32.gmra.mrb[58].mxu1 %vm1538_vm2, %v7622_v28 }
 0x43f   : > { %10245 = vmatprep.mubr.msk.f32.mxu1 %vm1538_vm2, %v14716_v60  ;;  %v10806_v60 = vld [vmem:[%s10977_s16 + $0x68] sm:$0xff] }
 0x440   : > { %v8361_v21 = vrot.slane %v10806_v60, 2 }
 0x442   : > { %10246 = vmatmul.mubr.msk.f32.gmra.mrb[60].mxu1 %vm1538_vm2, %v15995_v10  ;;  %v8364_v14 = vsel %vm7037_vm11, %v8361_v21, %v8363_v7  ;;  %v8362_v8 = vsel %vm7037_vm11, %v8360_v29, %v8361_v21  ;;  %v8371_v10 = vrot.slane %v10812_v12, 2  ;;  %v8375_v7 = vrot.slane %v10817_v63, 2 }
 0x443   : > { %v8381_v29 = vrot.slane %v10818_v50, 2 }
 0x4f9   : > { %v10226_v41 = vpop.f32.mrb[46].mxu1 }
 0x4fa   : > { %v8314_v48 = vmul.f32 %v10226_v41, %v15096_v23  ;;  %v8213_v36 = vpop.f32.mrb[47].mxu1 }
 0x4fb   : > { %v8313_v53 = vmul.f32 %v15096_v23, %v8213_v36  ;;  %v10814_v36 = vld [vmem:[%s10977_s16 + $0x90] sm:$0xff] }
 0x4fc   : > { %v8335_v37 = vadd.f32 %v15104_v0, %v8314_v48  ;;  %v8367_v48 = vsel %vm7037_vm11, %v8365_v32, %v8366_v33 }
 0x4fd   : > { %v8334_v16 = vadd.f32 %v15104_v0, %v8313_v53  ;;  %v10229_v26 = vpop.f32.mrb[48].mxu1 }
 0x4fe   : > { %v8407_v45 = vadd.f32 %v8354_v11, %v8335_v37  ;;  %v8316_v13 = vmul.f32 %v10229_v26, %v15096_v23  ;;  %v8223_v20 = vpop.f32.mrb[49].mxu1  ;;  %v8370_v11 = vrot.slane %v10814_v36, 2  ;;  %v8374_v37 = vsel %vm7037_vm11, %v8371_v10, %v8373_v35 }
 0x4ff   : > { %v8406_v18 = vadd.f32 %v8352_v22, %v8334_v16  ;;  %v8315_v51 = vmul.f32 %v15096_v23, %v8223_v20  ;;  %v10815_v16 = vld [vmem:[%s10977_s16 + $0xb0] sm:$0xff]  ;;  %v8385_v35 = vrot.slane %v10823_v15, 2 }
 0x500   : > { %v8423_v58 = vmax.f32 %v8407_v45, 0.0  ;;  %v8337_v17 = vadd.f32 %v15104_v0, %v8316_v13  ;;  %v8376_v26 = vrot.slane %v10815_v16, 2  ;;  %v10816_v45 = vld [vmem:[%s10977_s16 + $0xb8] sm:$0xf]  ;;  %v8372_v21 = vsel %vm7037_vm11, %v8370_v11, %v8371_v10 }
 0x501   : > { %v8422_v42 = vmax.f32 %v8406_v18, 0.0  ;;  %v8336_v31 = vadd.f32 %v15104_v0, %v8315_v51  ;;  %v10232_v24 = vpop.f32.mrb[50].mxu1  ;;  %v8378_v13 = vrot.slane %v10816_v45, 2 }
 0x502   : > { %8439 = vst.msk [vmem:[%s15121_s14 + $0x8] sm:$0xff] %vm1538_vm2, %v8423_v58  ;;  %v8409_v57 = vadd.f32 %v8359_v59, %v8337_v17  ;;  %v8318_v52 = vmul.f32 %v10232_v24, %v15096_v23  ;;  %v8233_v4 = vpop.f32.mrb[51].mxu1 }
 0x503   : > { %8438 = vst.msk [vmem:[%s15121_s14] sm:$0xff] %vm1538_vm2, %v8422_v42  ;;  %v8408_v62 = vadd.f32 %v8357_v46, %v8336_v31  ;;  %v8317_v9 = vmul.f32 %v15096_v23, %v8233_v4  ;;  %v10819_v42 = vld [vmem:[%s11400_s11 + $0x10] sm:$0xf] }
 0x504   : > { %v8425_v39 = vmax.f32 %v8409_v57, 0.0  ;;  %v8339_v34 = vadd.f32 %v15104_v0, %v8318_v52  ;;  %v8383_v31 = vrot.slane %v10819_v42, 2  ;;  %v8379_v57 = vsel %vm7037_vm11, %v8376_v26, %v8378_v13 }
 0x505   : > { %v8424_v43 = vmax.f32 %v8408_v62, 0.0  ;;  %v8338_v47 = vadd.f32 %v15104_v0, %v8317_v9  ;;  %v10235_v1 = vpop.f32.mrb[52].mxu1  ;;  %v8377_v62 = vsel %vm7037_vm11, %v8375_v7, %v8376_v26  ;;  %v10820_v9 = vld [vmem:[%s11400_s11] sm:$0xff] }
 0x506   : > { %8441 = vst.msk [vmem:[%s15121_s14 + $0x18] sm:$0xff] %vm1538_vm2, %v8425_v39  ;;  %v8411_v40 = vadd.f32 %v8364_v14, %v8339_v34  ;;  %v8320_v55 = vmul.f32 %v10235_v1, %v15096_v23  ;;  %v8243_v28 = vpop.f32.mrb[53].mxu1  ;;  %v8380_v56 = vrot.slane %v10820_v9, 2 }
 0x507   : > { %8440 = vst.msk [vmem:[%s15121_s14 + $0x10] sm:$0xff] %vm1538_vm2, %v8424_v43  ;;  %v8410_v6 = vadd.f32 %v8362_v8, %v8338_v47  ;;  %v8319_v44 = vmul.f32 %v15096_v23, %v8243_v28  ;;  %v8384_v8 = vsel %vm7037_vm11, %v8381_v29, %v8383_v31  ;;  %v10821_v47 = vld [vmem:[%s11400_s11 + $0x20] sm:$0xff] }
 0x508   : > { %v8427_v30 = vmax.f32 %v8411_v40, 0.0  ;;  %v8341_v41 = vadd.f32 %v15104_v0, %v8320_v55  ;;  %v8386_v1 = vrot.slane %v10821_v47, 2  ;;  %v10822_v40 = vld [vmem:[%s11400_s11 + $0x28] sm:$0xf]  ;;  %v8382_v10 = vsel %vm7037_vm11, %v8380_v56, %v8381_v29 }
 0x509   : > { %v8426_v53 = vmax.f32 %v8410_v6, 0.0  ;;  %v8340_v3 = vadd.f32 %v15104_v0, %v8319_v44  ;;  %v10238_v61 = vpop.f32.mrb[54].mxu1  ;;  %v8388_v55 = vrot.slane %v10822_v40, 2 }
 0x50a   : > { %8443 = vst.msk [vmem:[%s15121_s14 + $0x28] sm:$0xff] %vm1538_vm2, %v8427_v30  ;;  %v8413_v19 = vadd.f32 %v8369_v25, %v8341_v41  ;;  %v8322_v38 = vmul.f32 %v10238_v61, %v15096_v23  ;;  %v8253_v22 = vpop.f32.mrb[55].mxu1 }
 0x50b   : > { %8442 = vst.msk [vmem:[%s15121_s14 + $0x20] sm:$0xff] %vm1538_vm2, %v8426_v53  ;;  %v8412_v5 = vadd.f32 %v8367_v48, %v8340_v3  ;;  %v8321_v27 = vmul.f32 %v15096_v23, %v8253_v22  ;;  %v8389_v11 = vsel %vm7037_vm11, %v8386_v1, %v8388_v55 }
 0x50c   : > { %v8429_v20 = vmax.f32 %v8413_v19, 0.0  ;;  %v8343_v60 = vadd.f32 %v15104_v0, %v8322_v38  ;;  %v8387_v19 = vsel %vm7037_vm11, %v8385_v35, %v8386_v1 }
 0x50d   : > { %v8428_v18 = vmax.f32 %v8412_v5, 0.0  ;;  %v8342_v59 = vadd.f32 %v15104_v0, %v8321_v27  ;;  %v10241_v51 = vpop.f32.mrb[56].mxu1 }
 0x50e   : > { %8445 = vst.msk [vmem:[%s15121_s14 + $0x38] sm:$0xff] %vm1538_vm2, %v8429_v20  ;;  %v8415_v58 = vadd.f32 %v8374_v37, %v8343_v60  ;;  %v8324_v17 = vmul.f32 %v10241_v51, %v15096_v23  ;;  %v8263_v46 = vpop.f32.mrb[57].mxu1 }
 0x50f   : > { %8444 = vst.msk [vmem:[%s15121_s14 + $0x30] sm:$0xff] %vm1538_vm2, %v8428_v18  ;;  %v8414_v24 = vadd.f32 %v8372_v21, %v8342_v59  ;;  %v8323_v52 = vmul.f32 %v15096_v23, %v8263_v46 }
 0x510   : > { %v8431_v14 = vmax.f32 %v8415_v58, 0.0  ;;  %v8345_v4 = vadd.f32 %v15104_v0, %v8324_v17 }
 0x511   : > { %v8430_v33 = vmax.f32 %v8414_v24, 0.0  ;;  %v8344_v49 = vadd.f32 %v15104_v0, %v8323_v52  ;;  %v10244_v2 = vpop.f32.mrb[58].mxu1 }
 0x512   : > { %8447 = vst.msk [vmem:[%s15121_s14 + $0x48] sm:$0xff] %vm1538_vm2, %v8431_v14  ;;  %v8417_v39 = vadd.f32 %v8379_v57, %v8345_v4  ;;  %v8326_v34 = vmul.f32 %v10244_v2, %v15096_v23  ;;  %v8273_v54 = vpop.f32.mrb[59].mxu1 }
 0x513   : > { %8446 = vst.msk [vmem:[%s15121_s14 + $0x40] sm:$0xff] %vm1538_vm2, %v8430_v33  ;;  %v8416_v32 = vadd.f32 %v8377_v62, %v8344_v49  ;;  %v8325_v43 = vmul.f32 %v15096_v23, %v8273_v54 }
 0x514   : > { %v8433_v28 = vmax.f32 %v8417_v39, 0.0  ;;  %v8347_v12 = vadd.f32 %v15104_v0, %v8326_v34 }
 0x515   : > { %v8432_v6 = vmax.f32 %v8416_v32, 0.0  ;;  %v8346_v25 = vadd.f32 %v15104_v0, %v8325_v43  ;;  %v10247_v44 = vpop.f32.mrb[60].mxu1 }
 0x516   : > { %8449 = vst.msk [vmem:[%s15121_s14 + $0x58] sm:$0xff] %vm1538_vm2, %v8433_v28  ;;  %v8419_v30 = vadd.f32 %v8384_v8, %v8347_v12  ;;  %v8328_v41 = vmul.f32 %v10247_v44, %v15096_v23  ;;  %v8283_v48 = vpop.f32.mrb[61].mxu1 }
 0x517   : > { %8448 = vst.msk [vmem:[%s15121_s14 + $0x50] sm:$0xff] %vm1538_vm2, %v8432_v6  ;;  %v8418_v36 = vadd.f32 %v8382_v10, %v8346_v25  ;;  %v8327_v53 = vmul.f32 %v15096_v23, %v8283_v48 }
 0x518   : > { %v8435_v3 = vmax.f32 %v8419_v30, 0.0  ;;  %v8349_v61 = vadd.f32 %v15104_v0, %v8328_v41 }
 0x519   : > { %v8434_v38 = vmax.f32 %v8418_v36, 0.0  ;;  %v8348_v37 = vadd.f32 %v15104_v0, %v8327_v53 }
 0x51a   : > { %8451 = vst.msk [vmem:[%s15121_s14 + $0x68] sm:$0xff] %vm1538_vm2, %v8435_v3  ;;  %v8421_v22 = vadd.f32 %v8389_v11, %v8349_v61 }
 0x51b   : > { %8450 = vst.msk [vmem:[%s15121_s14 + $0x60] sm:$0xff] %vm1538_vm2, %v8434_v38  ;;  %v8420_v5 = vadd.f32 %v8387_v19, %v8348_v37 }
 0x51c   : > { %v8437_v27 = vmax.f32 %v8421_v22, 0.0 }
 0x51d   : > { %v8436_v16 = vmax.f32 %v8420_v5, 0.0 }
 0x51e   : > { %8453 = vst.msk [vmem:[%s15121_s14 + $0x78] sm:$0xff] %vm1538_vm2, %v8437_v27 }
 0x51f   : > { %8452 = vst.msk [vmem:[%s15121_s14 + $0x70] sm:$0xff] %vm1538_vm2, %v8436_v16 }
 0x520 PF: > { %s16_s25 = sadd.s32 1, %s10870_s25   ;;  %s15996_s21 = smov %s10862_s23 }
 0x521   : > { %p13_p9 = scmp.ge.s32.totalorder %s16_s25, 6   ;;  %s15997_s22 = smov %s10866_s24 }
 0x522   : > { %s15998_s23 = smov %s16001_s26  ;;  %s15999_s24 = smov %s16005_s27 }
 0x523   :  { %15 = sbr.rel (!%p13_p9) target bundleno = 3 (0x3), region = 77 }

</bundles_post_ra>
